<compile_context>
chip_gen: v6e
topology: v6e:2x2x1
jax: 0.10.0
libtpu: 0.0.40
codegen_flags: <defaults>
</compile_context>

<pallas_src>
import math
import functools

import jax
import jax.numpy as jnp
from jax.experimental import pallas as pl
from jax.experimental.pallas import tpu as pltpu


# -----------------------------------------------------------------------------
# Pallas kernel: fused KxK conv (+PReLU) (+1x1 conv + PReLU) (+residual)
# -----------------------------------------------------------------------------
def _conv_block_pallas(x_flat, w, b, *, H, Wp, K,
                       alpha=None, w2=None, b2=None, alpha2=None,
                       residual=None, out_dtype=jnp.bfloat16):
    """x_flat  : (N, Cin, Pin)  bf16, Pin = (H+K)*Wp (zero-padded, flattened)
       w       : (K*K, Cout1, Cin) bf16   per-tap weights, tap = dy*K + dx
       b       : (Cout1, 1) f32
       alpha   : (Cout1, 1) f32 or None   (PReLU slope after the KxK conv)
       w2      : (Cout2, Cout1) bf16 or None  (fused 1x1 conv)
       b2, a2  : (Cout2, 1) f32 or None
       residual: (N, Cout, Pout) or None  (fused residual add)
       returns : (N, Cout, Pout) out_dtype, Pout = H*Wp
    """
    N, Cin, Pin = x_flat.shape
    KK, C1, _ = w.shape
    assert KK == K * K
    Pout = H * Wp

    has_act1 = alpha is not None
    has_c2 = w2 is not None
    has_res = residual is not None
    Cout = w2.shape[0] if has_c2 else C1

    inputs = [x_flat, w, b]
    in_specs = [
        pl.BlockSpec((1, Cin, Pin), lambda n: (n, 0, 0)),
        pl.BlockSpec((KK, C1, Cin), lambda n: (0, 0, 0)),
        pl.BlockSpec((C1, 1), lambda n: (0, 0)),
    ]
    if has_act1:
        inputs.append(alpha)
        in_specs.append(pl.BlockSpec((C1, 1), lambda n: (0, 0)))
    if has_c2:
        inputs += [w2, b2, alpha2]
        in_specs += [pl.BlockSpec((Cout, C1), lambda n: (0, 0)),
                     pl.BlockSpec((Cout, 1), lambda n: (0, 0)),
                     pl.BlockSpec((Cout, 1), lambda n: (0, 0))]
    if has_res:
        inputs.append(residual)
        in_specs.append(pl.BlockSpec((1, Cout, Pout), lambda n: (n, 0, 0)))

    def kernel(*refs):
        it = iter(refs)
        x_ref = next(it)
        w_ref = next(it)
        b_ref = next(it)
        a_ref = next(it) if has_act1 else None
        if has_c2:
            w2_ref, b2_ref, a2_ref = next(it), next(it), next(it)
        r_ref = next(it) if has_res else None
        o_ref = next(it)

        x = x_ref[0]                                     # (Cin, Pin) bf16
        acc = jnp.zeros((C1, Pout), jnp.float32)
        # in-kernel im2col: K*K accumulated matmuls, spatial dim on lanes
        for dy in range(K):
            for dx in range(K):
                off = dy * Wp + dx                       # static python int
                acc = acc + jnp.dot(w_ref[dy * K + dx],
                                    x[:, off:off + Pout],
                                    preferred_element_type=jnp.float32)
        acc = acc + b_ref[...]
        if has_act1:
            acc = jnp.where(acc >= 0.0, acc, acc * a_ref[...])       # PReLU
        if has_c2:                                       # fused 1x1 conv
            acc = jnp.dot(w2_ref[...], acc.astype(jnp.bfloat16),
                          preferred_element_type=jnp.float32)
            acc = acc + b2_ref[...]
            acc = jnp.where(acc >= 0.0, acc, acc * a2_ref[...])      # PReLU
        if has_res:
            acc = acc + r_ref[0].astype(jnp.float32)
        o_ref[0] = acc.astype(o_ref.dtype)

    flops = 2 * N * KK * Cin * C1 * Pout
    if has_c2:
        flops += 2 * N * C1 * Cout * Pout
    bytes_accessed = (x_flat.size * x_flat.dtype.itemsize
                      + w.size * w.dtype.itemsize
                      + N * Cout * Pout * jnp.dtype(out_dtype).itemsize)
    if has_res:
        bytes_accessed += residual.size * residual.dtype.itemsize

    return pl.pallas_call(
        kernel,
        out_shape=jax.ShapeDtypeStruct((N, Cout, Pout), out_dtype),
        grid_spec=pltpu.PrefetchScalarGridSpec(
            num_scalar_prefetch=0,
            grid=(N,),
            in_specs=in_specs,
            out_specs=pl.BlockSpec((1, Cout, Pout), lambda n: (n, 0, 0)),
        ),
        compiler_params=pltpu.CompilerParams(
            dimension_semantics=("parallel",)),
        cost_estimate=pl.CostEstimate(flops=flops, transcendentals=0,
                                      bytes_accessed=bytes_accessed),
    )(*inputs)


# -----------------------------------------------------------------------------
# JAX glue: pad + flatten, conv wrapper, pixel shuffle
# -----------------------------------------------------------------------------
def _pad_flatten(x, K):
    """(N, C, H, W) -> zero-padded, row-major flattened (N, C, (H+K)*Wp)."""
    N, C, H, W = x.shape
    pad = K // 2
    # one extra zero row at the bottom keeps every tap slice in-bounds
    xp = jnp.pad(x, ((0, 0), (0, 0), (pad, pad + 1), (pad, pad)))
    Wp = W + 2 * pad
    return xp.reshape(N, C, (H + 2 * pad + 1) * Wp), Wp


def conv2d(x, p, *, K=3, alpha=None, fuse1x1=None, residual=None,
           out_dtype=jnp.bfloat16):
    """KxK 'same' conv (stride 1, zero pad) on NCHW input, returns NCHW.
       Optional fused per-channel PReLU, fused 1x1 conv (+PReLU), residual."""
    N, Cin, H, W = x.shape
    x_flat, Wp = _pad_flatten(x.astype(jnp.bfloat16), K)

    w2 = b2 = a2 = None
    if fuse1x1 is not None:
        w2, b2, a2 = fuse1x1

    r_flat = None
    if residual is not None:
        r = residual.astype(jnp.bfloat16)
        r = jnp.pad(r, ((0, 0), (0, 0), (0, 0), (0, Wp - W)))
        r_flat = r.reshape(N, r.shape[1], H * Wp)

    out = _conv_block_pallas(x_flat, p["w"], p["b"], H=H, Wp=Wp, K=K,
                             alpha=alpha, w2=w2, b2=b2, alpha2=a2,
                             residual=r_flat, out_dtype=out_dtype)
    Cout = out.shape[1]
    return out.reshape(N, Cout, H, Wp)[:, :, :, :W]    # crop junk columns


def pixel_shuffle_nchw(x, r):
    """PyTorch nn.PixelShuffle semantics, NCHW layout."""
    N, Crr, H, W = x.shape
    C = Crr // (r * r)
    x = x.reshape(N, C, r, r, H, W)
    x = jnp.transpose(x, (0, 1, 4, 2, 5, 3))
    return x.reshape(N, C, H * r, W * r)


# -----------------------------------------------------------------------------
# Parameters (deterministic synthetic init)
# -----------------------------------------------------------------------------
def _conv_param(key, K, cin, cout):
    k1, k2 = jax.random.split(key)
    fan_in = K * K * cin
    # tap order is t = dy*K + dx; to port real PyTorch weights (Cout,Cin,Kh,Kw)
    # use w.transpose(2, 3, 0, 1).reshape(K*K, Cout, Cin).
    w = (jax.random.normal(k1, (K * K, cout, cin), jnp.float32)
         / math.sqrt(fan_in)).astype(jnp.bfloat16)
    b = 0.01 * jax.random.normal(k2, (cout, 1), jnp.float32)
    return {"w": w, "b": b}


def _conv3stack_params(key, c):
    mid = c // 4
    k1, k2, k3 = jax.random.split(key, 3)
    c2 = _conv_param(k2, 1, mid, mid)
    return {
        "c1": _conv_param(k1, 3, c, mid),
        "a1": jnp.full((mid, 1), 0.25, jnp.float32),     # PReLU init
        "c2w": c2["w"][0],                               # (mid, mid) 1x1 conv
        "c2b": c2["b"],
        "a2": jnp.full((mid, 1), 0.25, jnp.float32),
        "c3": _conv_param(k3, 3, mid, c),
    }


def init_swift_params(key, in_ch, embd_dim, num_layers, scale):
    keys = jax.random.split(key, num_layers + 6)
    return {
        "head": _conv_param(keys[0], 3, in_ch, embd_dim),
        "layers": [_conv3stack_params(keys[1 + i], embd_dim)
                   for i in range(num_layers)],
        "conv_after_body": _conv3stack_params(keys[num_layers + 1], embd_dim),
        "conv_before_upsample": _conv_param(keys[num_layers + 2], 3,
                                            embd_dim, embd_dim),
        "up_conv": _conv_param(keys[num_layers + 3], 3, embd_dim,
                               embd_dim * scale * scale),
        "tail_conv": _conv_param(keys[num_layers + 4], 3, embd_dim, in_ch),
        "mean": jnp.array([0.4488, 0.4371, 0.404], jnp.float32).reshape(1, 3, 1, 1),
    }


# -----------------------------------------------------------------------------
# SWIFT forward
# -----------------------------------------------------------------------------
def _apply_3conv(p, x, residual):
    # [3x3 c1 + PReLU + 1x1 c2 + PReLU] : one fused Pallas call
    t = conv2d(x, p["c1"], K=3, alpha=p["a1"],
               fuse1x1=(p["c2w"], p["c2b"], p["a2"]))
    # [3x3 c3 + residual add] : second fused Pallas call
    # TODO(synk): c3 could join the same kernel (needs in-kernel re-zero-padding
    #             of the C/4 intermediate); kept separate for robustness.
    return conv2d(t, p["c3"], K=3, residual=residual)


def swift_forward(params, x, *, scale, window_size, img_range):
    N, C, H, W = x.shape
    # check_image_size: reflect-pad H, W up to multiples of window_size
    mod_pad_h = (window_size - H % window_size) % window_size
    mod_pad_w = (window_size - W % window_size) % window_size
    if mod_pad_h or mod_pad_w:
        x = jnp.pad(x, ((0, 0), (0, 0), (0, mod_pad_h), (0, mod_pad_w)),
                    mode="reflect")
    mean = params["mean"]
    x = (x - mean) * img_range

    # head
    shallow = conv2d(x, params["head"], K=3)             # bf16 activations

    # body: FSTB layers (depths=0, rfbs=0 -> out = conv3stack(out) + out)
    out = shallow
    for lp in params["layers"]:
        out = _apply_3conv(lp, out, residual=out)

    # conv_after_body (+ shallow residual)
    out = _apply_3conv(params["conv_after_body"], out, residual=shallow)

    # conv_before_upsample
    out = conv2d(out, params["conv_before_upsample"], K=3)

    # tail: PixelShuffleUpsample (conv + pixel shuffle) then final conv
    out = conv2d(out, params["up_conv"], K=3)
    out = pixel_shuffle_nchw(out, scale)
    out = conv2d(out, params["tail_conv"], K=3, out_dtype=jnp.float32)

    out = out / img_range + mean
    return out[:, :, :H * scale, :W * scale]


# -----------------------------------------------------------------------------
if __name__ == "__main__":
    key = jax.random.PRNGKey(0)
    k_param, k_x = jax.random.split(key)

    # small config consistent with the module's forward
    N, C, H, W = 2, 3, 16, 16
    embd_dim = 16
    num_layers = 2          # depths=[0,0], rfbs=[0,0] (see TODOs above)
    window_size = 8
    scale = 2
    img_range = 1.0

    params = init_swift_params(k_param, C, embd_dim, num_layers, scale)
    x = jax.random.normal(k_x, (N, C, H, W), jnp.float32)

    fwd = jax.jit(functools.partial(
        swift_forward, scale=scale, window_size=window_size, img_range=img_range))
    out = fwd(params, x)
    out = jax.block_until_ready(out)

    assert out.shape == (N, C, H * scale, W * scale), out.shape
    assert bool(jnp.all(jnp.isfinite(out)))
    print("KERNEL_OK")
</pallas_src>

<mosaic_0001>
module attributes {stable_mosaic.version = 11 : i64} {
  func.func @kernel(%arg0: i32, %arg1: memref<1x3x342xbf16, #tpu.memory_space<vmem>>, %arg2: memref<9x16x3xbf16, #tpu.memory_space<vmem>>, %arg3: memref<16x1xf32, #tpu.memory_space<vmem>>, %arg4: memref<1x16x288xbf16, #tpu.memory_space<vmem>>) attributes {dimension_semantics = [#tpu.dimension_semantics<parallel>], iteration_bounds = array<i64: 2>, scalar_prefetch = 0 : i64, scratch_operands = 0 : i64, tpu.core_type = #tpu.core_type<tc>, window_params = [{transform_indices = @transform_0, window_bounds = array<i64: 1, 3, 342>}, {pipeline_mode = #tpu.pipeline_mode<synchronous>, transform_indices = @transform_1, window_bounds = array<i64: 9, 16, 3>}, {pipeline_mode = #tpu.pipeline_mode<synchronous>, transform_indices = @transform_2, window_bounds = array<i64: 16, 1>}, {transform_indices = @transform_3, window_bounds = array<i64: 1, 16, 288>}]} {
    %c0 = arith.constant 0 : index
    %c0_0 = arith.constant 0 : index
    %c0_1 = arith.constant 0 : index
    %0 = vector.load %arg1[%c0, %c0_0, %c0_1] : memref<1x3x342xbf16, #tpu.memory_space<vmem>>, vector<1x3x342xbf16>
    %1 = vector.shape_cast %0 : vector<1x3x342xbf16> to vector<3x342xbf16>
    %cst = arith.constant 0.000000e+00 : f32
    %2 = vector.broadcast %cst : f32 to vector<16x288xf32>
    %c0_2 = arith.constant 0 : index
    %c0_3 = arith.constant 0 : index
    %c0_4 = arith.constant 0 : index
    %3 = vector.load %arg2[%c0_2, %c0_3, %c0_4] : memref<9x16x3xbf16, #tpu.memory_space<vmem>>, vector<1x16x3xbf16>
    %4 = vector.shape_cast %3 : vector<1x16x3xbf16> to vector<16x3xbf16>
    %5 = vector.extract_strided_slice %1 {offsets = [0, 0], sizes = [3, 288], strides = [1, 1]} : vector<3x342xbf16> to vector<3x288xbf16>
    %cst_5 = arith.constant dense<0.000000e+00> : vector<16x288xf32>
    %6 = tpu.matmul %4, %5, %cst_5 {dimension_numbers = #tpu.dot_dimension_numbers<[1], [0], [0], [1], [0, 0, 1, 1], [], []>} : vector<16x3xbf16>, vector<3x288xbf16>, vector<16x288xf32> -> vector<16x288xf32>
    %7 = arith.addf %2, %6 : vector<16x288xf32>
    %c1 = arith.constant 1 : index
    %c0_6 = arith.constant 0 : index
    %c0_7 = arith.constant 0 : index
    %8 = vector.load %arg2[%c1, %c0_6, %c0_7] : memref<9x16x3xbf16, #tpu.memory_space<vmem>>, vector<1x16x3xbf16>
    %9 = vector.shape_cast %8 : vector<1x16x3xbf16> to vector<16x3xbf16>
    %10 = vector.extract_strided_slice %1 {offsets = [0, 1], sizes = [3, 288], strides = [1, 1]} : vector<3x342xbf16> to vector<3x288xbf16>
    %cst_8 = arith.constant dense<0.000000e+00> : vector<16x288xf32>
    %11 = tpu.matmul %9, %10, %cst_8 {dimension_numbers = #tpu.dot_dimension_numbers<[1], [0], [0], [1], [0, 0, 1, 1], [], []>} : vector<16x3xbf16>, vector<3x288xbf16>, vector<16x288xf32> -> vector<16x288xf32>
    %12 = arith.addf %7, %11 : vector<16x288xf32>
    %c2 = arith.constant 2 : index
    %c0_9 = arith.constant 0 : index
    %c0_10 = arith.constant 0 : index
    %13 = vector.load %arg2[%c2, %c0_9, %c0_10] : memref<9x16x3xbf16, #tpu.memory_space<vmem>>, vector<1x16x3xbf16>
    %14 = vector.shape_cast %13 : vector<1x16x3xbf16> to vector<16x3xbf16>
    %15 = vector.extract_strided_slice %1 {offsets = [0, 2], sizes = [3, 288], strides = [1, 1]} : vector<3x342xbf16> to vector<3x288xbf16>
    %cst_11 = arith.constant dense<0.000000e+00> : vector<16x288xf32>
    %16 = tpu.matmul %14, %15, %cst_11 {dimension_numbers = #tpu.dot_dimension_numbers<[1], [0], [0], [1], [0, 0, 1, 1], [], []>} : vector<16x3xbf16>, vector<3x288xbf16>, vector<16x288xf32> -> vector<16x288xf32>
    %17 = arith.addf %12, %16 : vector<16x288xf32>
    %c3 = arith.constant 3 : index
    %c0_12 = arith.constant 0 : index
    %c0_13 = arith.constant 0 : index
    %18 = vector.load %arg2[%c3, %c0_12, %c0_13] : memref<9x16x3xbf16, #tpu.memory_space<vmem>>, vector<1x16x3xbf16>
    %19 = vector.shape_cast %18 : vector<1x16x3xbf16> to vector<16x3xbf16>
    %20 = vector.extract_strided_slice %1 {offsets = [0, 18], sizes = [3, 288], strides = [1, 1]} : vector<3x342xbf16> to vector<3x288xbf16>
    %cst_14 = arith.constant dense<0.000000e+00> : vector<16x288xf32>
    %21 = tpu.matmul %19, %20, %cst_14 {dimension_numbers = #tpu.dot_dimension_numbers<[1], [0], [0], [1], [0, 0, 1, 1], [], []>} : vector<16x3xbf16>, vector<3x288xbf16>, vector<16x288xf32> -> vector<16x288xf32>
    %22 = arith.addf %17, %21 : vector<16x288xf32>
    %c4 = arith.constant 4 : index
    %c0_15 = arith.constant 0 : index
    %c0_16 = arith.constant 0 : index
    %23 = vector.load %arg2[%c4, %c0_15, %c0_16] : memref<9x16x3xbf16, #tpu.memory_space<vmem>>, vector<1x16x3xbf16>
    %24 = vector.shape_cast %23 : vector<1x16x3xbf16> to vector<16x3xbf16>
    %25 = vector.extract_strided_slice %1 {offsets = [0, 19], sizes = [3, 288], strides = [1, 1]} : vector<3x342xbf16> to vector<3x288xbf16>
    %cst_17 = arith.constant dense<0.000000e+00> : vector<16x288xf32>
    %26 = tpu.matmul %24, %25, %cst_17 {dimension_numbers = #tpu.dot_dimension_numbers<[1], [0], [0], [1], [0, 0, 1, 1], [], []>} : vector<16x3xbf16>, vector<3x288xbf16>, vector<16x288xf32> -> vector<16x288xf32>
    %27 = arith.addf %22, %26 : vector<16x288xf32>
    %c5 = arith.constant 5 : index
    %c0_18 = arith.constant 0 : index
    %c0_19 = arith.constant 0 : index
    %28 = vector.load %arg2[%c5, %c0_18, %c0_19] : memref<9x16x3xbf16, #tpu.memory_space<vmem>>, vector<1x16x3xbf16>
    %29 = vector.shape_cast %28 : vector<1x16x3xbf16> to vector<16x3xbf16>
    %30 = vector.extract_strided_slice %1 {offsets = [0, 20], sizes = [3, 288], strides = [1, 1]} : vector<3x342xbf16> to vector<3x288xbf16>
    %cst_20 = arith.constant dense<0.000000e+00> : vector<16x288xf32>
    %31 = tpu.matmul %29, %30, %cst_20 {dimension_numbers = #tpu.dot_dimension_numbers<[1], [0], [0], [1], [0, 0, 1, 1], [], []>} : vector<16x3xbf16>, vector<3x288xbf16>, vector<16x288xf32> -> vector<16x288xf32>
    %32 = arith.addf %27, %31 : vector<16x288xf32>
    %c6 = arith.constant 6 : index
    %c0_21 = arith.constant 0 : index
    %c0_22 = arith.constant 0 : index
    %33 = vector.load %arg2[%c6, %c0_21, %c0_22] : memref<9x16x3xbf16, #tpu.memory_space<vmem>>, vector<1x16x3xbf16>
    %34 = vector.shape_cast %33 : vector<1x16x3xbf16> to vector<16x3xbf16>
    %35 = vector.extract_strided_slice %1 {offsets = [0, 36], sizes = [3, 288], strides = [1, 1]} : vector<3x342xbf16> to vector<3x288xbf16>
    %cst_23 = arith.constant dense<0.000000e+00> : vector<16x288xf32>
    %36 = tpu.matmul %34, %35, %cst_23 {dimension_numbers = #tpu.dot_dimension_numbers<[1], [0], [0], [1], [0, 0, 1, 1], [], []>} : vector<16x3xbf16>, vector<3x288xbf16>, vector<16x288xf32> -> vector<16x288xf32>
    %37 = arith.addf %32, %36 : vector<16x288xf32>
    %c7 = arith.constant 7 : index
    %c0_24 = arith.constant 0 : index
    %c0_25 = arith.constant 0 : index
    %38 = vector.load %arg2[%c7, %c0_24, %c0_25] : memref<9x16x3xbf16, #tpu.memory_space<vmem>>, vector<1x16x3xbf16>
    %39 = vector.shape_cast %38 : vector<1x16x3xbf16> to vector<16x3xbf16>
    %40 = vector.extract_strided_slice %1 {offsets = [0, 37], sizes = [3, 288], strides = [1, 1]} : vector<3x342xbf16> to vector<3x288xbf16>
    %cst_26 = arith.constant dense<0.000000e+00> : vector<16x288xf32>
    %41 = tpu.matmul %39, %40, %cst_26 {dimension_numbers = #tpu.dot_dimension_numbers<[1], [0], [0], [1], [0, 0, 1, 1], [], []>} : vector<16x3xbf16>, vector<3x288xbf16>, vector<16x288xf32> -> vector<16x288xf32>
    %42 = arith.addf %37, %41 : vector<16x288xf32>
    %c8 = arith.constant 8 : index
    %c0_27 = arith.constant 0 : index
    %c0_28 = arith.constant 0 : index
    %43 = vector.load %arg2[%c8, %c0_27, %c0_28] : memref<9x16x3xbf16, #tpu.memory_space<vmem>>, vector<1x16x3xbf16>
    %44 = vector.shape_cast %43 : vector<1x16x3xbf16> to vector<16x3xbf16>
    %45 = vector.extract_strided_slice %1 {offsets = [0, 38], sizes = [3, 288], strides = [1, 1]} : vector<3x342xbf16> to vector<3x288xbf16>
    %cst_29 = arith.constant dense<0.000000e+00> : vector<16x288xf32>
    %46 = tpu.matmul %44, %45, %cst_29 {dimension_numbers = #tpu.dot_dimension_numbers<[1], [0], [0], [1], [0, 0, 1, 1], [], []>} : vector<16x3xbf16>, vector<3x288xbf16>, vector<16x288xf32> -> vector<16x288xf32>
    %47 = arith.addf %42, %46 : vector<16x288xf32>
    %c0_30 = arith.constant 0 : index
    %c0_31 = arith.constant 0 : index
    %48 = vector.load %arg3[%c0_30, %c0_31] : memref<16x1xf32, #tpu.memory_space<vmem>>, vector<16x1xf32>
    %49 = vector.broadcast %48 : vector<16x1xf32> to vector<16x288xf32>
    %50 = arith.addf %47, %49 : vector<16x288xf32>
    %51 = arith.truncf %50 : vector<16x288xf32> to vector<16x288xbf16>
    %c0_32 = arith.constant 0 : index
    %c0_33 = arith.constant 0 : index
    %c0_34 = arith.constant 0 : index
    %52 = vector.load %arg4[%c0_32, %c0_33, %c0_34] : memref<1x16x288xbf16, #tpu.memory_space<vmem>>, vector<1x16x288xbf16>
    %53 = vector.shape_cast %52 : vector<1x16x288xbf16> to vector<16x288xbf16>
    %54 = vector.shape_cast %51 : vector<16x288xbf16> to vector<1x16x288xbf16>
    tpu.vector_store %arg4[%c0_32, %c0_33, %c0_34], %54 {strides = array<i32>} : memref<1x16x288xbf16, #tpu.memory_space<vmem>>, vector<1x16x288xbf16>,
    return
  }
  func.func @transform_0(%arg0: i32) -> (i32, i32, i32) {
    %c0_i32 = arith.constant 0 : i32
    %c0_i32_0 = arith.constant 0 : i32
    %c0_i32_1 = arith.constant 0 : i32
    return %arg0, %c0_i32, %c0_i32_0 : i32, i32, i32
  }
  func.func @transform_1(%arg0: i32) -> (i32, i32, i32) {
    %c0_i32 = arith.constant 0 : i32
    %c0_i32_0 = arith.constant 0 : i32
    %c0_i32_1 = arith.constant 0 : i32
    %c0_i32_2 = arith.constant 0 : i32
    return %c0_i32, %c0_i32_0, %c0_i32_1 : i32, i32, i32
  }
  func.func @transform_2(%arg0: i32) -> (i32, i32) {
    %c0_i32 = arith.constant 0 : i32
    %c0_i32_0 = arith.constant 0 : i32
    %c0_i32_1 = arith.constant 0 : i32
    return %c0_i32, %c0_i32_0 : i32, i32
  }
  func.func @transform_3(%arg0: i32) -> (i32, i32, i32) {
    %c0_i32 = arith.constant 0 : i32
    %c0_i32_0 = arith.constant 0 : i32
    %c0_i32_1 = arith.constant 0 : i32
    return %arg0, %c0_i32, %c0_i32_0 : i32, i32, i32
  }
}

module attributes {stable_mosaic.version = 11 : i64} {
  func.func @kernel(%arg0: i32, %arg1: memref<1x16x342xbf16, #tpu.memory_space<vmem>>, %arg2: memref<9x4x16xbf16, #tpu.memory_space<vmem>>, %arg3: memref<4x1xf32, #tpu.memory_space<vmem>>, %arg4: memref<4x1xf32, #tpu.memory_space<vmem>>, %arg5: memref<4x4xbf16, #tpu.memory_space<vmem>>, %arg6: memref<4x1xf32, #tpu.memory_space<vmem>>, %arg7: memref<4x1xf32, #tpu.memory_space<vmem>>, %arg8: memref<1x4x288xbf16, #tpu.memory_space<vmem>>) attributes {dimension_semantics = [#tpu.dimension_semantics<parallel>], iteration_bounds = array<i64: 2>, scalar_prefetch = 0 : i64, scratch_operands = 0 : i64, tpu.core_type = #tpu.core_type<tc>, window_params = [{transform_indices = @transform_0, window_bounds = array<i64: 1, 16, 342>}, {pipeline_mode = #tpu.pipeline_mode<synchronous>, transform_indices = @transform_1, window_bounds = array<i64: 9, 4, 16>}, {pipeline_mode = #tpu.pipeline_mode<synchronous>, transform_indices = @transform_2, window_bounds = array<i64: 4, 1>}, {pipeline_mode = #tpu.pipeline_mode<synchronous>, transform_indices = @transform_3, window_bounds = array<i64: 4, 1>}, {pipeline_mode = #tpu.pipeline_mode<synchronous>, transform_indices = @transform_4, window_bounds = array<i64: 4, 4>}, {pipeline_mode = #tpu.pipeline_mode<synchronous>, transform_indices = @transform_5, window_bounds = array<i64: 4, 1>}, {pipeline_mode = #tpu.pipeline_mode<synchronous>, transform_indices = @transform_6, window_bounds = array<i64: 4, 1>}, {transform_indices = @transform_7, window_bounds = array<i64: 1, 4, 288>}]} {
    %c0 = arith.constant 0 : index
    %c0_0 = arith.constant 0 : index
    %c0_1 = arith.constant 0 : index
    %0 = vector.load %arg1[%c0, %c0_0, %c0_1] : memref<1x16x342xbf16, #tpu.memory_space<vmem>>, vector<1x16x342xbf16>
    %1 = vector.shape_cast %0 : vector<1x16x342xbf16> to vector<16x342xbf16>
    %cst = arith.constant 0.000000e+00 : f32
    %2 = vector.broadcast %cst : f32 to vector<4x288xf32>
    %c0_2 = arith.constant 0 : index
    %c0_3 = arith.constant 0 : index
    %c0_4 = arith.constant 0 : index
    %3 = vector.load %arg2[%c0_2, %c0_3, %c0_4] : memref<9x4x16xbf16, #tpu.memory_space<vmem>>, vector<1x4x16xbf16>
    %4 = vector.shape_cast %3 : vector<1x4x16xbf16> to vector<4x16xbf16>
    %5 = vector.extract_strided_slice %1 {offsets = [0, 0], sizes = [16, 288], strides = [1, 1]} : vector<16x342xbf16> to vector<16x288xbf16>
    %cst_5 = arith.constant dense<0.000000e+00> : vector<4x288xf32>
    %6 = tpu.matmul %4, %5, %cst_5 {dimension_numbers = #tpu.dot_dimension_numbers<[1], [0], [0], [1], [0, 0, 1, 1], [], []>} : vector<4x16xbf16>, vector<16x288xbf16>, vector<4x288xf32> -> vector<4x288xf32>
    %7 = arith.addf %2, %6 : vector<4x288xf32>
    %c1 = arith.constant 1 : index
    %c0_6 = arith.constant 0 : index
    %c0_7 = arith.constant 0 : index
    %8 = vector.load %arg2[%c1, %c0_6, %c0_7] : memref<9x4x16xbf16, #tpu.memory_space<vmem>>, vector<1x4x16xbf16>
    %9 = vector.shape_cast %8 : vector<1x4x16xbf16> to vector<4x16xbf16>
    %10 = vector.extract_strided_slice %1 {offsets = [0, 1], sizes = [16, 288], strides = [1, 1]} : vector<16x342xbf16> to vector<16x288xbf16>
    %cst_8 = arith.constant dense<0.000000e+00> : vector<4x288xf32>
    %11 = tpu.matmul %9, %10, %cst_8 {dimension_numbers = #tpu.dot_dimension_numbers<[1], [0], [0], [1], [0, 0, 1, 1], [], []>} : vector<4x16xbf16>, vector<16x288xbf16>, vector<4x288xf32> -> vector<4x288xf32>
    %12 = arith.addf %7, %11 : vector<4x288xf32>
    %c2 = arith.constant 2 : index
    %c0_9 = arith.constant 0 : index
    %c0_10 = arith.constant 0 : index
    %13 = vector.load %arg2[%c2, %c0_9, %c0_10] : memref<9x4x16xbf16, #tpu.memory_space<vmem>>, vector<1x4x16xbf16>
    %14 = vector.shape_cast %13 : vector<1x4x16xbf16> to vector<4x16xbf16>
    %15 = vector.extract_strided_slice %1 {offsets = [0, 2], sizes = [16, 288], strides = [1, 1]} : vector<16x342xbf16> to vector<16x288xbf16>
    %cst_11 = arith.constant dense<0.000000e+00> : vector<4x288xf32>
    %16 = tpu.matmul %14, %15, %cst_11 {dimension_numbers = #tpu.dot_dimension_numbers<[1], [0], [0], [1], [0, 0, 1, 1], [], []>} : vector<4x16xbf16>, vector<16x288xbf16>, vector<4x288xf32> -> vector<4x288xf32>
    %17 = arith.addf %12, %16 : vector<4x288xf32>
    %c3 = arith.constant 3 : index
    %c0_12 = arith.constant 0 : index
    %c0_13 = arith.constant 0 : index
    %18 = vector.load %arg2[%c3, %c0_12, %c0_13] : memref<9x4x16xbf16, #tpu.memory_space<vmem>>, vector<1x4x16xbf16>
    %19 = vector.shape_cast %18 : vector<1x4x16xbf16> to vector<4x16xbf16>
    %20 = vector.extract_strided_slice %1 {offsets = [0, 18], sizes = [16, 288], strides = [1, 1]} : vector<16x342xbf16> to vector<16x288xbf16>
    %cst_14 = arith.constant dense<0.000000e+00> : vector<4x288xf32>
    %21 = tpu.matmul %19, %20, %cst_14 {dimension_numbers = #tpu.dot_dimension_numbers<[1], [0], [0], [1], [0, 0, 1, 1], [], []>} : vector<4x16xbf16>, vector<16x288xbf16>, vector<4x288xf32> -> vector<4x288xf32>
    %22 = arith.addf %17, %21 : vector<4x288xf32>
    %c4 = arith.constant 4 : index
    %c0_15 = arith.constant 0 : index
    %c0_16 = arith.constant 0 : index
    %23 = vector.load %arg2[%c4, %c0_15, %c0_16] : memref<9x4x16xbf16, #tpu.memory_space<vmem>>, vector<1x4x16xbf16>
    %24 = vector.shape_cast %23 : vector<1x4x16xbf16> to vector<4x16xbf16>
    %25 = vector.extract_strided_slice %1 {offsets = [0, 19], sizes = [16, 288], strides = [1, 1]} : vector<16x342xbf16> to vector<16x288xbf16>
    %cst_17 = arith.constant dense<0.000000e+00> : vector<4x288xf32>
    %26 = tpu.matmul %24, %25, %cst_17 {dimension_numbers = #tpu.dot_dimension_numbers<[1], [0], [0], [1], [0, 0, 1, 1], [], []>} : vector<4x16xbf16>, vector<16x288xbf16>, vector<4x288xf32> -> vector<4x288xf32>
    %27 = arith.addf %22, %26 : vector<4x288xf32>
    %c5 = arith.constant 5 : index
    %c0_18 = arith.constant 0 : index
    %c0_19 = arith.constant 0 : index
    %28 = vector.load %arg2[%c5, %c0_18, %c0_19] : memref<9x4x16xbf16, #tpu.memory_space<vmem>>, vector<1x4x16xbf16>
    %29 = vector.shape_cast %28 : vector<1x4x16xbf16> to vector<4x16xbf16>
    %30 = vector.extract_strided_slice %1 {offsets = [0, 20], sizes = [16, 288], strides = [1, 1]} : vector<16x342xbf16> to vector<16x288xbf16>
    %cst_20 = arith.constant dense<0.000000e+00> : vector<4x288xf32>
    %31 = tpu.matmul %29, %30, %cst_20 {dimension_numbers = #tpu.dot_dimension_numbers<[1], [0], [0], [1], [0, 0, 1, 1], [], []>} : vector<4x16xbf16>, vector<16x288xbf16>, vector<4x288xf32> -> vector<4x288xf32>
    %32 = arith.addf %27, %31 : vector<4x288xf32>
    %c6 = arith.constant 6 : index
    %c0_21 = arith.constant 0 : index
    %c0_22 = arith.constant 0 : index
    %33 = vector.load %arg2[%c6, %c0_21, %c0_22] : memref<9x4x16xbf16, #tpu.memory_space<vmem>>, vector<1x4x16xbf16>
    %34 = vector.shape_cast %33 : vector<1x4x16xbf16> to vector<4x16xbf16>
    %35 = vector.extract_strided_slice %1 {offsets = [0, 36], sizes = [16, 288], strides = [1, 1]} : vector<16x342xbf16> to vector<16x288xbf16>
    %cst_23 = arith.constant dense<0.000000e+00> : vector<4x288xf32>
    %36 = tpu.matmul %34, %35, %cst_23 {dimension_numbers = #tpu.dot_dimension_numbers<[1], [0], [0], [1], [0, 0, 1, 1], [], []>} : vector<4x16xbf16>, vector<16x288xbf16>, vector<4x288xf32> -> vector<4x288xf32>
    %37 = arith.addf %32, %36 : vector<4x288xf32>
    %c7 = arith.constant 7 : index
    %c0_24 = arith.constant 0 : index
    %c0_25 = arith.constant 0 : index
    %38 = vector.load %arg2[%c7, %c0_24, %c0_25] : memref<9x4x16xbf16, #tpu.memory_space<vmem>>, vector<1x4x16xbf16>
    %39 = vector.shape_cast %38 : vector<1x4x16xbf16> to vector<4x16xbf16>
    %40 = vector.extract_strided_slice %1 {offsets = [0, 37], sizes = [16, 288], strides = [1, 1]} : vector<16x342xbf16> to vector<16x288xbf16>
    %cst_26 = arith.constant dense<0.000000e+00> : vector<4x288xf32>
    %41 = tpu.matmul %39, %40, %cst_26 {dimension_numbers = #tpu.dot_dimension_numbers<[1], [0], [0], [1], [0, 0, 1, 1], [], []>} : vector<4x16xbf16>, vector<16x288xbf16>, vector<4x288xf32> -> vector<4x288xf32>
    %42 = arith.addf %37, %41 : vector<4x288xf32>
    %c8 = arith.constant 8 : index
    %c0_27 = arith.constant 0 : index
    %c0_28 = arith.constant 0 : index
    %43 = vector.load %arg2[%c8, %c0_27, %c0_28] : memref<9x4x16xbf16, #tpu.memory_space<vmem>>, vector<1x4x16xbf16>
    %44 = vector.shape_cast %43 : vector<1x4x16xbf16> to vector<4x16xbf16>
    %45 = vector.extract_strided_slice %1 {offsets = [0, 38], sizes = [16, 288], strides = [1, 1]} : vector<16x342xbf16> to vector<16x288xbf16>
    %cst_29 = arith.constant dense<0.000000e+00> : vector<4x288xf32>
    %46 = tpu.matmul %44, %45, %cst_29 {dimension_numbers = #tpu.dot_dimension_numbers<[1], [0], [0], [1], [0, 0, 1, 1], [], []>} : vector<4x16xbf16>, vector<16x288xbf16>, vector<4x288xf32> -> vector<4x288xf32>
    %47 = arith.addf %42, %46 : vector<4x288xf32>
    %c0_30 = arith.constant 0 : index
    %c0_31 = arith.constant 0 : index
    %48 = vector.load %arg3[%c0_30, %c0_31] : memref<4x1xf32, #tpu.memory_space<vmem>>, vector<4x1xf32>
    %49 = vector.broadcast %48 : vector<4x1xf32> to vector<4x288xf32>
    %50 = arith.addf %47, %49 : vector<4x288xf32>
    %cst_32 = arith.constant 0.000000e+00 : f32
    %51 = vector.broadcast %cst_32 : f32 to vector<4x288xf32>
    %52 = arith.cmpf oge, %50, %51 : vector<4x288xf32>
    %c0_33 = arith.constant 0 : index
    %c0_34 = arith.constant 0 : index
    %53 = vector.load %arg4[%c0_33, %c0_34] : memref<4x1xf32, #tpu.memory_space<vmem>>, vector<4x1xf32>
    %54 = vector.broadcast %53 : vector<4x1xf32> to vector<4x288xf32>
    %55 = arith.mulf %50, %54 : vector<4x288xf32>
    %56 = arith.select %52, %50, %55 : vector<4x288xi1>, vector<4x288xf32>
    %c0_35 = arith.constant 0 : index
    %c0_36 = arith.constant 0 : index
    %57 = vector.load %arg5[%c0_35, %c0_36] : memref<4x4xbf16, #tpu.memory_space<vmem>>, vector<4x4xbf16>
    %58 = arith.truncf %56 : vector<4x288xf32> to vector<4x288xbf16>
    %cst_37 = arith.constant dense<0.000000e+00> : vector<4x288xf32>
    %59 = tpu.matmul %57, %58, %cst_37 {dimension_numbers = #tpu.dot_dimension_numbers<[1], [0], [0], [1], [0, 0, 1, 1], [], []>} : vector<4x4xbf16>, vector<4x288xbf16>, vector<4x288xf32> -> vector<4x288xf32>
    %c0_38 = arith.constant 0 : index
    %c0_39 = arith.constant 0 : index
    %60 = vector.load %arg6[%c0_38, %c0_39] : memref<4x1xf32, #tpu.memory_space<vmem>>, vector<4x1xf32>
    %61 = vector.broadcast %60 : vector<4x1xf32> to vector<4x288xf32>
    %62 = arith.addf %59, %61 : vector<4x288xf32>
    %cst_40 = arith.constant 0.000000e+00 : f32
    %63 = vector.broadcast %cst_40 : f32 to vector<4x288xf32>
    %64 = arith.cmpf oge, %62, %63 : vector<4x288xf32>
    %c0_41 = arith.constant 0 : index
    %c0_42 = arith.constant 0 : index
    %65 = vector.load %arg7[%c0_41, %c0_42] : memref<4x1xf32, #tpu.memory_space<vmem>>, vector<4x1xf32>
    %66 = vector.broadcast %65 : vector<4x1xf32> to vector<4x288xf32>
    %67 = arith.mulf %62, %66 : vector<4x288xf32>
    %68 = arith.select %64, %62, %67 : vector<4x288xi1>, vector<4x288xf32>
    %69 = arith.truncf %68 : vector<4x288xf32> to vector<4x288xbf16>
    %c0_43 = arith.constant 0 : index
    %c0_44 = arith.constant 0 : index
    %c0_45 = arith.constant 0 : index
    %70 = vector.load %arg8[%c0_43, %c0_44, %c0_45] : memref<1x4x288xbf16, #tpu.memory_space<vmem>>, vector<1x4x288xbf16>
    %71 = vector.shape_cast %70 : vector<1x4x288xbf16> to vector<4x288xbf16>
    %72 = vector.shape_cast %69 : vector<4x288xbf16> to vector<1x4x288xbf16>
    tpu.vector_store %arg8[%c0_43, %c0_44, %c0_45], %72 {strides = array<i32>} : memref<1x4x288xbf16, #tpu.memory_space<vmem>>, vector<1x4x288xbf16>,
    return
  }
  func.func @transform_0(%arg0: i32) -> (i32, i32, i32) {
    %c0_i32 = arith.constant 0 : i32
    %c0_i32_0 = arith.constant 0 : i32
    %c0_i32_1 = arith.constant 0 : i32
    return %arg0, %c0_i32, %c0_i32_0 : i32, i32, i32
  }
  func.func @transform_1(%arg0: i32) -> (i32, i32, i32) {
    %c0_i32 = arith.constant 0 : i32
    %c0_i32_0 = arith.constant 0 : i32
    %c0_i32_1 = arith.constant 0 : i32
    %c0_i32_2 = arith.constant 0 : i32
    return %c0_i32, %c0_i32_0, %c0_i32_1 : i32, i32, i32
  }
  func.func @transform_2(%arg0: i32) -> (i32, i32) {
    %c0_i32 = arith.constant 0 : i32
    %c0_i32_0 = arith.constant 0 : i32
    %c0_i32_1 = arith.constant 0 : i32
    return %c0_i32, %c0_i32_0 : i32, i32
  }
  func.func @transform_3(%arg0: i32) -> (i32, i32) {
    %c0_i32 = arith.constant 0 : i32
    %c0_i32_0 = arith.constant 0 : i32
    %c0_i32_1 = arith.constant 0 : i32
    return %c0_i32, %c0_i32_0 : i32, i32
  }
  func.func @transform_4(%arg0: i32) -> (i32, i32) {
    %c0_i32 = arith.constant 0 : i32
    %c0_i32_0 = arith.constant 0 : i32
    %c0_i32_1 = arith.constant 0 : i32
    return %c0_i32, %c0_i32_0 : i32, i32
  }
  func.func @transform_5(%arg0: i32) -> (i32, i32) {
    %c0_i32 = arith.constant 0 : i32
    %c0_i32_0 = arith.constant 0 : i32
    %c0_i32_1 = arith.constant 0 : i32
    return %c0_i32, %c0_i32_0 : i32, i32
  }
  func.func @transform_6(%arg0: i32) -> (i32, i32) {
    %c0_i32 = arith.constant 0 : i32
    %c0_i32_0 = arith.constant 0 : i32
    %c0_i32_1 = arith.constant 0 : i32
    return %c0_i32, %c0_i32_0 : i32, i32
  }
  func.func @transform_7(%arg0: i32) -> (i32, i32, i32) {
    %c0_i32 = arith.constant 0 : i32
    %c0_i32_0 = arith.constant 0 : i32
    %c0_i32_1 = arith.constant 0 : i32
    return %arg0, %c0_i32, %c0_i32_0 : i32, i32, i32
  }
}

module attributes {stable_mosaic.version = 11 : i64} {
  func.func @kernel(%arg0: i32, %arg1: memref<1x16x342xbf16, #tpu.memory_space<vmem>>, %arg2: memref<9x16x16xbf16, #tpu.memory_space<vmem>>, %arg3: memref<16x1xf32, #tpu.memory_space<vmem>>, %arg4: memref<1x16x288xbf16, #tpu.memory_space<vmem>>) attributes {dimension_semantics = [#tpu.dimension_semantics<parallel>], iteration_bounds = array<i64: 2>, scalar_prefetch = 0 : i64, scratch_operands = 0 : i64, tpu.core_type = #tpu.core_type<tc>, window_params = [{transform_indices = @transform_0, window_bounds = array<i64: 1, 16, 342>}, {pipeline_mode = #tpu.pipeline_mode<synchronous>, transform_indices = @transform_1, window_bounds = array<i64: 9, 16, 16>}, {pipeline_mode = #tpu.pipeline_mode<synchronous>, transform_indices = @transform_2, window_bounds = array<i64: 16, 1>}, {transform_indices = @transform_3, window_bounds = array<i64: 1, 16, 288>}]} {
    %c0 = arith.constant 0 : index
    %c0_0 = arith.constant 0 : index
    %c0_1 = arith.constant 0 : index
    %0 = vector.load %arg1[%c0, %c0_0, %c0_1] : memref<1x16x342xbf16, #tpu.memory_space<vmem>>, vector<1x16x342xbf16>
    %1 = vector.shape_cast %0 : vector<1x16x342xbf16> to vector<16x342xbf16>
    %cst = arith.constant 0.000000e+00 : f32
    %2 = vector.broadcast %cst : f32 to vector<16x288xf32>
    %c0_2 = arith.constant 0 : index
    %c0_3 = arith.constant 0 : index
    %c0_4 = arith.constant 0 : index
    %3 = vector.load %arg2[%c0_2, %c0_3, %c0_4] : memref<9x16x16xbf16, #tpu.memory_space<vmem>>, vector<1x16x16xbf16>
    %4 = vector.shape_cast %3 : vector<1x16x16xbf16> to vector<16x16xbf16>
    %5 = vector.extract_strided_slice %1 {offsets = [0, 0], sizes = [16, 288], strides = [1, 1]} : vector<16x342xbf16> to vector<16x288xbf16>
    %cst_5 = arith.constant dense<0.000000e+00> : vector<16x288xf32>
    %6 = tpu.matmul %4, %5, %cst_5 {dimension_numbers = #tpu.dot_dimension_numbers<[1], [0], [0], [1], [0, 0, 1, 1], [], []>} : vector<16x16xbf16>, vector<16x288xbf16>, vector<16x288xf32> -> vector<16x288xf32>
    %7 = arith.addf %2, %6 : vector<16x288xf32>
    %c1 = arith.constant 1 : index
    %c0_6 = arith.constant 0 : index
    %c0_7 = arith.constant 0 : index
    %8 = vector.load %arg2[%c1, %c0_6, %c0_7] : memref<9x16x16xbf16, #tpu.memory_space<vmem>>, vector<1x16x16xbf16>
    %9 = vector.shape_cast %8 : vector<1x16x16xbf16> to vector<16x16xbf16>
    %10 = vector.extract_strided_slice %1 {offsets = [0, 1], sizes = [16, 288], strides = [1, 1]} : vector<16x342xbf16> to vector<16x288xbf16>
    %cst_8 = arith.constant dense<0.000000e+00> : vector<16x288xf32>
    %11 = tpu.matmul %9, %10, %cst_8 {dimension_numbers = #tpu.dot_dimension_numbers<[1], [0], [0], [1], [0, 0, 1, 1], [], []>} : vector<16x16xbf16>, vector<16x288xbf16>, vector<16x288xf32> -> vector<16x288xf32>
    %12 = arith.addf %7, %11 : vector<16x288xf32>
    %c2 = arith.constant 2 : index
    %c0_9 = arith.constant 0 : index
    %c0_10 = arith.constant 0 : index
    %13 = vector.load %arg2[%c2, %c0_9, %c0_10] : memref<9x16x16xbf16, #tpu.memory_space<vmem>>, vector<1x16x16xbf16>
    %14 = vector.shape_cast %13 : vector<1x16x16xbf16> to vector<16x16xbf16>
    %15 = vector.extract_strided_slice %1 {offsets = [0, 2], sizes = [16, 288], strides = [1, 1]} : vector<16x342xbf16> to vector<16x288xbf16>
    %cst_11 = arith.constant dense<0.000000e+00> : vector<16x288xf32>
    %16 = tpu.matmul %14, %15, %cst_11 {dimension_numbers = #tpu.dot_dimension_numbers<[1], [0], [0], [1], [0, 0, 1, 1], [], []>} : vector<16x16xbf16>, vector<16x288xbf16>, vector<16x288xf32> -> vector<16x288xf32>
    %17 = arith.addf %12, %16 : vector<16x288xf32>
    %c3 = arith.constant 3 : index
    %c0_12 = arith.constant 0 : index
    %c0_13 = arith.constant 0 : index
    %18 = vector.load %arg2[%c3, %c0_12, %c0_13] : memref<9x16x16xbf16, #tpu.memory_space<vmem>>, vector<1x16x16xbf16>
    %19 = vector.shape_cast %18 : vector<1x16x16xbf16> to vector<16x16xbf16>
    %20 = vector.extract_strided_slice %1 {offsets = [0, 18], sizes = [16, 288], strides = [1, 1]} : vector<16x342xbf16> to vector<16x288xbf16>
    %cst_14 = arith.constant dense<0.000000e+00> : vector<16x288xf32>
    %21 = tpu.matmul %19, %20, %cst_14 {dimension_numbers = #tpu.dot_dimension_numbers<[1], [0], [0], [1], [0, 0, 1, 1], [], []>} : vector<16x16xbf16>, vector<16x288xbf16>, vector<16x288xf32> -> vector<16x288xf32>
    %22 = arith.addf %17, %21 : vector<16x288xf32>
    %c4 = arith.constant 4 : index
    %c0_15 = arith.constant 0 : index
    %c0_16 = arith.constant 0 : index
    %23 = vector.load %arg2[%c4, %c0_15, %c0_16] : memref<9x16x16xbf16, #tpu.memory_space<vmem>>, vector<1x16x16xbf16>
    %24 = vector.shape_cast %23 : vector<1x16x16xbf16> to vector<16x16xbf16>
    %25 = vector.extract_strided_slice %1 {offsets = [0, 19], sizes = [16, 288], strides = [1, 1]} : vector<16x342xbf16> to vector<16x288xbf16>
    %cst_17 = arith.constant dense<0.000000e+00> : vector<16x288xf32>
    %26 = tpu.matmul %24, %25, %cst_17 {dimension_numbers = #tpu.dot_dimension_numbers<[1], [0], [0], [1], [0, 0, 1, 1], [], []>} : vector<16x16xbf16>, vector<16x288xbf16>, vector<16x288xf32> -> vector<16x288xf32>
    %27 = arith.addf %22, %26 : vector<16x288xf32>
    %c5 = arith.constant 5 : index
    %c0_18 = arith.constant 0 : index
    %c0_19 = arith.constant 0 : index
    %28 = vector.load %arg2[%c5, %c0_18, %c0_19] : memref<9x16x16xbf16, #tpu.memory_space<vmem>>, vector<1x16x16xbf16>
    %29 = vector.shape_cast %28 : vector<1x16x16xbf16> to vector<16x16xbf16>
    %30 = vector.extract_strided_slice %1 {offsets = [0, 20], sizes = [16, 288], strides = [1, 1]} : vector<16x342xbf16> to vector<16x288xbf16>
    %cst_20 = arith.constant dense<0.000000e+00> : vector<16x288xf32>
    %31 = tpu.matmul %29, %30, %cst_20 {dimension_numbers = #tpu.dot_dimension_numbers<[1], [0], [0], [1], [0, 0, 1, 1], [], []>} : vector<16x16xbf16>, vector<16x288xbf16>, vector<16x288xf32> -> vector<16x288xf32>
    %32 = arith.addf %27, %31 : vector<16x288xf32>
    %c6 = arith.constant 6 : index
    %c0_21 = arith.constant 0 : index
    %c0_22 = arith.constant 0 : index
    %33 = vector.load %arg2[%c6, %c0_21, %c0_22] : memref<9x16x16xbf16, #tpu.memory_space<vmem>>, vector<1x16x16xbf16>
    %34 = vector.shape_cast %33 : vector<1x16x16xbf16> to vector<16x16xbf16>
    %35 = vector.extract_strided_slice %1 {offsets = [0, 36], sizes = [16, 288], strides = [1, 1]} : vector<16x342xbf16> to vector<16x288xbf16>
    %cst_23 = arith.constant dense<0.000000e+00> : vector<16x288xf32>
    %36 = tpu.matmul %34, %35, %cst_23 {dimension_numbers = #tpu.dot_dimension_numbers<[1], [0], [0], [1], [0, 0, 1, 1], [], []>} : vector<16x16xbf16>, vector<16x288xbf16>, vector<16x288xf32> -> vector<16x288xf32>
    %37 = arith.addf %32, %36 : vector<16x288xf32>
    %c7 = arith.constant 7 : index
    %c0_24 = arith.constant 0 : index
    %c0_25 = arith.constant 0 : index
    %38 = vector.load %arg2[%c7, %c0_24, %c0_25] : memref<9x16x16xbf16, #tpu.memory_space<vmem>>, vector<1x16x16xbf16>
    %39 = vector.shape_cast %38 : vector<1x16x16xbf16> to vector<16x16xbf16>
    %40 = vector.extract_strided_slice %1 {offsets = [0, 37], sizes = [16, 288], strides = [1, 1]} : vector<16x342xbf16> to vector<16x288xbf16>
    %cst_26 = arith.constant dense<0.000000e+00> : vector<16x288xf32>
    %41 = tpu.matmul %39, %40, %cst_26 {dimension_numbers = #tpu.dot_dimension_numbers<[1], [0], [0], [1], [0, 0, 1, 1], [], []>} : vector<16x16xbf16>, vector<16x288xbf16>, vector<16x288xf32> -> vector<16x288xf32>
    %42 = arith.addf %37, %41 : vector<16x288xf32>
    %c8 = arith.constant 8 : index
    %c0_27 = arith.constant 0 : index
    %c0_28 = arith.constant 0 : index
    %43 = vector.load %arg2[%c8, %c0_27, %c0_28] : memref<9x16x16xbf16, #tpu.memory_space<vmem>>, vector<1x16x16xbf16>
    %44 = vector.shape_cast %43 : vector<1x16x16xbf16> to vector<16x16xbf16>
    %45 = vector.extract_strided_slice %1 {offsets = [0, 38], sizes = [16, 288], strides = [1, 1]} : vector<16x342xbf16> to vector<16x288xbf16>
    %cst_29 = arith.constant dense<0.000000e+00> : vector<16x288xf32>
    %46 = tpu.matmul %44, %45, %cst_29 {dimension_numbers = #tpu.dot_dimension_numbers<[1], [0], [0], [1], [0, 0, 1, 1], [], []>} : vector<16x16xbf16>, vector<16x288xbf16>, vector<16x288xf32> -> vector<16x288xf32>
    %47 = arith.addf %42, %46 : vector<16x288xf32>
    %c0_30 = arith.constant 0 : index
    %c0_31 = arith.constant 0 : index
    %48 = vector.load %arg3[%c0_30, %c0_31] : memref<16x1xf32, #tpu.memory_space<vmem>>, vector<16x1xf32>
    %49 = vector.broadcast %48 : vector<16x1xf32> to vector<16x288xf32>
    %50 = arith.addf %47, %49 : vector<16x288xf32>
    %51 = arith.truncf %50 : vector<16x288xf32> to vector<16x288xbf16>
    %c0_32 = arith.constant 0 : index
    %c0_33 = arith.constant 0 : index
    %c0_34 = arith.constant 0 : index
    %52 = vector.load %arg4[%c0_32, %c0_33, %c0_34] : memref<1x16x288xbf16, #tpu.memory_space<vmem>>, vector<1x16x288xbf16>
    %53 = vector.shape_cast %52 : vector<1x16x288xbf16> to vector<16x288xbf16>
    %54 = vector.shape_cast %51 : vector<16x288xbf16> to vector<1x16x288xbf16>
    tpu.vector_store %arg4[%c0_32, %c0_33, %c0_34], %54 {strides = array<i32>} : memref<1x16x288xbf16, #tpu.memory_space<vmem>>, vector<1x16x288xbf16>,
    return
  }
  func.func @transform_0(%arg0: i32) -> (i32, i32, i32) {
    %c0_i32 = arith.constant 0 : i32
    %c0_i32_0 = arith.constant 0 : i32
    %c0_i32_1 = arith.constant 0 : i32
    return %arg0, %c0_i32, %c0_i32_0 : i32, i32, i32
  }
  func.func @transform_1(%arg0: i32) -> (i32, i32, i32) {
    %c0_i32 = arith.constant 0 : i32
    %c0_i32_0 = arith.constant 0 : i32
    %c0_i32_1 = arith.constant 0 : i32
    %c0_i32_2 = arith.constant 0 : i32
    return %c0_i32, %c0_i32_0, %c0_i32_1 : i32, i32, i32
  }
  func.func @transform_2(%arg0: i32) -> (i32, i32) {
    %c0_i32 = arith.constant 0 : i32
    %c0_i32_0 = arith.constant 0 : i32
    %c0_i32_1 = arith.constant 0 : i32
    return %c0_i32, %c0_i32_0 : i32, i32
  }
  func.func @transform_3(%arg0: i32) -> (i32, i32, i32) {
    %c0_i32 = arith.constant 0 : i32
    %c0_i32_0 = arith.constant 0 : i32
    %c0_i32_1 = arith.constant 0 : i32
    return %arg0, %c0_i32, %c0_i32_0 : i32, i32, i32
  }
}

module attributes {stable_mosaic.version = 11 : i64} {
  func.func @kernel(%arg0: i32, %arg1: memref<1x4x342xbf16, #tpu.memory_space<vmem>>, %arg2: memref<9x16x4xbf16, #tpu.memory_space<vmem>>, %arg3: memref<16x1xf32, #tpu.memory_space<vmem>>, %arg4: memref<1x16x288xbf16, #tpu.memory_space<vmem>>, %arg5: memref<1x16x288xbf16, #tpu.memory_space<vmem>>) attributes {dimension_semantics = [#tpu.dimension_semantics<parallel>], iteration_bounds = array<i64: 2>, scalar_prefetch = 0 : i64, scratch_operands = 0 : i64, tpu.core_type = #tpu.core_type<tc>, window_params = [{transform_indices = @transform_0, window_bounds = array<i64: 1, 4, 342>}, {pipeline_mode = #tpu.pipeline_mode<synchronous>, transform_indices = @transform_1, window_bounds = array<i64: 9, 16, 4>}, {pipeline_mode = #tpu.pipeline_mode<synchronous>, transform_indices = @transform_2, window_bounds = array<i64: 16, 1>}, {transform_indices = @transform_3, window_bounds = array<i64: 1, 16, 288>}, {transform_indices = @transform_4, window_bounds = array<i64: 1, 16, 288>}]} {
    %c0 = arith.constant 0 : index
    %c0_0 = arith.constant 0 : index
    %c0_1 = arith.constant 0 : index
    %0 = vector.load %arg1[%c0, %c0_0, %c0_1] : memref<1x4x342xbf16, #tpu.memory_space<vmem>>, vector<1x4x342xbf16>
    %1 = vector.shape_cast %0 : vector<1x4x342xbf16> to vector<4x342xbf16>
    %cst = arith.constant 0.000000e+00 : f32
    %2 = vector.broadcast %cst : f32 to vector<16x288xf32>
    %c0_2 = arith.constant 0 : index
    %c0_3 = arith.constant 0 : index
    %c0_4 = arith.constant 0 : index
    %3 = vector.load %arg2[%c0_2, %c0_3, %c0_4] : memref<9x16x4xbf16, #tpu.memory_space<vmem>>, vector<1x16x4xbf16>
    %4 = vector.shape_cast %3 : vector<1x16x4xbf16> to vector<16x4xbf16>
    %5 = vector.extract_strided_slice %1 {offsets = [0, 0], sizes = [4, 288], strides = [1, 1]} : vector<4x342xbf16> to vector<4x288xbf16>
    %cst_5 = arith.constant dense<0.000000e+00> : vector<16x288xf32>
    %6 = tpu.matmul %4, %5, %cst_5 {dimension_numbers = #tpu.dot_dimension_numbers<[1], [0], [0], [1], [0, 0, 1, 1], [], []>} : vector<16x4xbf16>, vector<4x288xbf16>, vector<16x288xf32> -> vector<16x288xf32>
    %7 = arith.addf %2, %6 : vector<16x288xf32>
    %c1 = arith.constant 1 : index
    %c0_6 = arith.constant 0 : index
    %c0_7 = arith.constant 0 : index
    %8 = vector.load %arg2[%c1, %c0_6, %c0_7] : memref<9x16x4xbf16, #tpu.memory_space<vmem>>, vector<1x16x4xbf16>
    %9 = vector.shape_cast %8 : vector<1x16x4xbf16> to vector<16x4xbf16>
    %10 = vector.extract_strided_slice %1 {offsets = [0, 1], sizes = [4, 288], strides = [1, 1]} : vector<4x342xbf16> to vector<4x288xbf16>
    %cst_8 = arith.constant dense<0.000000e+00> : vector<16x288xf32>
    %11 = tpu.matmul %9, %10, %cst_8 {dimension_numbers = #tpu.dot_dimension_numbers<[1], [0], [0], [1], [0, 0, 1, 1], [], []>} : vector<16x4xbf16>, vector<4x288xbf16>, vector<16x288xf32> -> vector<16x288xf32>
    %12 = arith.addf %7, %11 : vector<16x288xf32>
    %c2 = arith.constant 2 : index
    %c0_9 = arith.constant 0 : index
    %c0_10 = arith.constant 0 : index
    %13 = vector.load %arg2[%c2, %c0_9, %c0_10] : memref<9x16x4xbf16, #tpu.memory_space<vmem>>, vector<1x16x4xbf16>
    %14 = vector.shape_cast %13 : vector<1x16x4xbf16> to vector<16x4xbf16>
    %15 = vector.extract_strided_slice %1 {offsets = [0, 2], sizes = [4, 288], strides = [1, 1]} : vector<4x342xbf16> to vector<4x288xbf16>
    %cst_11 = arith.constant dense<0.000000e+00> : vector<16x288xf32>
    %16 = tpu.matmul %14, %15, %cst_11 {dimension_numbers = #tpu.dot_dimension_numbers<[1], [0], [0], [1], [0, 0, 1, 1], [], []>} : vector<16x4xbf16>, vector<4x288xbf16>, vector<16x288xf32> -> vector<16x288xf32>
    %17 = arith.addf %12, %16 : vector<16x288xf32>
    %c3 = arith.constant 3 : index
    %c0_12 = arith.constant 0 : index
    %c0_13 = arith.constant 0 : index
    %18 = vector.load %arg2[%c3, %c0_12, %c0_13] : memref<9x16x4xbf16, #tpu.memory_space<vmem>>, vector<1x16x4xbf16>
    %19 = vector.shape_cast %18 : vector<1x16x4xbf16> to vector<16x4xbf16>
    %20 = vector.extract_strided_slice %1 {offsets = [0, 18], sizes = [4, 288], strides = [1, 1]} : vector<4x342xbf16> to vector<4x288xbf16>
    %cst_14 = arith.constant dense<0.000000e+00> : vector<16x288xf32>
    %21 = tpu.matmul %19, %20, %cst_14 {dimension_numbers = #tpu.dot_dimension_numbers<[1], [0], [0], [1], [0, 0, 1, 1], [], []>} : vector<16x4xbf16>, vector<4x288xbf16>, vector<16x288xf32> -> vector<16x288xf32>
    %22 = arith.addf %17, %21 : vector<16x288xf32>
    %c4 = arith.constant 4 : index
    %c0_15 = arith.constant 0 : index
    %c0_16 = arith.constant 0 : index
    %23 = vector.load %arg2[%c4, %c0_15, %c0_16] : memref<9x16x4xbf16, #tpu.memory_space<vmem>>, vector<1x16x4xbf16>
    %24 = vector.shape_cast %23 : vector<1x16x4xbf16> to vector<16x4xbf16>
    %25 = vector.extract_strided_slice %1 {offsets = [0, 19], sizes = [4, 288], strides = [1, 1]} : vector<4x342xbf16> to vector<4x288xbf16>
    %cst_17 = arith.constant dense<0.000000e+00> : vector<16x288xf32>
    %26 = tpu.matmul %24, %25, %cst_17 {dimension_numbers = #tpu.dot_dimension_numbers<[1], [0], [0], [1], [0, 0, 1, 1], [], []>} : vector<16x4xbf16>, vector<4x288xbf16>, vector<16x288xf32> -> vector<16x288xf32>
    %27 = arith.addf %22, %26 : vector<16x288xf32>
    %c5 = arith.constant 5 : index
    %c0_18 = arith.constant 0 : index
    %c0_19 = arith.constant 0 : index
    %28 = vector.load %arg2[%c5, %c0_18, %c0_19] : memref<9x16x4xbf16, #tpu.memory_space<vmem>>, vector<1x16x4xbf16>
    %29 = vector.shape_cast %28 : vector<1x16x4xbf16> to vector<16x4xbf16>
    %30 = vector.extract_strided_slice %1 {offsets = [0, 20], sizes = [4, 288], strides = [1, 1]} : vector<4x342xbf16> to vector<4x288xbf16>
    %cst_20 = arith.constant dense<0.000000e+00> : vector<16x288xf32>
    %31 = tpu.matmul %29, %30, %cst_20 {dimension_numbers = #tpu.dot_dimension_numbers<[1], [0], [0], [1], [0, 0, 1, 1], [], []>} : vector<16x4xbf16>, vector<4x288xbf16>, vector<16x288xf32> -> vector<16x288xf32>
    %32 = arith.addf %27, %31 : vector<16x288xf32>
    %c6 = arith.constant 6 : index
    %c0_21 = arith.constant 0 : index
    %c0_22 = arith.constant 0 : index
    %33 = vector.load %arg2[%c6, %c0_21, %c0_22] : memref<9x16x4xbf16, #tpu.memory_space<vmem>>, vector<1x16x4xbf16>
    %34 = vector.shape_cast %33 : vector<1x16x4xbf16> to vector<16x4xbf16>
    %35 = vector.extract_strided_slice %1 {offsets = [0, 36], sizes = [4, 288], strides = [1, 1]} : vector<4x342xbf16> to vector<4x288xbf16>
    %cst_23 = arith.constant dense<0.000000e+00> : vector<16x288xf32>
    %36 = tpu.matmul %34, %35, %cst_23 {dimension_numbers = #tpu.dot_dimension_numbers<[1], [0], [0], [1], [0, 0, 1, 1], [], []>} : vector<16x4xbf16>, vector<4x288xbf16>, vector<16x288xf32> -> vector<16x288xf32>
    %37 = arith.addf %32, %36 : vector<16x288xf32>
    %c7 = arith.constant 7 : index
    %c0_24 = arith.constant 0 : index
    %c0_25 = arith.constant 0 : index
    %38 = vector.load %arg2[%c7, %c0_24, %c0_25] : memref<9x16x4xbf16, #tpu.memory_space<vmem>>, vector<1x16x4xbf16>
    %39 = vector.shape_cast %38 : vector<1x16x4xbf16> to vector<16x4xbf16>
    %40 = vector.extract_strided_slice %1 {offsets = [0, 37], sizes = [4, 288], strides = [1, 1]} : vector<4x342xbf16> to vector<4x288xbf16>
    %cst_26 = arith.constant dense<0.000000e+00> : vector<16x288xf32>
    %41 = tpu.matmul %39, %40, %cst_26 {dimension_numbers = #tpu.dot_dimension_numbers<[1], [0], [0], [1], [0, 0, 1, 1], [], []>} : vector<16x4xbf16>, vector<4x288xbf16>, vector<16x288xf32> -> vector<16x288xf32>
    %42 = arith.addf %37, %41 : vector<16x288xf32>
    %c8 = arith.constant 8 : index
    %c0_27 = arith.constant 0 : index
    %c0_28 = arith.constant 0 : index
    %43 = vector.load %arg2[%c8, %c0_27, %c0_28] : memref<9x16x4xbf16, #tpu.memory_space<vmem>>, vector<1x16x4xbf16>
    %44 = vector.shape_cast %43 : vector<1x16x4xbf16> to vector<16x4xbf16>
    %45 = vector.extract_strided_slice %1 {offsets = [0, 38], sizes = [4, 288], strides = [1, 1]} : vector<4x342xbf16> to vector<4x288xbf16>
    %cst_29 = arith.constant dense<0.000000e+00> : vector<16x288xf32>
    %46 = tpu.matmul %44, %45, %cst_29 {dimension_numbers = #tpu.dot_dimension_numbers<[1], [0], [0], [1], [0, 0, 1, 1], [], []>} : vector<16x4xbf16>, vector<4x288xbf16>, vector<16x288xf32> -> vector<16x288xf32>
    %47 = arith.addf %42, %46 : vector<16x288xf32>
    %c0_30 = arith.constant 0 : index
    %c0_31 = arith.constant 0 : index
    %48 = vector.load %arg3[%c0_30, %c0_31] : memref<16x1xf32, #tpu.memory_space<vmem>>, vector<16x1xf32>
    %49 = vector.broadcast %48 : vector<16x1xf32> to vector<16x288xf32>
    %50 = arith.addf %47, %49 : vector<16x288xf32>
    %c0_32 = arith.constant 0 : index
    %c0_33 = arith.constant 0 : index
    %c0_34 = arith.constant 0 : index
    %51 = vector.load %arg4[%c0_32, %c0_33, %c0_34] : memref<1x16x288xbf16, #tpu.memory_space<vmem>>, vector<1x16x288xbf16>
    %52 = vector.shape_cast %51 : vector<1x16x288xbf16> to vector<16x288xbf16>
    %53 = arith.extf %52 : vector<16x288xbf16> to vector<16x288xf32>
    %54 = arith.addf %50, %53 : vector<16x288xf32>
    %55 = arith.truncf %54 : vector<16x288xf32> to vector<16x288xbf16>
    %c0_35 = arith.constant 0 : index
    %c0_36 = arith.constant 0 : index
    %c0_37 = arith.constant 0 : index
    %56 = vector.load %arg5[%c0_35, %c0_36, %c0_37] : memref<1x16x288xbf16, #tpu.memory_space<vmem>>, vector<1x16x288xbf16>
    %57 = vector.shape_cast %56 : vector<1x16x288xbf16> to vector<16x288xbf16>
    %58 = vector.shape_cast %55 : vector<16x288xbf16> to vector<1x16x288xbf16>
    tpu.vector_store %arg5[%c0_35, %c0_36, %c0_37], %58 {strides = array<i32>} : memref<1x16x288xbf16, #tpu.memory_space<vmem>>, vector<1x16x288xbf16>,
    return
  }
  func.func @transform_0(%arg0: i32) -> (i32, i32, i32) {
    %c0_i32 = arith.constant 0 : i32
    %c0_i32_0 = arith.constant 0 : i32
    %c0_i32_1 = arith.constant 0 : i32
    return %arg0, %c0_i32, %c0_i32_0 : i32, i32, i32
  }
  func.func @transform_1(%arg0: i32) -> (i32, i32, i32) {
    %c0_i32 = arith.constant 0 : i32
    %c0_i32_0 = arith.constant 0 : i32
    %c0_i32_1 = arith.constant 0 : i32
    %c0_i32_2 = arith.constant 0 : i32
    return %c0_i32, %c0_i32_0, %c0_i32_1 : i32, i32, i32
  }
  func.func @transform_2(%arg0: i32) -> (i32, i32) {
    %c0_i32 = arith.constant 0 : i32
    %c0_i32_0 = arith.constant 0 : i32
    %c0_i32_1 = arith.constant 0 : i32
    return %c0_i32, %c0_i32_0 : i32, i32
  }
  func.func @transform_3(%arg0: i32) -> (i32, i32, i32) {
    %c0_i32 = arith.constant 0 : i32
    %c0_i32_0 = arith.constant 0 : i32
    %c0_i32_1 = arith.constant 0 : i32
    return %arg0, %c0_i32, %c0_i32_0 : i32, i32, i32
  }
  func.func @transform_4(%arg0: i32) -> (i32, i32, i32) {
    %c0_i32 = arith.constant 0 : i32
    %c0_i32_0 = arith.constant 0 : i32
    %c0_i32_1 = arith.constant 0 : i32
    return %arg0, %c0_i32, %c0_i32_0 : i32, i32, i32
  }
}

module attributes {stable_mosaic.version = 11 : i64} {
  func.func @kernel(%arg0: i32, %arg1: memref<1x16x342xbf16, #tpu.memory_space<vmem>>, %arg2: memref<9x64x16xbf16, #tpu.memory_space<vmem>>, %arg3: memref<64x1xf32, #tpu.memory_space<vmem>>, %arg4: memref<1x64x288xbf16, #tpu.memory_space<vmem>>) attributes {dimension_semantics = [#tpu.dimension_semantics<parallel>], iteration_bounds = array<i64: 2>, scalar_prefetch = 0 : i64, scratch_operands = 0 : i64, tpu.core_type = #tpu.core_type<tc>, window_params = [{transform_indices = @transform_0, window_bounds = array<i64: 1, 16, 342>}, {pipeline_mode = #tpu.pipeline_mode<synchronous>, transform_indices = @transform_1, window_bounds = array<i64: 9, 64, 16>}, {pipeline_mode = #tpu.pipeline_mode<synchronous>, transform_indices = @transform_2, window_bounds = array<i64: 64, 1>}, {transform_indices = @transform_3, window_bounds = array<i64: 1, 64, 288>}]} {
    %c0 = arith.constant 0 : index
    %c0_0 = arith.constant 0 : index
    %c0_1 = arith.constant 0 : index
    %0 = vector.load %arg1[%c0, %c0_0, %c0_1] : memref<1x16x342xbf16, #tpu.memory_space<vmem>>, vector<1x16x342xbf16>
    %1 = vector.shape_cast %0 : vector<1x16x342xbf16> to vector<16x342xbf16>
    %cst = arith.constant 0.000000e+00 : f32
    %2 = vector.broadcast %cst : f32 to vector<64x288xf32>
    %c0_2 = arith.constant 0 : index
    %c0_3 = arith.constant 0 : index
    %c0_4 = arith.constant 0 : index
    %3 = vector.load %arg2[%c0_2, %c0_3, %c0_4] : memref<9x64x16xbf16, #tpu.memory_space<vmem>>, vector<1x64x16xbf16>
    %4 = vector.shape_cast %3 : vector<1x64x16xbf16> to vector<64x16xbf16>
    %5 = vector.extract_strided_slice %1 {offsets = [0, 0], sizes = [16, 288], strides = [1, 1]} : vector<16x342xbf16> to vector<16x288xbf16>
    %cst_5 = arith.constant dense<0.000000e+00> : vector<64x288xf32>
    %6 = tpu.matmul %4, %5, %cst_5 {dimension_numbers = #tpu.dot_dimension_numbers<[1], [0], [0], [1], [0, 0, 1, 1], [], []>} : vector<64x16xbf16>, vector<16x288xbf16>, vector<64x288xf32> -> vector<64x288xf32>
    %7 = arith.addf %2, %6 : vector<64x288xf32>
    %c1 = arith.constant 1 : index
    %c0_6 = arith.constant 0 : index
    %c0_7 = arith.constant 0 : index
    %8 = vector.load %arg2[%c1, %c0_6, %c0_7] : memref<9x64x16xbf16, #tpu.memory_space<vmem>>, vector<1x64x16xbf16>
    %9 = vector.shape_cast %8 : vector<1x64x16xbf16> to vector<64x16xbf16>
    %10 = vector.extract_strided_slice %1 {offsets = [0, 1], sizes = [16, 288], strides = [1, 1]} : vector<16x342xbf16> to vector<16x288xbf16>
    %cst_8 = arith.constant dense<0.000000e+00> : vector<64x288xf32>
    %11 = tpu.matmul %9, %10, %cst_8 {dimension_numbers = #tpu.dot_dimension_numbers<[1], [0], [0], [1], [0, 0, 1, 1], [], []>} : vector<64x16xbf16>, vector<16x288xbf16>, vector<64x288xf32> -> vector<64x288xf32>
    %12 = arith.addf %7, %11 : vector<64x288xf32>
    %c2 = arith.constant 2 : index
    %c0_9 = arith.constant 0 : index
    %c0_10 = arith.constant 0 : index
    %13 = vector.load %arg2[%c2, %c0_9, %c0_10] : memref<9x64x16xbf16, #tpu.memory_space<vmem>>, vector<1x64x16xbf16>
    %14 = vector.shape_cast %13 : vector<1x64x16xbf16> to vector<64x16xbf16>
    %15 = vector.extract_strided_slice %1 {offsets = [0, 2], sizes = [16, 288], strides = [1, 1]} : vector<16x342xbf16> to vector<16x288xbf16>
    %cst_11 = arith.constant dense<0.000000e+00> : vector<64x288xf32>
    %16 = tpu.matmul %14, %15, %cst_11 {dimension_numbers = #tpu.dot_dimension_numbers<[1], [0], [0], [1], [0, 0, 1, 1], [], []>} : vector<64x16xbf16>, vector<16x288xbf16>, vector<64x288xf32> -> vector<64x288xf32>
    %17 = arith.addf %12, %16 : vector<64x288xf32>
    %c3 = arith.constant 3 : index
    %c0_12 = arith.constant 0 : index
    %c0_13 = arith.constant 0 : index
    %18 = vector.load %arg2[%c3, %c0_12, %c0_13] : memref<9x64x16xbf16, #tpu.memory_space<vmem>>, vector<1x64x16xbf16>
    %19 = vector.shape_cast %18 : vector<1x64x16xbf16> to vector<64x16xbf16>
    %20 = vector.extract_strided_slice %1 {offsets = [0, 18], sizes = [16, 288], strides = [1, 1]} : vector<16x342xbf16> to vector<16x288xbf16>
    %cst_14 = arith.constant dense<0.000000e+00> : vector<64x288xf32>
    %21 = tpu.matmul %19, %20, %cst_14 {dimension_numbers = #tpu.dot_dimension_numbers<[1], [0], [0], [1], [0, 0, 1, 1], [], []>} : vector<64x16xbf16>, vector<16x288xbf16>, vector<64x288xf32> -> vector<64x288xf32>
    %22 = arith.addf %17, %21 : vector<64x288xf32>
    %c4 = arith.constant 4 : index
    %c0_15 = arith.constant 0 : index
    %c0_16 = arith.constant 0 : index
    %23 = vector.load %arg2[%c4, %c0_15, %c0_16] : memref<9x64x16xbf16, #tpu.memory_space<vmem>>, vector<1x64x16xbf16>
    %24 = vector.shape_cast %23 : vector<1x64x16xbf16> to vector<64x16xbf16>
    %25 = vector.extract_strided_slice %1 {offsets = [0, 19], sizes = [16, 288], strides = [1, 1]} : vector<16x342xbf16> to vector<16x288xbf16>
    %cst_17 = arith.constant dense<0.000000e+00> : vector<64x288xf32>
    %26 = tpu.matmul %24, %25, %cst_17 {dimension_numbers = #tpu.dot_dimension_numbers<[1], [0], [0], [1], [0, 0, 1, 1], [], []>} : vector<64x16xbf16>, vector<16x288xbf16>, vector<64x288xf32> -> vector<64x288xf32>
    %27 = arith.addf %22, %26 : vector<64x288xf32>
    %c5 = arith.constant 5 : index
    %c0_18 = arith.constant 0 : index
    %c0_19 = arith.constant 0 : index
    %28 = vector.load %arg2[%c5, %c0_18, %c0_19] : memref<9x64x16xbf16, #tpu.memory_space<vmem>>, vector<1x64x16xbf16>
    %29 = vector.shape_cast %28 : vector<1x64x16xbf16> to vector<64x16xbf16>
    %30 = vector.extract_strided_slice %1 {offsets = [0, 20], sizes = [16, 288], strides = [1, 1]} : vector<16x342xbf16> to vector<16x288xbf16>
    %cst_20 = arith.constant dense<0.000000e+00> : vector<64x288xf32>
    %31 = tpu.matmul %29, %30, %cst_20 {dimension_numbers = #tpu.dot_dimension_numbers<[1], [0], [0], [1], [0, 0, 1, 1], [], []>} : vector<64x16xbf16>, vector<16x288xbf16>, vector<64x288xf32> -> vector<64x288xf32>
    %32 = arith.addf %27, %31 : vector<64x288xf32>
    %c6 = arith.constant 6 : index
    %c0_21 = arith.constant 0 : index
    %c0_22 = arith.constant 0 : index
    %33 = vector.load %arg2[%c6, %c0_21, %c0_22] : memref<9x64x16xbf16, #tpu.memory_space<vmem>>, vector<1x64x16xbf16>
    %34 = vector.shape_cast %33 : vector<1x64x16xbf16> to vector<64x16xbf16>
    %35 = vector.extract_strided_slice %1 {offsets = [0, 36], sizes = [16, 288], strides = [1, 1]} : vector<16x342xbf16> to vector<16x288xbf16>
    %cst_23 = arith.constant dense<0.000000e+00> : vector<64x288xf32>
    %36 = tpu.matmul %34, %35, %cst_23 {dimension_numbers = #tpu.dot_dimension_numbers<[1], [0], [0], [1], [0, 0, 1, 1], [], []>} : vector<64x16xbf16>, vector<16x288xbf16>, vector<64x288xf32> -> vector<64x288xf32>
    %37 = arith.addf %32, %36 : vector<64x288xf32>
    %c7 = arith.constant 7 : index
    %c0_24 = arith.constant 0 : index
    %c0_25 = arith.constant 0 : index
    %38 = vector.load %arg2[%c7, %c0_24, %c0_25] : memref<9x64x16xbf16, #tpu.memory_space<vmem>>, vector<1x64x16xbf16>
    %39 = vector.shape_cast %38 : vector<1x64x16xbf16> to vector<64x16xbf16>
    %40 = vector.extract_strided_slice %1 {offsets = [0, 37], sizes = [16, 288], strides = [1, 1]} : vector<16x342xbf16> to vector<16x288xbf16>
    %cst_26 = arith.constant dense<0.000000e+00> : vector<64x288xf32>
    %41 = tpu.matmul %39, %40, %cst_26 {dimension_numbers = #tpu.dot_dimension_numbers<[1], [0], [0], [1], [0, 0, 1, 1], [], []>} : vector<64x16xbf16>, vector<16x288xbf16>, vector<64x288xf32> -> vector<64x288xf32>
    %42 = arith.addf %37, %41 : vector<64x288xf32>
    %c8 = arith.constant 8 : index
    %c0_27 = arith.constant 0 : index
    %c0_28 = arith.constant 0 : index
    %43 = vector.load %arg2[%c8, %c0_27, %c0_28] : memref<9x64x16xbf16, #tpu.memory_space<vmem>>, vector<1x64x16xbf16>
    %44 = vector.shape_cast %43 : vector<1x64x16xbf16> to vector<64x16xbf16>
    %45 = vector.extract_strided_slice %1 {offsets = [0, 38], sizes = [16, 288], strides = [1, 1]} : vector<16x342xbf16> to vector<16x288xbf16>
    %cst_29 = arith.constant dense<0.000000e+00> : vector<64x288xf32>
    %46 = tpu.matmul %44, %45, %cst_29 {dimension_numbers = #tpu.dot_dimension_numbers<[1], [0], [0], [1], [0, 0, 1, 1], [], []>} : vector<64x16xbf16>, vector<16x288xbf16>, vector<64x288xf32> -> vector<64x288xf32>
    %47 = arith.addf %42, %46 : vector<64x288xf32>
    %c0_30 = arith.constant 0 : index
    %c0_31 = arith.constant 0 : index
    %48 = vector.load %arg3[%c0_30, %c0_31] : memref<64x1xf32, #tpu.memory_space<vmem>>, vector<64x1xf32>
    %49 = vector.broadcast %48 : vector<64x1xf32> to vector<64x288xf32>
    %50 = arith.addf %47, %49 : vector<64x288xf32>
    %51 = arith.truncf %50 : vector<64x288xf32> to vector<64x288xbf16>
    %c0_32 = arith.constant 0 : index
    %c0_33 = arith.constant 0 : index
    %c0_34 = arith.constant 0 : index
    %52 = vector.load %arg4[%c0_32, %c0_33, %c0_34] : memref<1x64x288xbf16, #tpu.memory_space<vmem>>, vector<1x64x288xbf16>
    %53 = vector.shape_cast %52 : vector<1x64x288xbf16> to vector<64x288xbf16>
    %54 = vector.shape_cast %51 : vector<64x288xbf16> to vector<1x64x288xbf16>
    tpu.vector_store %arg4[%c0_32, %c0_33, %c0_34], %54 {strides = array<i32>} : memref<1x64x288xbf16, #tpu.memory_space<vmem>>, vector<1x64x288xbf16>,
    return
  }
  func.func @transform_0(%arg0: i32) -> (i32, i32, i32) {
    %c0_i32 = arith.constant 0 : i32
    %c0_i32_0 = arith.constant 0 : i32
    %c0_i32_1 = arith.constant 0 : i32
    return %arg0, %c0_i32, %c0_i32_0 : i32, i32, i32
  }
  func.func @transform_1(%arg0: i32) -> (i32, i32, i32) {
    %c0_i32 = arith.constant 0 : i32
    %c0_i32_0 = arith.constant 0 : i32
    %c0_i32_1 = arith.constant 0 : i32
    %c0_i32_2 = arith.constant 0 : i32
    return %c0_i32, %c0_i32_0, %c0_i32_1 : i32, i32, i32
  }
  func.func @transform_2(%arg0: i32) -> (i32, i32) {
    %c0_i32 = arith.constant 0 : i32
    %c0_i32_0 = arith.constant 0 : i32
    %c0_i32_1 = arith.constant 0 : i32
    return %c0_i32, %c0_i32_0 : i32, i32
  }
  func.func @transform_3(%arg0: i32) -> (i32, i32, i32) {
    %c0_i32 = arith.constant 0 : i32
    %c0_i32_0 = arith.constant 0 : i32
    %c0_i32_1 = arith.constant 0 : i32
    return %arg0, %c0_i32, %c0_i32_0 : i32, i32, i32
  }
}

module attributes {stable_mosaic.version = 11 : i64} {
  func.func @kernel(%arg0: i32, %arg1: memref<1x16x1190xbf16, #tpu.memory_space<vmem>>, %arg2: memref<9x3x16xbf16, #tpu.memory_space<vmem>>, %arg3: memref<3x1xf32, #tpu.memory_space<vmem>>, %arg4: memref<1x3x1088xf32, #tpu.memory_space<vmem>>) attributes {dimension_semantics = [#tpu.dimension_semantics<parallel>], iteration_bounds = array<i64: 2>, scalar_prefetch = 0 : i64, scratch_operands = 0 : i64, tpu.core_type = #tpu.core_type<tc>, window_params = [{transform_indices = @transform_0, window_bounds = array<i64: 1, 16, 1190>}, {pipeline_mode = #tpu.pipeline_mode<synchronous>, transform_indices = @transform_1, window_bounds = array<i64: 9, 3, 16>}, {pipeline_mode = #tpu.pipeline_mode<synchronous>, transform_indices = @transform_2, window_bounds = array<i64: 3, 1>}, {transform_indices = @transform_3, window_bounds = array<i64: 1, 3, 1088>}]} {
    %c0 = arith.constant 0 : index
    %c0_0 = arith.constant 0 : index
    %c0_1 = arith.constant 0 : index
    %0 = vector.load %arg1[%c0, %c0_0, %c0_1] : memref<1x16x1190xbf16, #tpu.memory_space<vmem>>, vector<1x16x1190xbf16>
    %1 = vector.shape_cast %0 : vector<1x16x1190xbf16> to vector<16x1190xbf16>
    %cst = arith.constant 0.000000e+00 : f32
    %2 = vector.broadcast %cst : f32 to vector<3x1088xf32>
    %c0_2 = arith.constant 0 : index
    %c0_3 = arith.constant 0 : index
    %c0_4 = arith.constant 0 : index
    %3 = vector.load %arg2[%c0_2, %c0_3, %c0_4] : memref<9x3x16xbf16, #tpu.memory_space<vmem>>, vector<1x3x16xbf16>
    %4 = vector.shape_cast %3 : vector<1x3x16xbf16> to vector<3x16xbf16>
    %5 = vector.extract_strided_slice %1 {offsets = [0, 0], sizes = [16, 1088], strides = [1, 1]} : vector<16x1190xbf16> to vector<16x1088xbf16>
    %cst_5 = arith.constant dense<0.000000e+00> : vector<3x1088xf32>
    %6 = tpu.matmul %4, %5, %cst_5 {dimension_numbers = #tpu.dot_dimension_numbers<[1], [0], [0], [1], [0, 0, 1, 1], [], []>} : vector<3x16xbf16>, vector<16x1088xbf16>, vector<3x1088xf32> -> vector<3x1088xf32>
    %7 = arith.addf %2, %6 : vector<3x1088xf32>
    %c1 = arith.constant 1 : index
    %c0_6 = arith.constant 0 : index
    %c0_7 = arith.constant 0 : index
    %8 = vector.load %arg2[%c1, %c0_6, %c0_7] : memref<9x3x16xbf16, #tpu.memory_space<vmem>>, vector<1x3x16xbf16>
    %9 = vector.shape_cast %8 : vector<1x3x16xbf16> to vector<3x16xbf16>
    %10 = vector.extract_strided_slice %1 {offsets = [0, 1], sizes = [16, 1088], strides = [1, 1]} : vector<16x1190xbf16> to vector<16x1088xbf16>
    %cst_8 = arith.constant dense<0.000000e+00> : vector<3x1088xf32>
    %11 = tpu.matmul %9, %10, %cst_8 {dimension_numbers = #tpu.dot_dimension_numbers<[1], [0], [0], [1], [0, 0, 1, 1], [], []>} : vector<3x16xbf16>, vector<16x1088xbf16>, vector<3x1088xf32> -> vector<3x1088xf32>
    %12 = arith.addf %7, %11 : vector<3x1088xf32>
    %c2 = arith.constant 2 : index
    %c0_9 = arith.constant 0 : index
    %c0_10 = arith.constant 0 : index
    %13 = vector.load %arg2[%c2, %c0_9, %c0_10] : memref<9x3x16xbf16, #tpu.memory_space<vmem>>, vector<1x3x16xbf16>
    %14 = vector.shape_cast %13 : vector<1x3x16xbf16> to vector<3x16xbf16>
    %15 = vector.extract_strided_slice %1 {offsets = [0, 2], sizes = [16, 1088], strides = [1, 1]} : vector<16x1190xbf16> to vector<16x1088xbf16>
    %cst_11 = arith.constant dense<0.000000e+00> : vector<3x1088xf32>
    %16 = tpu.matmul %14, %15, %cst_11 {dimension_numbers = #tpu.dot_dimension_numbers<[1], [0], [0], [1], [0, 0, 1, 1], [], []>} : vector<3x16xbf16>, vector<16x1088xbf16>, vector<3x1088xf32> -> vector<3x1088xf32>
    %17 = arith.addf %12, %16 : vector<3x1088xf32>
    %c3 = arith.constant 3 : index
    %c0_12 = arith.constant 0 : index
    %c0_13 = arith.constant 0 : index
    %18 = vector.load %arg2[%c3, %c0_12, %c0_13] : memref<9x3x16xbf16, #tpu.memory_space<vmem>>, vector<1x3x16xbf16>
    %19 = vector.shape_cast %18 : vector<1x3x16xbf16> to vector<3x16xbf16>
    %20 = vector.extract_strided_slice %1 {offsets = [0, 34], sizes = [16, 1088], strides = [1, 1]} : vector<16x1190xbf16> to vector<16x1088xbf16>
    %cst_14 = arith.constant dense<0.000000e+00> : vector<3x1088xf32>
    %21 = tpu.matmul %19, %20, %cst_14 {dimension_numbers = #tpu.dot_dimension_numbers<[1], [0], [0], [1], [0, 0, 1, 1], [], []>} : vector<3x16xbf16>, vector<16x1088xbf16>, vector<3x1088xf32> -> vector<3x1088xf32>
    %22 = arith.addf %17, %21 : vector<3x1088xf32>
    %c4 = arith.constant 4 : index
    %c0_15 = arith.constant 0 : index
    %c0_16 = arith.constant 0 : index
    %23 = vector.load %arg2[%c4, %c0_15, %c0_16] : memref<9x3x16xbf16, #tpu.memory_space<vmem>>, vector<1x3x16xbf16>
    %24 = vector.shape_cast %23 : vector<1x3x16xbf16> to vector<3x16xbf16>
    %25 = vector.extract_strided_slice %1 {offsets = [0, 35], sizes = [16, 1088], strides = [1, 1]} : vector<16x1190xbf16> to vector<16x1088xbf16>
    %cst_17 = arith.constant dense<0.000000e+00> : vector<3x1088xf32>
    %26 = tpu.matmul %24, %25, %cst_17 {dimension_numbers = #tpu.dot_dimension_numbers<[1], [0], [0], [1], [0, 0, 1, 1], [], []>} : vector<3x16xbf16>, vector<16x1088xbf16>, vector<3x1088xf32> -> vector<3x1088xf32>
    %27 = arith.addf %22, %26 : vector<3x1088xf32>
    %c5 = arith.constant 5 : index
    %c0_18 = arith.constant 0 : index
    %c0_19 = arith.constant 0 : index
    %28 = vector.load %arg2[%c5, %c0_18, %c0_19] : memref<9x3x16xbf16, #tpu.memory_space<vmem>>, vector<1x3x16xbf16>
    %29 = vector.shape_cast %28 : vector<1x3x16xbf16> to vector<3x16xbf16>
    %30 = vector.extract_strided_slice %1 {offsets = [0, 36], sizes = [16, 1088], strides = [1, 1]} : vector<16x1190xbf16> to vector<16x1088xbf16>
    %cst_20 = arith.constant dense<0.000000e+00> : vector<3x1088xf32>
    %31 = tpu.matmul %29, %30, %cst_20 {dimension_numbers = #tpu.dot_dimension_numbers<[1], [0], [0], [1], [0, 0, 1, 1], [], []>} : vector<3x16xbf16>, vector<16x1088xbf16>, vector<3x1088xf32> -> vector<3x1088xf32>
    %32 = arith.addf %27, %31 : vector<3x1088xf32>
    %c6 = arith.constant 6 : index
    %c0_21 = arith.constant 0 : index
    %c0_22 = arith.constant 0 : index
    %33 = vector.load %arg2[%c6, %c0_21, %c0_22] : memref<9x3x16xbf16, #tpu.memory_space<vmem>>, vector<1x3x16xbf16>
    %34 = vector.shape_cast %33 : vector<1x3x16xbf16> to vector<3x16xbf16>
    %35 = vector.extract_strided_slice %1 {offsets = [0, 68], sizes = [16, 1088], strides = [1, 1]} : vector<16x1190xbf16> to vector<16x1088xbf16>
    %cst_23 = arith.constant dense<0.000000e+00> : vector<3x1088xf32>
    %36 = tpu.matmul %34, %35, %cst_23 {dimension_numbers = #tpu.dot_dimension_numbers<[1], [0], [0], [1], [0, 0, 1, 1], [], []>} : vector<3x16xbf16>, vector<16x1088xbf16>, vector<3x1088xf32> -> vector<3x1088xf32>
    %37 = arith.addf %32, %36 : vector<3x1088xf32>
    %c7 = arith.constant 7 : index
    %c0_24 = arith.constant 0 : index
    %c0_25 = arith.constant 0 : index
    %38 = vector.load %arg2[%c7, %c0_24, %c0_25] : memref<9x3x16xbf16, #tpu.memory_space<vmem>>, vector<1x3x16xbf16>
    %39 = vector.shape_cast %38 : vector<1x3x16xbf16> to vector<3x16xbf16>
    %40 = vector.extract_strided_slice %1 {offsets = [0, 69], sizes = [16, 1088], strides = [1, 1]} : vector<16x1190xbf16> to vector<16x1088xbf16>
    %cst_26 = arith.constant dense<0.000000e+00> : vector<3x1088xf32>
    %41 = tpu.matmul %39, %40, %cst_26 {dimension_numbers = #tpu.dot_dimension_numbers<[1], [0], [0], [1], [0, 0, 1, 1], [], []>} : vector<3x16xbf16>, vector<16x1088xbf16>, vector<3x1088xf32> -> vector<3x1088xf32>
    %42 = arith.addf %37, %41 : vector<3x1088xf32>
    %c8 = arith.constant 8 : index
    %c0_27 = arith.constant 0 : index
    %c0_28 = arith.constant 0 : index
    %43 = vector.load %arg2[%c8, %c0_27, %c0_28] : memref<9x3x16xbf16, #tpu.memory_space<vmem>>, vector<1x3x16xbf16>
    %44 = vector.shape_cast %43 : vector<1x3x16xbf16> to vector<3x16xbf16>
    %45 = vector.extract_strided_slice %1 {offsets = [0, 70], sizes = [16, 1088], strides = [1, 1]} : vector<16x1190xbf16> to vector<16x1088xbf16>
    %cst_29 = arith.constant dense<0.000000e+00> : vector<3x1088xf32>
    %46 = tpu.matmul %44, %45, %cst_29 {dimension_numbers = #tpu.dot_dimension_numbers<[1], [0], [0], [1], [0, 0, 1, 1], [], []>} : vector<3x16xbf16>, vector<16x1088xbf16>, vector<3x1088xf32> -> vector<3x1088xf32>
    %47 = arith.addf %42, %46 : vector<3x1088xf32>
    %c0_30 = arith.constant 0 : index
    %c0_31 = arith.constant 0 : index
    %48 = vector.load %arg3[%c0_30, %c0_31] : memref<3x1xf32, #tpu.memory_space<vmem>>, vector<3x1xf32>
    %49 = vector.broadcast %48 : vector<3x1xf32> to vector<3x1088xf32>
    %50 = arith.addf %47, %49 : vector<3x1088xf32>
    %c0_32 = arith.constant 0 : index
    %c0_33 = arith.constant 0 : index
    %c0_34 = arith.constant 0 : index
    %51 = vector.load %arg4[%c0_32, %c0_33, %c0_34] : memref<1x3x1088xf32, #tpu.memory_space<vmem>>, vector<1x3x1088xf32>
    %52 = vector.shape_cast %51 : vector<1x3x1088xf32> to vector<3x1088xf32>
    %53 = vector.shape_cast %50 : vector<3x1088xf32> to vector<1x3x1088xf32>
    tpu.vector_store %arg4[%c0_32, %c0_33, %c0_34], %53 {strides = array<i32>} : memref<1x3x1088xf32, #tpu.memory_space<vmem>>, vector<1x3x1088xf32>,
    return
  }
  func.func @transform_0(%arg0: i32) -> (i32, i32, i32) {
    %c0_i32 = arith.constant 0 : i32
    %c0_i32_0 = arith.constant 0 : i32
    %c0_i32_1 = arith.constant 0 : i32
    return %arg0, %c0_i32, %c0_i32_0 : i32, i32, i32
  }
  func.func @transform_1(%arg0: i32) -> (i32, i32, i32) {
    %c0_i32 = arith.constant 0 : i32
    %c0_i32_0 = arith.constant 0 : i32
    %c0_i32_1 = arith.constant 0 : i32
    %c0_i32_2 = arith.constant 0 : i32
    return %c0_i32, %c0_i32_0, %c0_i32_1 : i32, i32, i32
  }
  func.func @transform_2(%arg0: i32) -> (i32, i32) {
    %c0_i32 = arith.constant 0 : i32
    %c0_i32_0 = arith.constant 0 : i32
    %c0_i32_1 = arith.constant 0 : i32
    return %c0_i32, %c0_i32_0 : i32, i32
  }
  func.func @transform_3(%arg0: i32) -> (i32, i32, i32) {
    %c0_i32 = arith.constant 0 : i32
    %c0_i32_0 = arith.constant 0 : i32
    %c0_i32_1 = arith.constant 0 : i32
    return %arg0, %c0_i32, %c0_i32_0 : i32, i32, i32
  }
}

</mosaic_0001>

<bundles_post_ra>
// kernel: swift_forward.10
= control target key start
LH: loop header
LB: loop body
LE: loop exit
PB: predicated region body
PF: predicated region fallthrough
CT: control target
= control target key end

     0   :  { %s1550_s12 = smov 0   ;;  %s1740_s0 = inlined_call_operand.vmem [shape: bf16[2,3,342], index: 0, kind: input, shape index: {}]   ;;  %s1741_s1 = inlined_call_operand.vmem [shape: bf16[9,16,3], index: 1, kind: input, shape index: {}]   ;;  %s1742_s2 = inlined_call_operand.vmem [shape: f32[16,1], index: 2, kind: input, shape index: {}]   ;;  %s1743_s3 = inlined_call_operand.vmem [shape: bf16[2,16,288], index: 3, kind: output, shape index: {}]  }
   0x1 LB: > { %s1342_s13 = sadd.s32 4294967295, %s1515_s12   ;;  %p1346_p0 = scmp.ge.s32.totalorder %s1515_s12, 1  ;;  %s1515_s12 = sphi %s1550_s12, %s13_s12  }
   0x2   : > { %p137_p1 = scmp.lt.s32.totalorder %s1515_s12, 3 }
   0x4   : > { %p138_p2 = pnand %p1346_p0, %p137_p1 }
   0x5   : > { %p161_p3 = scmp.lt.s32.totalorder (!%p138_p2), %s1342_s13, 1  ;;  %s1521_s18 = smov (!%p138_p2), 127  }
   0x6   : > { %141 = sbr.rel (%p138_p2) target bundleno = 418 (0x1a2), region = 32  ;;  %s1522_s19 = smov (!%p138_p2), 126  }
   0x7   : > { %s1523_s20 = smov (!%p138_p2), 110   ;;  %s1524_s21 = smov (!%p138_p2), 109  }
   0x8   : > { %s1525_s22 = smov (!%p138_p2), 108   ;;  %s1526_s23 = smov (!%p138_p2), 92  }
   0x9   : > { %s1527_s24 = smov (!%p138_p2), 91   ;;  %s1528_s25 = smov (!%p138_p2), 90  }
   0xb   : > { %v188_v0 = vlaneseq  ;;  %v1517_v1 = vmov 1983009808   ;;  %s1745_s13 = smov (!%p161_p3, %s1342_s13), 1  ;;  %v1518_v5 = vmov 0.0   ;;  %vm1519_vm0 = vmmov 0   ;;  %v1244_v13 = vld [vmem:[%s1742_s2] sm:$0xff] }
   0xc   : > { %v186_v2 = vunpack.c.l.s4 %v1517_v1  ;;  %1420 = vmatprep.subr.bf16.mxu1 %v1518_v5  ;;  %s1474_s14 = smul.u32 6, %s1745_s13  ;;  %1422 = vmatprep.mubr.msk.bf16.mxu1 %vm1519_vm0, %v1518_v5  ;;  %v1520_v10 = vmov 0   ;;  %v1245_v14 = vld [vmem:[%s1742_s2 + $0x8] sm:$0xff]  ;;  %vm213_vm1 = vcmask 1040384   ;;  %vm206_vm2 = vcmask 1039360   ;;  %v1501_v38 = vld [vmem:[%s1741_s1] sm:$0xff]  }
   0xd   : > { %v189_v3 = vshrl.u32 %v188_v0, 7  ;;  %258 = vmatprep.mubr.bf16.mxu0 %v1520_v10  ;;  %1497 = vset.pattern.permute.xlu0 %v1520_v10  ;;  %vm214_vm3 = vcmask 1041408   ;;  %v1529_v17 = vmov 65535   ;;  %v1500_v26 = vld [vmem:[%s1741_s1 + $0x8] sm:$0xff]   ;;  %vm425_vm4 = vcmask 1031168   ;;  %v1502_v47 = vld [vmem:[%s1741_s1 + $0x10] sm:$0xff]  }
   0xe   : > { %v187_v4 = vunpack.c.0.s8 %v186_v2  ;;  %s165_s17 = scalar_lea.vmem %s1740_s0, %s1474_s14  ;;  %1498 = vset.pattern.permute.xlu1 %v1520_v10  ;;  %v215_v18 = vsel %vm213_vm1, 4294967295, %v1529_v17  ;;  %vm209_vm5 = vcmask 23552   ;;  %vm544_vm6 = vcmask 900096   ;;  %v1503_v56 = vld [vmem:[%s1741_s1 + $0x18] sm:$0xff]   ;;  %v1504_v1 = vld [vmem:[%s1741_s1 + $0x20] sm:$0xff]  }
   0xf   : > { %v172_v7 = vld [vmem:[%s165_s17] sm:$0x3f]  ;;  %v1608_v22 = vsel %vm214_vm3, %v215_v18, 0  ;;  %vm663_vm7 = vcmask 891904   ;;  %vm782_vm8 = vcmask 883712   ;;  %vm901_vm9 = vcmask 752640  }
  0x10   : > { %v190_v6 = vsub.s32 %v187_v4, %v189_v3  ;;  %v184_v9 = vcombine.high %v172_v7, %v172_v7  ;;  %vm1020_vm10 = vcmask 744448   ;;  %vm1139_vm11 = vcmask 736256  }
  0x11   : > { %vm1283_vm12 = vcmask 257024  }
  0x12   : > { %v1567_v8 = vrot.slane %v172_v7, %v190_v6  ;;  %v1578_v12 = vrot.slane %v184_v9, %v190_v6 }
  0x14   : > { %200 = vrot.lane.b32.xlu1 %v1567_v8, %s1521_s18  ;;  %v1574_v11 = vcombine.high %v1567_v8, %v1567_v8  ;;  %v325_v29 = vand.u32 %v1608_v22, %v1578_v12  ;;  %v319_v32 = vand.u32 %v1608_v22, %v1567_v8 }
  0x16   : > { %202 = vrot.lane.b32.xlu0 %v1574_v11, %s1521_s18  ;;  %v322_v27 = vand.u32 %v1608_v22, %v1574_v11 }
  0x18   : > { %421 = vrot.lane.b32.xlu1 %v1574_v11, %s1522_s19 }
  0x1a   : > { %204 = vrot.lane.b32.xlu0 %v1578_v12, %s1521_s18 }
  0x1c   : > { %419 = vrot.lane.b32.xlu1 %v1567_v8, %s1522_s19 }
  0x1e   : > { %423 = vrot.lane.b32.xlu0 %v1578_v12, %s1522_s19 }
  0x20   : > { %542 = vrot.lane.b32.xlu1 %v1578_v12, %s1523_s20 }
  0x22   : > { %540 = vrot.lane.b32.xlu0 %v1574_v11, %s1523_s20 }
  0x24   : > { %659 = vrot.lane.b32.xlu1 %v1574_v11, %s1524_s21 }
  0x26   : > { %538 = vrot.lane.b32.xlu0 %v1567_v8, %s1523_s20 }
  0x28   : > { %657 = vrot.lane.b32.xlu1 %v1567_v8, %s1524_s21 }
  0x2a   : > { %661 = vrot.lane.b32.xlu0 %v1578_v12, %s1524_s21 }
  0x2c   : > { %780 = vrot.lane.b32.xlu1 %v1578_v12, %s1525_s22 }
  0x2e   : > { %778 = vrot.lane.b32.xlu0 %v1574_v11, %s1525_s22 }
  0x30   : > { %897 = vrot.lane.b32.xlu1 %v1574_v11, %s1526_s23 }
  0x32   : > { %776 = vrot.lane.b32.xlu0 %v1567_v8, %s1525_s22 }
  0x34   : > { %895 = vrot.lane.b32.xlu1 %v1567_v8, %s1526_s23 }
  0x36   : > { %899 = vrot.lane.b32.xlu0 %v1578_v12, %s1526_s23  ;;  %s1475_s23 = smul.u32 24, %s1745_s13 }
  0x38   : > { %1018 = vrot.lane.b32.xlu1 %v1578_v12, %s1527_s24  ;;  %s170_s26 = scalar_lea.vmem %s1743_s3, %s1475_s23 }
  0x3a   : > { %1016 = vrot.lane.b32.xlu0 %v1574_v11, %s1527_s24 }
  0x3c   : > { %1135 = vrot.lane.b32.xlu1 %v1574_v11, %s1528_s25 }
  0x3e   : > { %1014 = vrot.lane.b32.xlu0 %v1567_v8, %s1527_s24 }
  0x40   : > { %1133 = vrot.lane.b32.xlu1 %v1567_v8, %s1528_s25 }
  0x42   : > { %1137 = vrot.lane.b32.xlu0 %v1578_v12, %s1528_s25  ;;  %v1505_v12 = vld [vmem:[%s1741_s1 + $0x28] sm:$0xff]  }
  0x44   : > { %1253 = vperm.xlu1 %1498, %v1245_v14  }
  0x46   : > { %1248 = vperm.xlu0 %1497, %v1244_v13  }
  0x86   : > { %v201_v15 = vpop.permute.xlu1 %200 }
  0x88   : > { %v203_v16 = vpop.permute.xlu0 %202 }
  0x89   : > { %v207_v20 = vsel %vm206_vm2, %v201_v15, %v203_v16 }
  0x8a   : > { %v422_v19 = vpop.permute.xlu1 %421  ;;  %v218_v28 = vand.u32 %v1608_v22, %v207_v20 }
  0x8c   : > { %v205_v21 = vpop.permute.xlu0 %204 }
  0x8d   : > { %v224_v23 = vand.u32 %v1608_v22, %v205_v21  ;;  %v208_v24 = vsel %vm206_vm2, %v203_v16, %v205_v21  ;;  %v1506_v21 = vld [vmem:[%s1741_s1 + $0x30] sm:$0xff]  }
  0x8e   : > { %v221_v25 = vand.u32 %v1608_v22, %v208_v24  ;;  %v420_v30 = vpop.permute.xlu1 %419 }
  0x8f   : > { %1421 = vmatpush3.bf16.msra.mxu1 %v224_v23  ;;  %v426_v37 = vsel %vm425_vm4, %v420_v30, %v422_v19 }
  0x90   : > { %240 = vmatprep.subr.bf16.mxu0 %v221_v25  ;;  %v424_v31 = vpop.permute.xlu0 %423  ;;  %1426 = vmatprep.subr.bf16.mxu1 %v1518_v5  ;;  %v432_v42 = vand.u32 %v426_v37, %v1608_v22 }
  0x91   : > { %241 = vmatpush1.bf16.msra.mxu0 %v218_v28  ;;  %v427_v33 = vsel %vm425_vm4, %v422_v19, %v424_v31  ;;  %v438_v39 = vand.u32 %v424_v31, %v1608_v22 }
  0x92   : > { %1423 = vmatmul.mubr.msk.bf16.vlgmr.msra.gmra.mxu1 %vm209_vm5, %v1500_v26  ;;  %341 = vmatprep.subr.bf16.mxu0 %v322_v27  ;;  %v435_v34 = vand.u32 %v427_v33, %v1608_v22  ;;  %v543_v36 = vpop.permute.xlu1 %542 }
  0x93   : > { %1427 = vmatpush3.bf16.msra.mxu1 %v325_v29  ;;  %1428 = vmatprep.mubr.msk.bf16.mxu1 %vm1519_vm0, %v1518_v5  ;;  %v557_v48 = vand.u32 %v543_v36, %v1608_v22  ;;  %v1507_v29 = vld [vmem:[%s1741_s1 + $0x38] sm:$0xff]  }
  0x94   : > { %1352 = vmatmul.mubr.msk.bf16.vlgmr.msra.gmra.mxu0 %vm209_vm5, %v1500_v26  ;;  %v541_v35 = vpop.permute.xlu0 %540  ;;  %1432 = vmatprep.subr.bf16.mxu1 %v1518_v5 }
  0x95   : > { %342 = vmatpush1.bf16.msra.mxu0 %v319_v32  ;;  %359 = vmatprep.mubr.bf16.mxu0 %v1520_v10  ;;  %v546_v40 = vsel %vm544_vm6, %v541_v35, %v543_v36  ;;  %v1508_v32 = vld [vmem:[%s1741_s1 + $0x40] sm:$0xff]  }
  0x96   : > { %454 = vmatprep.subr.bf16.mxu0 %v435_v34  ;;  %v554_v43 = vand.u32 %v546_v40, %v1608_v22  ;;  %v660_v44 = vpop.permute.xlu1 %659 }
  0x98   : > { %v539_v41 = vpop.permute.xlu0 %538 }
  0x99   : > { %v545_v46 = vsel %vm544_vm6, %v539_v41, %v541_v35 }
  0x9a   : > { %1429 = vmatmul.mubr.msk.bf16.vlgmr.msra.gmra.mxu1 %vm209_vm5, %v1501_v38  ;;  %v658_v50 = vpop.permute.xlu1 %657  ;;  %v551_v51 = vand.u32 %v545_v46, %v1608_v22 }
  0x9b   : > { %1433 = vmatpush3.bf16.msra.mxu1 %v438_v39  ;;  %1434 = vmatprep.mubr.msk.bf16.mxu1 %vm1519_vm0, %v1518_v5  ;;  %v664_v55 = vsel %vm663_vm7, %v658_v50, %v660_v44 }
  0x9c   : > { %1355 = vmatmul.mubr.msk.bf16.vlgmr.msra.gmra.mxu0 %vm209_vm5, %v1501_v38  ;;  %1438 = vmatprep.subr.bf16.mxu1 %v1518_v5  ;;  %v662_v45 = vpop.permute.xlu0 %661  ;;  %v670_v60 = vand.u32 %v664_v55, %v1608_v22 }
  0x9d   : > { %455 = vmatpush1.bf16.msra.mxu0 %v432_v42  ;;  %472 = vmatprep.mubr.bf16.mxu0 %v1520_v10  ;;  %v665_v49 = vsel %vm663_vm7, %v660_v44, %v662_v45  ;;  %v676_v57 = vand.u32 %v662_v45, %v1608_v22 }
  0x9e   : > { %573 = vmatprep.subr.bf16.mxu0 %v554_v43  ;;  %v673_v52 = vand.u32 %v665_v49, %v1608_v22  ;;  %v781_v54 = vpop.permute.xlu1 %780 }
  0x9f   : > { %v795_v2 = vand.u32 %v781_v54, %v1608_v22 }
  0xa0   : > { %v779_v53 = vpop.permute.xlu0 %778 }
  0xa1   : > { %v784_v58 = vsel %vm782_vm8, %v779_v53, %v781_v54 }
  0xa2   : > { %1435 = vmatmul.mubr.msk.bf16.vlgmr.msra.gmra.mxu1 %vm209_vm5, %v1502_v47  ;;  %v792_v61 = vand.u32 %v784_v58, %v1608_v22  ;;  %v898_v62 = vpop.permute.xlu1 %897 }
  0xa3   : > { %1439 = vmatpush3.bf16.msra.mxu1 %v557_v48  ;;  %1440 = vmatprep.mubr.msk.bf16.mxu1 %vm1519_vm0, %v1518_v5 }
  0xa4   : > { %1360 = vmatmul.mubr.msk.bf16.vlgmr.msra.gmra.mxu0 %vm209_vm5, %v1502_v47  ;;  %1444 = vmatprep.subr.bf16.mxu1 %v1518_v5  ;;  %v777_v59 = vpop.permute.xlu0 %776 }
  0xa5   : > { %574 = vmatpush1.bf16.msra.mxu0 %v551_v51  ;;  %591 = vmatprep.mubr.bf16.mxu0 %v1520_v10  ;;  %v783_v0 = vsel %vm782_vm8, %v777_v59, %v779_v53 }
  0xa6   : > { %692 = vmatprep.subr.bf16.mxu0 %v673_v52  ;;  %v896_v4 = vpop.permute.xlu1 %895  ;;  %v789_v6 = vand.u32 %v783_v0, %v1608_v22 }
  0xa7   : > { %v902_v11 = vsel %vm901_vm9, %v896_v4, %v898_v62 }
  0xa8   : > { %v900_v63 = vpop.permute.xlu0 %899  ;;  %v908_v16 = vand.u32 %v902_v11, %v1608_v22 }
  0xa9   : > { %v903_v3 = vsel %vm901_vm9, %v898_v62, %v900_v63  ;;  %v914_v13 = vand.u32 %v900_v63, %v1608_v22 }
  0xaa   : > { %1441 = vmatmul.mubr.msk.bf16.vlgmr.msra.gmra.mxu1 %vm209_vm5, %v1503_v56  ;;  %v911_v7 = vand.u32 %v903_v3, %v1608_v22  ;;  %v1019_v9 = vpop.permute.xlu1 %1018 }
  0xab   : > { %1445 = vmatpush3.bf16.msra.mxu1 %v676_v57  ;;  %1446 = vmatprep.mubr.msk.bf16.mxu1 %vm1519_vm0, %v1518_v5  ;;  %v1033_v23 = vand.u32 %v1019_v9, %v1608_v22 }
  0xac   : > { %1365 = vmatmul.mubr.msk.bf16.vlgmr.msra.gmra.mxu0 %vm209_vm5, %v1503_v56  ;;  %1450 = vmatprep.subr.bf16.mxu1 %v1518_v5  ;;  %v1017_v8 = vpop.permute.xlu0 %1016 }
  0xad   : > { %693 = vmatpush1.bf16.msra.mxu0 %v670_v60  ;;  %710 = vmatprep.mubr.bf16.mxu0 %v1520_v10  ;;  %v1022_v14 = vsel %vm1020_vm10, %v1017_v8, %v1019_v9 }
  0xae   : > { %811 = vmatprep.subr.bf16.mxu0 %v792_v61  ;;  %v1030_v17 = vand.u32 %v1022_v14, %v1608_v22  ;;  %v1136_v19 = vpop.permute.xlu1 %1135 }
  0xb0   : > { %v1015_v15 = vpop.permute.xlu0 %1014 }
  0xb1   : > { %v1021_v20 = vsel %vm1020_vm10, %v1015_v15, %v1017_v8 }
  0xb2   : > { %1447 = vmatmul.mubr.msk.bf16.vlgmr.msra.gmra.mxu1 %vm209_vm5, %v1504_v1  ;;  %v1027_v25 = vand.u32 %v1021_v20, %v1608_v22  ;;  %v1134_v27 = vpop.permute.xlu1 %1133 }
  0xb3   : > { %1451 = vmatpush3.bf16.msra.mxu1 %v795_v2  ;;  %1452 = vmatprep.mubr.msk.bf16.mxu1 %vm1519_vm0, %v1518_v5  ;;  %v1140_v28 = vsel %vm1139_vm11, %v1134_v27, %v1136_v19 }
  0xb4   : > { %1370 = vmatmul.mubr.msk.bf16.vlgmr.msra.gmra.mxu0 %vm209_vm5, %v1504_v1  ;;  %1456 = vmatprep.subr.bf16.mxu1 %v1518_v5  ;;  %v1138_v18 = vpop.permute.xlu0 %1137  ;;  %v1146_v31 = vand.u32 %v1140_v28, %v1608_v22 }
  0xb5   : > { %812 = vmatpush1.bf16.msra.mxu0 %v789_v6  ;;  %829 = vmatprep.mubr.bf16.mxu0 %v1520_v10  ;;  %v1141_v24 = vsel %vm1139_vm11, %v1136_v19, %v1138_v18  ;;  %v1152_v30 = vand.u32 %v1138_v18, %v1608_v22 }
  0xb6   : > { %930 = vmatprep.subr.bf16.mxu0 %v911_v7  ;;  %v1149_v26 = vand.u32 %v1141_v24, %v1608_v22 }
  0xba   : > { %1453 = vmatmul.mubr.msk.bf16.vlgmr.msra.gmra.mxu1 %vm209_vm5, %v1505_v12 }
  0xbb   : > { %1457 = vmatpush3.bf16.msra.mxu1 %v914_v13  ;;  %1458 = vmatprep.mubr.msk.bf16.mxu1 %vm1519_vm0, %v1518_v5 }
  0xbc   : > { %1375 = vmatmul.mubr.msk.bf16.vlgmr.msra.gmra.mxu0 %vm209_vm5, %v1505_v12  ;;  %1462 = vmatprep.subr.bf16.mxu1 %v1518_v5 }
  0xbd   : > { %931 = vmatpush1.bf16.msra.mxu0 %v908_v16  ;;  %948 = vmatprep.mubr.bf16.mxu0 %v1520_v10 }
  0xbe   : > { %1049 = vmatprep.subr.bf16.mxu0 %v1030_v17 }
  0xc2   : > { %1459 = vmatmul.mubr.msk.bf16.vlgmr.msra.gmra.mxu1 %vm209_vm5, %v1506_v21 }
  0xc3   : > { %1463 = vmatpush3.bf16.msra.mxu1 %v1033_v23  ;;  %1464 = vmatprep.mubr.msk.bf16.mxu1 %vm1519_vm0, %v1518_v5 }
  0xc4   : > { %1380 = vmatmul.mubr.msk.bf16.vlgmr.msra.gmra.mxu0 %vm209_vm5, %v1506_v21  ;;  %1468 = vmatprep.subr.bf16.mxu1 %v1518_v5 }
  0xc5   : > { %1050 = vmatpush1.bf16.msra.mxu0 %v1027_v25  ;;  %1067 = vmatprep.mubr.bf16.mxu0 %v1520_v10 }
  0xc6   : > { %1168 = vmatprep.subr.bf16.mxu0 %v1149_v26 }
  0xca   : > { %1465 = vmatmul.mubr.msk.bf16.vlgmr.msra.gmra.mxu1 %vm209_vm5, %v1507_v29 }
  0xcb   : > { %1469 = vmatpush3.bf16.msra.mxu1 %v1152_v30  ;;  %1470 = vmatprep.mubr.msk.bf16.mxu1 %vm1519_vm0, %v1518_v5 }
  0xcc   : > { %1385 = vmatmul.mubr.msk.bf16.vlgmr.msra.gmra.mxu0 %vm209_vm5, %v1507_v29 }
  0xcd   : > { %1169 = vmatpush1.bf16.msra.mxu0 %v1146_v31  ;;  %1186 = vmatprep.mubr.bf16.mxu0 %v1520_v10 }
  0xd2   : > { %1471 = vmatmul.mubr.msk.bf16.vlgmr.msra.gmra.mxu1 %vm209_vm5, %v1508_v32 }
  0xd4   : > { %1390 = vmatmul.mubr.msk.bf16.vlgmr.msra.gmra.mxu0 %vm209_vm5, %v1508_v32 }
 0x152   : > { %v303_v22 = vpop.f32.mrf.mxu1 }
 0x154   : > { %v260_v33 = vpop.f32.mrf.mxu0  ;;  %v1424_v34 = vpop.f32.mrf.mxu1 }
 0x156   : > { %v262_v35 = vpop.f32.mrf.mxu0  ;;  %v306_v36 = vpop.f32.mrf.mxu1 }
 0x158   : > { %v264_v37 = vpop.f32.mrf.mxu0  ;;  %v1425_v5 = vpop.f32.mrf.mxu1 }
 0x15a   : > { %v266_v38 = vpop.f32.mrf.mxu0  ;;  %v404_v39 = vpop.f32.mrf.mxu1 }
 0x15b   : > { %v405_v19 = vadd.f32 %v404_v39, %v303_v22 }
 0x15c   : > { %v361_v40 = vpop.f32.mrf.mxu0  ;;  %v1430_v41 = vpop.f32.mrf.mxu1 }
 0x15d   : > { %v362_v23 = vadd.f32 %v361_v40, %v260_v33 }
 0x15e   : > { %v363_v10 = vpop.f32.mrf.mxu0  ;;  %v407_v42 = vpop.f32.mrf.mxu1 }
 0x15f   : > { %v364_v27 = vadd.f32 %v363_v10, %v262_v35  ;;  %v408_v28 = vadd.f32 %v407_v42, %v306_v36 }
 0x160   : > { %v365_v43 = vpop.f32.mrf.mxu0  ;;  %v1431_v44 = vpop.f32.mrf.mxu1 }
 0x161   : > { %v366_v31 = vadd.f32 %v365_v43, %v264_v37 }
 0x162   : > { %v367_v45 = vpop.f32.mrf.mxu0  ;;  %v517_v46 = vpop.f32.mrf.mxu1 }
 0x163   : > { %v526_v24 = vadd.f32 %v517_v46, %v405_v19 }
 0x164   : > { %v474_v47 = vpop.f32.mrf.mxu0  ;;  %v1436_v48 = vpop.f32.mrf.mxu1 }
 0x165   : > { %v524_v29 = vadd.f32 %v474_v47, %v362_v23 }
 0x166   : > { %v476_v49 = vpop.f32.mrf.mxu0  ;;  %v520_v50 = vpop.f32.mrf.mxu1 }
 0x167   : > { %v525_v5 = vadd.f32 %v476_v49, %v364_v27  ;;  %v529_v41 = vadd.f32 %v520_v50, %v408_v28 }
 0x168   : > { %v478_v51 = vpop.f32.mrf.mxu0  ;;  %v1437_v52 = vpop.f32.mrf.mxu1 }
 0x169   : > { %v368_v52 = vadd.f32 %v367_v45, %v266_v38 }
 0x16a   : > { %v480_v53 = vpop.f32.mrf.mxu0  ;;  %v636_v54 = vpop.f32.mrf.mxu1 }
 0x16b   : > { %v645_v30 = vadd.f32 %v636_v54, %v526_v24 }
 0x16c   : > { %v593_v55 = vpop.f32.mrf.mxu0  ;;  %v1442_v56 = vpop.f32.mrf.mxu1 }
 0x16d   : > { %v643_v44 = vadd.f32 %v593_v55, %v524_v29  ;;  %v527_v56 = vadd.f32 %v478_v51, %v366_v31 }
 0x16e   : > { %v595_v57 = vpop.f32.mrf.mxu0  ;;  %v639_v58 = vpop.f32.mrf.mxu1 }
 0x16f   : > { %v648_v33 = vadd.f32 %v639_v58, %v529_v41  ;;  %v1249_v58 = vpop.permute.xlu0 %1248 }
 0x170   : > { %v597_v59 = vpop.f32.mrf.mxu0  ;;  %v1443_v60 = vpop.f32.mrf.mxu1 }
 0x171   : > { %v644_v60 = vadd.f32 %v595_v57, %v525_v5  ;;  %v646_v35 = vadd.f32 %v597_v59, %v527_v56 }
 0x172   : > { %v599_v61 = vpop.f32.mrf.mxu0  ;;  %v755_v62 = vpop.f32.mrf.mxu1 }
 0x173   : > { %v764_v48 = vadd.f32 %v755_v62, %v645_v30 }
 0x174   : > { %v712_v63 = vpop.f32.mrf.mxu0  ;;  %v1448_v0 = vpop.f32.mrf.mxu1 }
 0x175   : > { %v762_v40 = vadd.f32 %v712_v63, %v643_v44  ;;  %v528_v0 = vadd.f32 %v480_v53, %v368_v52 }
 0x176   : > { %v714_v1 = vpop.f32.mrf.mxu0  ;;  %v758_v2 = vpop.f32.mrf.mxu1 }
 0x177   : > { %v763_v42 = vadd.f32 %v714_v1, %v644_v60  ;;  %v767_v37 = vadd.f32 %v758_v2, %v648_v33  ;;  %v647_v49 = vadd.f32 %v599_v61, %v528_v0 }
 0x178   : > { %v716_v3 = vpop.f32.mrf.mxu0  ;;  %v1449_v4 = vpop.f32.mrf.mxu1 }
 0x179   : > { %v765_v50 = vadd.f32 %v716_v3, %v646_v35 }
 0x17a   : > { %v718_v6 = vpop.f32.mrf.mxu0  ;;  %v874_v7 = vpop.f32.mrf.mxu1 }
 0x17b   : > { %v883_v46 = vadd.f32 %v874_v7, %v764_v48  ;;  %v766_v62 = vadd.f32 %v718_v6, %v647_v49 }
 0x17c   : > { %v831_v8 = vpop.f32.mrf.mxu0  ;;  %v1454_v9 = vpop.f32.mrf.mxu1 }
 0x17d   : > { %v881_v43 = vadd.f32 %v831_v8, %v762_v40 }
 0x17e   : > { %v833_v11 = vpop.f32.mrf.mxu0  ;;  %v877_v12 = vpop.f32.mrf.mxu1 }
 0x17f   : > { %v882_v45 = vadd.f32 %v833_v11, %v763_v42  ;;  %v886_v51 = vadd.f32 %v877_v12, %v767_v37 }
 0x180   : > { %v835_v13 = vpop.f32.mrf.mxu0  ;;  %v1455_v14 = vpop.f32.mrf.mxu1 }
 0x181   : > { %v884_v63 = vadd.f32 %v835_v13, %v765_v50 }
 0x182   : > { %v837_v15 = vpop.f32.mrf.mxu0  ;;  %v993_v16 = vpop.f32.mrf.mxu1 }
 0x183   : > { %v1002_v47 = vadd.f32 %v993_v16, %v883_v46  ;;  %v885_v8 = vadd.f32 %v837_v15, %v766_v62 }
 0x184   : > { %v950_v17 = vpop.f32.mrf.mxu0  ;;  %v1460_v18 = vpop.f32.mrf.mxu1 }
 0x185   : > { %v1000_v55 = vadd.f32 %v950_v17, %v881_v43  ;;  %v1254_v17 = vpop.permute.xlu1 %1253 }
 0x186   : > { %v952_v20 = vpop.f32.mrf.mxu0  ;;  %v996_v21 = vpop.f32.mrf.mxu1 }
 0x187   : > { %v1001_v4 = vadd.f32 %v952_v20, %v882_v45  ;;  %v1005_v1 = vadd.f32 %v996_v21, %v886_v51 }
 0x188   : > { %v954_v25 = vpop.f32.mrf.mxu0  ;;  %v1461_v26 = vpop.f32.mrf.mxu1 }
 0x189   : > { %v1003_v9 = vadd.f32 %v954_v25, %v884_v63 }
 0x18a   : > { %v956_v32 = vpop.f32.mrf.mxu0  ;;  %v1112_v34 = vpop.f32.mrf.mxu1 }
 0x18b   : > { %v1121_v57 = vadd.f32 %v1112_v34, %v1002_v47  ;;  %v1004_v18 = vadd.f32 %v956_v32, %v885_v8 }
 0x18c   : > { %v1069_v22 = vpop.f32.mrf.mxu0  ;;  %v1466_v39 = vpop.f32.mrf.mxu1 }
 0x18d   : > { %v1119_v2 = vadd.f32 %v1069_v22, %v1000_v55 }
 0x18e   : > { %v1071_v36 = vpop.f32.mrf.mxu0  ;;  %v1115_v10 = vpop.f32.mrf.mxu1 }
 0x18f   : > { %v1120_v14 = vadd.f32 %v1071_v36, %v1001_v4  ;;  %v1124_v16 = vadd.f32 %v1115_v10, %v1005_v1 }
 0x190   : > { %v1073_v54 = vpop.f32.mrf.mxu0  ;;  %v1467_v38 = vpop.f32.mrf.mxu1 }
 0x191   : > { %v1122_v19 = vadd.f32 %v1073_v54, %v1003_v9 }
 0x192   : > { %v1075_v53 = vpop.f32.mrf.mxu0  ;;  %v1231_v59 = vpop.f32.mrf.mxu1 }
 0x193   : > { %v1240_v7 = vadd.f32 %v1231_v59, %v1121_v57  ;;  %v1123_v23 = vadd.f32 %v1075_v53, %v1004_v18 }
 0x194   : > { %v1188_v61 = vpop.f32.mrf.mxu0  ;;  %v1472_v3 = vpop.f32.mrf.mxu1 }
 0x195   : > { %v1238_v11 = vadd.f32 %v1188_v61, %v1119_v2  ;;  %v1258_v12 = vadd.f32 %v1249_v58, %v1240_v7 }
 0x196   : > { %v1190_v6 = vpop.f32.mrf.mxu0  ;;  %v1234_v13 = vpop.f32.mrf.mxu1 }
 0x197   : > { %v1399_v20 = vpack.c.bf16 %v1258_v12, %v1258_v12  ;;  %v1239_v21 = vadd.f32 %v1190_v6, %v1120_v14  ;;  %v1243_v15 = vadd.f32 %v1234_v13, %v1124_v16  ;;  %v1256_v26 = vadd.f32 %v1249_v58, %v1238_v11 }
 0x198   : > { %v1192_v24 = vpop.f32.mrf.mxu0  ;;  %v1473_v25 = vpop.f32.mrf.mxu1 }
 0x199   : > { %1284 = vst.msk [vmem:[%s170_s26 + $0x8] sm:$0xf] %vm1283_vm12, %v1399_v20  ;;  %v1257_v27 = vadd.f32 %v1249_v58, %v1239_v21  ;;  %v1261_v28 = vadd.f32 %v1254_v17, %v1243_v15  ;;  %v1241_v29 = vadd.f32 %v1192_v24, %v1122_v19 }
 0x19a   : > { %v1194_v30 = vpop.f32.mrf.mxu0 }
 0x19b   : > { %v1398_v31 = vpack.c.bf16 %v1257_v27, %v1256_v26  ;;  %v1401_v32 = vpack.c.bf16 %v1261_v28, %v1261_v28  ;;  %v1242_v34 = vadd.f32 %v1194_v30, %v1123_v23  ;;  %v1259_v5 = vadd.f32 %v1254_v17, %v1241_v29 }
 0x19d   : > { %1282 = vst [vmem:[%s170_s26] sm:$0xff] %v1398_v31  ;;  %1286 = vst.msk [vmem:[%s170_s26 + $0x14] sm:$0xf] %vm1283_vm12, %v1401_v32  ;;  %v1260_v41 = vadd.f32 %v1254_v17, %v1242_v34 }
 0x19f   : > { %v1400_v44 = vpack.c.bf16 %v1260_v41, %v1259_v5 }
 0x1a1   : > { %1285 = vst [vmem:[%s170_s26 + $0xc] sm:$0xff] %v1400_v44 }
 0x1a2 PF: > { %s13_s12 = sadd.s32 1, %s1515_s12  }
 0x1a3   : > { %p10_p4 = scmp.ge.s32.totalorder %s13_s12, 4  }
 0x1a5   :  { %12 = sbr.rel (!%p10_p4) target bundleno = 1 (0x1), region = 70 }

// kernel: swift_forward.11
= control target key start
LH: loop header
LB: loop body
LE: loop exit
PB: predicated region body
PF: predicated region fallthrough
CT: control target
= control target key end

     0   :  { %s1628_s24 = smov 0   ;;  %s1778_s0 = inlined_call_operand.vmem [shape: bf16[2,16,342], index: 0, kind: input, shape index: {}]   ;;  %s1779_s1 = inlined_call_operand.vmem [shape: bf16[9,4,16], index: 1, kind: input, shape index: {}]   ;;  %s1780_s2 = inlined_call_operand.vmem [shape: f32[4,1], index: 2, kind: input, shape index: {}]   ;;  %s1781_s3 = inlined_call_operand.vmem [shape: f32[4,1], index: 3, kind: input, shape index: {}]   ;;  %s1782_s4 = inlined_call_operand.vmem [shape: bf16[4,4], index: 4, kind: input, shape index: {}]   ;;  %s1783_s5 = inlined_call_operand.vmem [shape: f32[4,1], index: 5, kind: input, shape index: {}]   ;;  %s1784_s6 = inlined_call_operand.vmem [shape: f32[4,1], index: 6, kind: input, shape index: {}]   ;;  %s1785_s7 = inlined_call_operand.vmem [shape: bf16[2,4,288], index: 7, kind: output, shape index: {}]  }
   0x1 LB: > { %s1418_s25 = sadd.s32 4294967295, %s1574_s24   ;;  %p1422_p0 = scmp.ge.s32.totalorder %s1574_s24, 1  ;;  %s1574_s24 = sphi %s1628_s24, %s17_s24  }
   0x2   : > { %p237_p1 = scmp.lt.s32.totalorder %s1574_s24, 3 }
   0x4   : > { %p238_p2 = pnand %p1422_p0, %p237_p1 }
   0x5   : > { %p269_p3 = scmp.lt.s32.totalorder (!%p238_p2), %s1418_s25, 1  ;;  %s1579_s30 = smov (!%p238_p2), 127  }
   0x6   : > { %241 = sbr.rel (%p238_p2) target bundleno = 619 (0x26b), region = 48  ;;  %s1580_s8 = smov (!%p238_p2), 126  }
   0x7   : > { %s1581_s9 = smov (!%p238_p2), 110   ;;  %s1582_s10 = smov (!%p238_p2), 109  }
   0x8   : > { %s1583_s11 = smov (!%p238_p2), 108   ;;  %s1584_s12 = smov (!%p238_p2), 92  }
   0x9   : > { %s1585_s13 = smov (!%p238_p2), 91   ;;  %s1586_s14 = smov (!%p238_p2), 90  }
   0xb   : > { %v1576_v0 = vmov 0.0   ;;  %s1787_s25 = smov (!%p269_p3, %s1418_s25), 1  ;;  %vm1577_vm0 = vmmov 0   ;;  %v1578_v1 = vmov 0   ;;  %v1191_v5 = vld [vmem:[%s1780_s2] sm:$0xf] }
   0xc   : > { %1480 = vmatprep.subr.bf16.mxu1 %v1576_v0  ;;  %1482 = vmatprep.mubr.msk.bf16.mxu1 %vm1577_vm0, %v1576_v0  ;;  %s1540_s26 = smul.u32 24, %s1787_s25  ;;  %v1203_v6 = vld [vmem:[%s1781_s3] sm:$0xf]  ;;  %vm306_vm1 = vcmask 1039360   ;;  %vm312_vm2 = vcmask 130048   ;;  %vm492_vm3 = vcmask 1031168  }
   0xd   : > { %348 = vmatprep.mubr.bf16.mxu0 %v1578_v1  ;;  %1562 = vset.pattern.permute.xlu0 %v1578_v1  ;;  %v1323_v7 = vld [vmem:[%s1784_s6] sm:$0xf]  ;;  %vm593_vm4 = vcmask 900096   ;;  %v1433_v26 = vld [vmem:[%s1779_s1 + $0x4] sm:$0x3]  ;;  %vm694_vm5 = vcmask 891904  }
   0xe   : > { %1563 = vset.pattern.permute.xlu1 %v1578_v1  ;;  %s273_s29 = scalar_lea.vmem %s1778_s0, %s1540_s26  ;;  %v1219_v8 = vld [vmem:[%s1783_s5] sm:$0xf]  ;;  %v1436_v32 = vld [vmem:[%s1779_s1 + $0x6] sm:$0x3]  ;;  %vm795_vm6 = vcmask 883712   ;;  %vm896_vm7 = vcmask 752640  }
   0xf   : > { %v1564_v2 = vld [vmem:[%s273_s29 + $0x4] ss:$12 sps:$4 sm:$0xff]   ;;  %v1648_v3 = vld [vmem:[%s273_s29] ss:$12 sps:$4 sm:$0xff]   ;;  %v1567_v4 = vld [vmem:[%s273_s29 + $0x8] ss:$12 sps:$4 sm:$0xff]  }
  0x10   : > { %302 = vrot.lane.b32.xlu0 %v1564_v2, %s1579_s30  ;;  %300 = vrot.lane.b32.xlu1 %v1648_v3, %s1579_s30  ;;  %v1425_v13 = vld [vmem:[%s1779_s1 + $0x2] sm:$0x3]  ;;  %v284_v20 = vld [vmem:[%s1779_s1] sm:$0x3]  ;;  %vm997_vm8 = vcmask 744448   ;;  %vm1098_vm9 = vcmask 736256  }
  0x11   : > { %v1439_v38 = vld [vmem:[%s1779_s1 + $0x8] sm:$0x3]  ;;  %v1442_v44 = vld [vmem:[%s1779_s1 + $0xa] sm:$0x3]  ;;  %v1445_v49 = vld [vmem:[%s1779_s1 + $0xc] sm:$0x3] }
  0x12   : > { %v1448_v54 = vld [vmem:[%s1779_s1 + $0xe] sm:$0x3]  ;;  %v1451_v57 = vld [vmem:[%s1779_s1 + $0x10] sm:$0x3]  ;;  %vm1229_vm11 = vcmask 1041408   ;;  %vm1225_vm14 = vcmask 31744  }
  0x13   : > { %s1541_s22 = smul.u32 6, %s1787_s25 }
  0x14   : > { %304 = vrot.lane.b32.xlu0 %v1567_v4, %s1579_s30  ;;  %488 = vrot.lane.b32.xlu1 %v1564_v2, %s1580_s8 }
  0x15   : > { %s278_s27 = scalar_lea.vmem %s1785_s7, %s1541_s22 }
  0x18   : > { %490 = vrot.lane.b32.xlu0 %v1567_v4, %s1580_s8  ;;  %486 = vrot.lane.b32.xlu1 %v1648_v3, %s1580_s8 }
  0x1c   : > { %589 = vrot.lane.b32.xlu0 %v1564_v2, %s1581_s9  ;;  %591 = vrot.lane.b32.xlu1 %v1567_v4, %s1581_s9 }
  0x20   : > { %587 = vrot.lane.b32.xlu0 %v1648_v3, %s1581_s9  ;;  %690 = vrot.lane.b32.xlu1 %v1564_v2, %s1582_s10 }
  0x24   : > { %692 = vrot.lane.b32.xlu0 %v1567_v4, %s1582_s10  ;;  %688 = vrot.lane.b32.xlu1 %v1648_v3, %s1582_s10 }
  0x28   : > { %791 = vrot.lane.b32.xlu0 %v1564_v2, %s1583_s11  ;;  %793 = vrot.lane.b32.xlu1 %v1567_v4, %s1583_s11 }
  0x2c   : > { %789 = vrot.lane.b32.xlu0 %v1648_v3, %s1583_s11  ;;  %892 = vrot.lane.b32.xlu1 %v1564_v2, %s1584_s12 }
  0x30   : > { %894 = vrot.lane.b32.xlu0 %v1567_v4, %s1584_s12  ;;  %890 = vrot.lane.b32.xlu1 %v1648_v3, %s1584_s12 }
  0x34   : > { %993 = vrot.lane.b32.xlu0 %v1564_v2, %s1585_s13  ;;  %995 = vrot.lane.b32.xlu1 %v1567_v4, %s1585_s13 }
  0x38   : > { %991 = vrot.lane.b32.xlu0 %v1648_v3, %s1585_s13  ;;  %1094 = vrot.lane.b32.xlu1 %v1564_v2, %s1586_s14 }
  0x3c   : > { %1096 = vrot.lane.b32.xlu0 %v1567_v4, %s1586_s14  ;;  %1092 = vrot.lane.b32.xlu1 %v1648_v3, %s1586_s14 }
  0x40   : > { %1194 = vperm.xlu0 %1562, %v1191_v5   ;;  %1206 = vperm.xlu1 %1563, %v1203_v6  }
  0x44   : > { %1326 = vperm.xlu0 %1562, %v1323_v7   ;;  %1222 = vperm.xlu1 %1563, %v1219_v8  }
  0x82   : > { %v303_v9 = vpop.permute.xlu0 %302  ;;  %v301_v10 = vpop.permute.xlu1 %300 }
  0x83   : > { %v307_v15 = vsel %vm306_vm1, %v301_v10, %v303_v9 }
  0x86   : > { %v305_v11 = vpop.permute.xlu0 %304  ;;  %v489_v14 = vpop.permute.xlu1 %488 }
  0x87   : > { %1481 = vmatpush3.bf16.msra.mxu1 %v305_v11  ;;  %v308_v12 = vsel %vm306_vm1, %v303_v9, %v305_v11  ;;  %vm1358_vm1 = vcmask 1043458  }
  0x88   : > { %330 = vmatprep.subr.bf16.mxu0 %v308_v12  ;;  %1486 = vmatprep.subr.bf16.mxu1 %v1576_v0 }
  0x89   : > { %331 = vmatpush1.bf16.msra.mxu0 %v307_v15 }
  0x8a   : > { %1483 = vmatmul.mubr.msk.bf16.vlgmr.msra.gmra.mxu1 %vm312_vm2, %v1425_v13  ;;  %417 = vmatprep.subr.bf16.mxu0 %v1564_v2  ;;  %v491_v16 = vpop.permute.xlu0 %490  ;;  %v487_v18 = vpop.permute.xlu1 %486 }
  0x8b   : > { %1487 = vmatpush3.bf16.msra.mxu1 %v1567_v4  ;;  %1488 = vmatprep.mubr.msk.bf16.mxu1 %vm1577_vm0, %v1576_v0  ;;  %v494_v17 = vsel %vm492_vm3, %v489_v14, %v491_v16  ;;  %v493_v22 = vsel %vm492_vm3, %v487_v18, %v489_v14  ;;  %vm1359_vm3 = vmor %vm1358_vm1, %vm1229_vm11 }
  0x8c   : > { %1429 = vmatmul.mubr.msk.bf16.vlgmr.msra.gmra.mxu0 %vm312_vm2, %v1425_v13  ;;  %1492 = vmatprep.subr.bf16.mxu1 %v1576_v0 }
  0x8d   : > { %418 = vmatpush1.bf16.msra.mxu0 %v1648_v3  ;;  %435 = vmatprep.mubr.bf16.mxu0 %v1578_v1 }
  0x8e   : > { %515 = vmatprep.subr.bf16.mxu0 %v494_v17  ;;  %v590_v19 = vpop.permute.xlu0 %589  ;;  %v592_v21 = vpop.permute.xlu1 %591 }
  0x8f   : > { %v595_v23 = vsel %vm593_vm4, %v590_v19, %v592_v21 }
  0x92   : > { %1489 = vmatmul.mubr.msk.bf16.vlgmr.msra.gmra.mxu1 %vm312_vm2, %v284_v20  ;;  %v588_v24 = vpop.permute.xlu0 %587  ;;  %v691_v25 = vpop.permute.xlu1 %690 }
  0x93   : > { %1493 = vmatpush3.bf16.msra.mxu1 %v491_v16  ;;  %1494 = vmatprep.mubr.msk.bf16.mxu1 %vm1577_vm0, %v1576_v0  ;;  %v594_v28 = vsel %vm593_vm4, %v588_v24, %v590_v19  ;;  %vm1360_vm4 = vcmask 259076  }
  0x94   : > { %1431 = vmatmul.mubr.msk.bf16.vlgmr.msra.gmra.mxu0 %vm312_vm2, %v284_v20  ;;  %1498 = vmatprep.subr.bf16.mxu1 %v1576_v0 }
  0x95   : > { %516 = vmatpush1.bf16.msra.mxu0 %v493_v22  ;;  %533 = vmatprep.mubr.bf16.mxu0 %v1578_v1 }
  0x96   : > { %616 = vmatprep.subr.bf16.mxu0 %v595_v23  ;;  %v693_v27 = vpop.permute.xlu0 %692  ;;  %v689_v30 = vpop.permute.xlu1 %688 }
  0x97   : > { %v696_v29 = vsel %vm694_vm5, %v691_v25, %v693_v27  ;;  %v695_v34 = vsel %vm694_vm5, %v689_v30, %v691_v25  ;;  %vm1361_vm5 = vmor %vm1360_vm4, %vm1359_vm3 }
  0x9a   : > { %1495 = vmatmul.mubr.msk.bf16.vlgmr.msra.gmra.mxu1 %vm312_vm2, %v1433_v26  ;;  %v792_v31 = vpop.permute.xlu0 %791  ;;  %v794_v33 = vpop.permute.xlu1 %793 }
  0x9b   : > { %1499 = vmatpush3.bf16.msra.mxu1 %v592_v21  ;;  %1500 = vmatprep.mubr.msk.bf16.mxu1 %vm1577_vm0, %v1576_v0  ;;  %v797_v35 = vsel %vm795_vm6, %v792_v31, %v794_v33 }
  0x9c   : > { %1434 = vmatmul.mubr.msk.bf16.vlgmr.msra.gmra.mxu0 %vm312_vm2, %v1433_v26  ;;  %1504 = vmatprep.subr.bf16.mxu1 %v1576_v0 }
  0x9d   : > { %617 = vmatpush1.bf16.msra.mxu0 %v594_v28  ;;  %634 = vmatprep.mubr.bf16.mxu0 %v1578_v1 }
  0x9e   : > { %717 = vmatprep.subr.bf16.mxu0 %v696_v29  ;;  %v790_v36 = vpop.permute.xlu0 %789  ;;  %v893_v37 = vpop.permute.xlu1 %892 }
  0x9f   : > { %v796_v40 = vsel %vm795_vm6, %v790_v36, %v792_v31 }
  0xa2   : > { %1501 = vmatmul.mubr.msk.bf16.vlgmr.msra.gmra.mxu1 %vm312_vm2, %v1436_v32  ;;  %v895_v39 = vpop.permute.xlu0 %894  ;;  %v891_v42 = vpop.permute.xlu1 %890 }
  0xa3   : > { %1505 = vmatpush3.bf16.msra.mxu1 %v693_v27  ;;  %1506 = vmatprep.mubr.msk.bf16.mxu1 %vm1577_vm0, %v1576_v0  ;;  %v898_v41 = vsel %vm896_vm7, %v893_v37, %v895_v39  ;;  %v897_v46 = vsel %vm896_vm7, %v891_v42, %v893_v37 }
  0xa4   : > { %1437 = vmatmul.mubr.msk.bf16.vlgmr.msra.gmra.mxu0 %vm312_vm2, %v1436_v32  ;;  %1510 = vmatprep.subr.bf16.mxu1 %v1576_v0 }
  0xa5   : > { %718 = vmatpush1.bf16.msra.mxu0 %v695_v34  ;;  %735 = vmatprep.mubr.bf16.mxu0 %v1578_v1 }
  0xa6   : > { %818 = vmatprep.subr.bf16.mxu0 %v797_v35  ;;  %v994_v43 = vpop.permute.xlu0 %993  ;;  %v996_v45 = vpop.permute.xlu1 %995 }
  0xa7   : > { %v999_v47 = vsel %vm997_vm8, %v994_v43, %v996_v45 }
  0xaa   : > { %1507 = vmatmul.mubr.msk.bf16.vlgmr.msra.gmra.mxu1 %vm312_vm2, %v1439_v38  ;;  %v992_v48 = vpop.permute.xlu0 %991  ;;  %v1095_v51 = vpop.permute.xlu1 %1094 }
  0xab   : > { %1511 = vmatpush3.bf16.msra.mxu1 %v794_v33  ;;  %1512 = vmatprep.mubr.msk.bf16.mxu1 %vm1577_vm0, %v1576_v0  ;;  %v998_v52 = vsel %vm997_vm8, %v992_v48, %v994_v43 }
  0xac   : > { %1440 = vmatmul.mubr.msk.bf16.vlgmr.msra.gmra.mxu0 %vm312_vm2, %v1439_v38  ;;  %1516 = vmatprep.subr.bf16.mxu1 %v1576_v0 }
  0xad   : > { %819 = vmatpush1.bf16.msra.mxu0 %v796_v40  ;;  %836 = vmatprep.mubr.bf16.mxu0 %v1578_v1 }
  0xae   : > { %919 = vmatprep.subr.bf16.mxu0 %v898_v41  ;;  %v1097_v50 = vpop.permute.xlu0 %1096  ;;  %v1093_v55 = vpop.permute.xlu1 %1092 }
  0xaf   : > { %v1100_v53 = vsel %vm1098_vm9, %v1095_v51, %v1097_v50  ;;  %v1099_v56 = vsel %vm1098_vm9, %v1093_v55, %v1095_v51 }
  0xb2   : > { %1513 = vmatmul.mubr.msk.bf16.vlgmr.msra.gmra.mxu1 %vm312_vm2, %v1442_v44 }
  0xb3   : > { %1517 = vmatpush3.bf16.msra.mxu1 %v895_v39  ;;  %1518 = vmatprep.mubr.msk.bf16.mxu1 %vm1577_vm0, %v1576_v0 }
  0xb4   : > { %1443 = vmatmul.mubr.msk.bf16.vlgmr.msra.gmra.mxu0 %vm312_vm2, %v1442_v44  ;;  %1522 = vmatprep.subr.bf16.mxu1 %v1576_v0 }
  0xb5   : > { %920 = vmatpush1.bf16.msra.mxu0 %v897_v46  ;;  %937 = vmatprep.mubr.bf16.mxu0 %v1578_v1 }
  0xb6   : > { %1020 = vmatprep.subr.bf16.mxu0 %v999_v47 }
  0xba   : > { %1519 = vmatmul.mubr.msk.bf16.vlgmr.msra.gmra.mxu1 %vm312_vm2, %v1445_v49 }
  0xbb   : > { %1523 = vmatpush3.bf16.msra.mxu1 %v996_v45  ;;  %1524 = vmatprep.mubr.msk.bf16.mxu1 %vm1577_vm0, %v1576_v0 }
  0xbc   : > { %1446 = vmatmul.mubr.msk.bf16.vlgmr.msra.gmra.mxu0 %vm312_vm2, %v1445_v49  ;;  %1528 = vmatprep.subr.bf16.mxu1 %v1576_v0 }
  0xbd   : > { %1021 = vmatpush1.bf16.msra.mxu0 %v998_v52  ;;  %1038 = vmatprep.mubr.bf16.mxu0 %v1578_v1 }
  0xbe   : > { %1121 = vmatprep.subr.bf16.mxu0 %v1100_v53 }
  0xc2   : > { %1525 = vmatmul.mubr.msk.bf16.vlgmr.msra.gmra.mxu1 %vm312_vm2, %v1448_v54 }
  0xc3   : > { %1529 = vmatpush3.bf16.msra.mxu1 %v1097_v50  ;;  %1530 = vmatprep.mubr.msk.bf16.mxu1 %vm1577_vm0, %v1576_v0 }
  0xc4   : > { %1449 = vmatmul.mubr.msk.bf16.vlgmr.msra.gmra.mxu0 %vm312_vm2, %v1448_v54  ;;  %1534 = vmatprep.subr.bf16.mxu1 %v1576_v0 }
  0xc5   : > { %1122 = vmatpush1.bf16.msra.mxu0 %v1099_v56  ;;  %1139 = vmatprep.mubr.bf16.mxu0 %v1578_v1 }
  0xca   : > { %1531 = vmatmul.mubr.msk.bf16.vlgmr.msra.gmra.mxu1 %vm312_vm2, %v1451_v57 }
  0xcb   : > { %1536 = vmatprep.mubr.msk.bf16.mxu1 %vm1577_vm0, %v1576_v0 }
  0xcc   : > { %1452 = vmatmul.mubr.msk.bf16.vlgmr.msra.gmra.mxu0 %vm312_vm2, %v1451_v57 }
  0xcd   : > { %1271 = vmatprep.mubr.bf16.mxu0 %v1578_v1 }
 0x14a   : > { %v391_v58 = vpop.f32.mrf.mxu1 }
 0x14c   : > { %v350_v59 = vpop.f32.mrf.mxu0  ;;  %v1484_v60 = vpop.f32.mrf.mxu1 }
 0x14e   : > { %v352_v61 = vpop.f32.mrf.mxu0  ;;  %v394_v62 = vpop.f32.mrf.mxu1 }
 0x150   : > { %v354_v63 = vpop.f32.mrf.mxu0  ;;  %v1485_v2 = vpop.f32.mrf.mxu1 }
 0x152   : > { %v355_v3 = vpop.f32.mrf.mxu0  ;;  %v478_v4 = vpop.f32.mrf.mxu1 }
 0x153   : > { %v479_v45 = vadd.f32 %v478_v4, %v391_v58 }
 0x154   : > { %v437_v5 = vpop.f32.mrf.mxu0  ;;  %v1490_v6 = vpop.f32.mrf.mxu1 }
 0x155   : > { %v438_v48 = vadd.f32 %v437_v5, %v350_v59 }
 0x156   : > { %v439_v7 = vpop.f32.mrf.mxu0  ;;  %v481_v8 = vpop.f32.mrf.mxu1 }
 0x157   : > { %v440_v52 = vadd.f32 %v439_v7, %v352_v61 }
 0x158   : > { %v441_v9 = vpop.f32.mrf.mxu0  ;;  %v1491_v10 = vpop.f32.mrf.mxu1 }
 0x15a   : > { %v442_v0 = vpop.f32.mrf.mxu0  ;;  %v576_v11 = vpop.f32.mrf.mxu1 }
 0x15b   : > { %v584_v49 = vadd.f32 %v576_v11, %v479_v45 }
 0x15c   : > { %v535_v12 = vpop.f32.mrf.mxu0  ;;  %v1496_v13 = vpop.f32.mrf.mxu1 }
 0x15d   : > { %v582_v53 = vadd.f32 %v535_v12, %v438_v48  ;;  %v1195_v12 = vpop.permute.xlu0 %1194 }
 0x15e   : > { %v537_v1 = vpop.f32.mrf.mxu0  ;;  %v579_v14 = vpop.f32.mrf.mxu1 }
 0x15f   : > { %v583_v57 = vadd.f32 %v537_v1, %v440_v52 }
 0x160   : > { %v539_v15 = vpop.f32.mrf.mxu0  ;;  %v1497_v16 = vpop.f32.mrf.mxu1 }
 0x162   : > { %v540_v17 = vpop.f32.mrf.mxu0  ;;  %v677_v18 = vpop.f32.mrf.mxu1 }
 0x163   : > { %v685_v54 = vadd.f32 %v677_v18, %v584_v49  ;;  %v1207_v17 = vpop.permute.xlu1 %1206  ;;  %v1345_v49 = vlaneseq }
 0x164   : > { %v636_v19 = vpop.f32.mrf.mxu0  ;;  %v1502_v20 = vpop.f32.mrf.mxu1 }
 0x165   : > { %v683_v60 = vadd.f32 %v636_v19, %v582_v53 }
 0x166   : > { %v638_v21 = vpop.f32.mrf.mxu0  ;;  %v680_v22 = vpop.f32.mrf.mxu1 }
 0x167   : > { %v684_v3 = vadd.f32 %v638_v21, %v583_v57 }
 0x168   : > { %v640_v23 = vpop.f32.mrf.mxu0  ;;  %v1503_v24 = vpop.f32.mrf.mxu1 }
 0x16a   : > { %v641_v25 = vpop.f32.mrf.mxu0  ;;  %v778_v26 = vpop.f32.mrf.mxu1 }
 0x16b   : > { %v786_v62 = vadd.f32 %v778_v26, %v685_v54 }
 0x16c   : > { %v737_v27 = vpop.f32.mrf.mxu0  ;;  %v1508_v28 = vpop.f32.mrf.mxu1 }
 0x16d   : > { %v784_v6 = vadd.f32 %v737_v27, %v683_v60 }
 0x16e   : > { %v739_v29 = vpop.f32.mrf.mxu0  ;;  %v781_v30 = vpop.f32.mrf.mxu1 }
 0x16f   : > { %v785_v9 = vadd.f32 %v739_v29, %v684_v3 }
 0x170   : > { %v741_v31 = vpop.f32.mrf.mxu0  ;;  %v1509_v32 = vpop.f32.mrf.mxu1 }
 0x172   : > { %v742_v33 = vpop.f32.mrf.mxu0  ;;  %v879_v34 = vpop.f32.mrf.mxu1 }
 0x173   : > { %v887_v8 = vadd.f32 %v879_v34, %v786_v62 }
 0x174   : > { %v838_v35 = vpop.f32.mrf.mxu0  ;;  %v1514_v36 = vpop.f32.mrf.mxu1 }
 0x175   : > { %v885_v59 = vadd.f32 %v838_v35, %v784_v6 }
 0x176   : > { %v840_v37 = vpop.f32.mrf.mxu0  ;;  %v882_v38 = vpop.f32.mrf.mxu1 }
 0x177   : > { %v886_v61 = vadd.f32 %v840_v37, %v785_v9 }
 0x178   : > { %v842_v39 = vpop.f32.mrf.mxu0  ;;  %v1515_v40 = vpop.f32.mrf.mxu1 }
 0x179   : > { %v1215_v40 = vld [vmem:[%s1782_s4] sm:$0x3] }
 0x17a   : > { %v843_v41 = vpop.f32.mrf.mxu0  ;;  %v980_v42 = vpop.f32.mrf.mxu1 }
 0x17b   : > { %v988_v5 = vadd.f32 %v980_v42, %v887_v8 }
 0x17c   : > { %v939_v43 = vpop.f32.mrf.mxu0  ;;  %v1520_v44 = vpop.f32.mrf.mxu1 }
 0x17d   : > { %v986_v7 = vadd.f32 %v939_v43, %v885_v59  ;;  %v1223_v43 = vpop.permute.xlu1 %1222 }
 0x17e   : > { %v941_v46 = vpop.f32.mrf.mxu0  ;;  %v983_v47 = vpop.f32.mrf.mxu1 }
 0x17f   : > { %v987_v14 = vadd.f32 %v941_v46, %v886_v61  ;;  %v1327_v46 = vpop.permute.xlu0 %1326  ;;  %v1587_v47 = vmov 1983009808  }
 0x180   : > { %v943_v50 = vpop.f32.mrf.mxu0  ;;  %v1521_v51 = vpop.f32.mrf.mxu1  ;;  %v1343_v48 = vunpack.c.l.s4 %v1587_v47 }
 0x182   : > { %v944_v55 = vpop.f32.mrf.mxu0  ;;  %v1081_v56 = vpop.f32.mrf.mxu1 }
 0x183   : > { %v1089_v11 = vadd.f32 %v1081_v56, %v988_v5  ;;  %v1344_v55 = vunpack.c.0.s8 %v1343_v48  ;;  %v1346_v56 = vshrl.u32 %v1345_v49, 7 }
 0x184   : > { %v1040_v63 = vpop.f32.mrf.mxu0  ;;  %v1526_v2 = vpop.f32.mrf.mxu1 }
 0x185   : > { %v1087_v15 = vadd.f32 %v1040_v63, %v986_v7 }
 0x186   : > { %v1042_v58 = vpop.f32.mrf.mxu0  ;;  %v1084_v4 = vpop.f32.mrf.mxu1 }
 0x187   : > { %v1088_v20 = vadd.f32 %v1042_v58, %v987_v14  ;;  %v1347_v58 = vsub.s32 %v1344_v55, %v1346_v56 }
 0x188   : > { %v1044_v10 = vpop.f32.mrf.mxu0  ;;  %v1527_v0 = vpop.f32.mrf.mxu1 }
 0x18a   : > { %v1045_v13 = vpop.f32.mrf.mxu0  ;;  %v1182_v1 = vpop.f32.mrf.mxu1 }
 0x18b   : > { %v1190_v16 = vadd.f32 %v1182_v1, %v1089_v11 }
 0x18c   : > { %v1141_v18 = vpop.f32.mrf.mxu0  ;;  %v1532_v19 = vpop.f32.mrf.mxu1 }
 0x18d   : > { %v1199_v21 = vadd.f32 %v1195_v12, %v1190_v16  ;;  %v1188_v22 = vadd.f32 %v1141_v18, %v1087_v15 }
 0x18e   : > { %v1143_v23 = vpop.f32.mrf.mxu0  ;;  %v1185_v24 = vpop.f32.mrf.mxu1 }
 0x18f   : > { %v1197_v25 = vadd.f32 %v1195_v12, %v1188_v22  ;;  %v1189_v26 = vadd.f32 %v1143_v23, %v1088_v20  ;;  %v1211_v27 = vmul.f32 %v1207_v17, %v1199_v21  ;;  %vm1202_vm10 = vcmp.ge.f32.partialorder %v1199_v21, 0.0 }
 0x190   : > { %v1145_v28 = vpop.f32.mrf.mxu0  ;;  %v1533_v29 = vpop.f32.mrf.mxu1 }
 0x191   : > { %vm1200_vm12 = vcmp.ge.f32.partialorder %v1197_v25, 0.0  ;;  %v1198_v30 = vadd.f32 %v1195_v12, %v1189_v26  ;;  %v1209_v31 = vmul.f32 %v1207_v17, %v1197_v25  ;;  %v1214_v32 = vsel %vm1202_vm10, %v1199_v21, %v1211_v27 }
 0x192   : > { %v1146_v33 = vpop.f32.mrf.mxu0  ;;  %v1218_v34 = vpack.c.bf16 %v1214_v32, %v1214_v32 }
 0x193   : > { %vm1201_vm13 = vcmp.ge.f32.partialorder %v1198_v30, 0.0  ;;  %v1210_v35 = vmul.f32 %v1207_v17, %v1198_v30  ;;  %v1212_v36 = vsel %vm1200_vm12, %v1197_v25, %v1209_v31 }
 0x194   : > { %v1237_v37 = vsel %vm1229_vm11, %v1218_v34, 0  ;;  %v1216_v38 = vpack.c.bf16 %v1212_v36, %v1212_v36 }
 0x195   : > { %1535 = vmatpush3.bf16.msra.mxu1 %v1237_v37  ;;  %v1213_v39 = vsel %vm1201_vm13, %v1198_v30, %v1210_v35 }
 0x196   : > { %v1217_v41 = vpack.c.bf16 %v1213_v39, %v1213_v39  ;;  %v1231_v42 = vsel %vm1229_vm11, %v1216_v38, 0 }
 0x198   : > { %1454 = vmatprep.subr.msk.bf16.mxu0 %vm1229_vm11, %v1217_v41  ;;  %1537 = vmatmul.mubr.msk.bf16.vlgmr.msra.gmra.mxu1 %vm1225_vm14, %v1215_v40 }
 0x199   : > { %1254 = vmatpush1.bf16.msra.mxu0 %v1231_v42 }
 0x19c   : > { %1455 = vmatmul.mubr.msk.bf16.vlgmr.msra.gmra.mxu0 %vm1225_vm14, %v1215_v40 }
 0x258   : > { %v1314_v44 = vpop.f32.mrf.mxu1 }
 0x259   : > { %v1315_v45 = vadd.f32 %v1314_v44, %v1223_v43 }
 0x25a   : > { %v1538_v50 = vpop.f32.mrf.mxu1 }
 0x25b   : > { %v1331_v51 = vmul.f32 %v1327_v46, %v1315_v45  ;;  %vm1322_vm15 = vcmp.ge.f32.partialorder %v1315_v45, 0.0 }
 0x25c   : > { %v1273_v52 = vpop.f32.mrf.mxu0  ;;  %v1317_v53 = vpop.f32.mrf.mxu1 }
 0x25d   : > { %v1274_v54 = vadd.f32 %v1273_v52, %v1223_v43  ;;  %v1334_v62 = vsel %vm1322_vm15, %v1315_v45, %v1331_v51 }
 0x25e   : > { %v1275_v57 = vpop.f32.mrf.mxu0  ;;  %v1539_v60 = vpop.f32.mrf.mxu1  ;;  %v1337_v8 = vpack.c.bf16 %v1334_v62, %v1334_v62 }
 0x25f   : > { %v1329_v63 = vmul.f32 %v1327_v46, %v1274_v54  ;;  %v1276_v2 = vadd.f32 %v1275_v57, %v1223_v43  ;;  %vm1320_vm0 = vcmp.ge.f32.partialorder %v1274_v54, 0.0 }
 0x260   : > { %v1277_v3 = vpop.f32.mrf.mxu0  ;;  %v1355_v10 = vrot.slane %v1337_v8, %v1347_v58 }
 0x261   : > { %vm1321_vm2 = vcmp.ge.f32.partialorder %v1276_v2, 0.0  ;;  %v1330_v6 = vmul.f32 %v1327_v46, %v1276_v2  ;;  %v1332_v9 = vsel %vm1320_vm0, %v1274_v54, %v1329_v63 }
 0x262   : > { %v1278_v4 = vpop.f32.mrf.mxu0 }
 0x263   : > { %v1333_v59 = vsel %vm1321_vm2, %v1276_v2, %v1330_v6 }
 0x264   : > { %v1457_v5 = vpack.c.bf16 %v1333_v59, %v1332_v9 }
 0x266   : > { %v1348_v0 = vrot.slane %v1457_v5, %v1347_v58 }
 0x268   : > { %v1356_v61 = vcombine.low %v1348_v0, %v1355_v10 }
 0x26a   : > { %1362 = vst.msk [vmem:[%s278_s27] sm:$0x3f] %vm1361_vm5, %v1356_v61 }
 0x26b PF: > { %s17_s24 = sadd.s32 1, %s1574_s24  }
 0x26c   : > { %p14_p4 = scmp.ge.s32.totalorder %s17_s24, 4  }
 0x26e   :  { %16 = sbr.rel (!%p14_p4) target bundleno = 1 (0x1), region = 86 }

// kernel: swift_forward.17
= control target key start
LH: loop header
LB: loop body
LE: loop exit
PB: predicated region body
PF: predicated region fallthrough
CT: control target
= control target key end

     0   :  { %s1492_s12 = smov 0   ;;  %s1619_s0 = inlined_call_operand.vmem [shape: bf16[2,16,342], index: 0, kind: input, shape index: {}]   ;;  %s1620_s1 = inlined_call_operand.vmem [shape: bf16[9,16,16], index: 1, kind: input, shape index: {}]   ;;  %s1621_s2 = inlined_call_operand.vmem [shape: f32[16,1], index: 2, kind: input, shape index: {}]   ;;  %s1622_s3 = inlined_call_operand.vmem [shape: bf16[2,16,288], index: 3, kind: output, shape index: {}]  }
   0x1 LB: > { %s1283_s13 = sadd.s32 4294967295, %s1459_s12   ;;  %p1287_p0 = scmp.ge.s32.totalorder %s1459_s12, 1  ;;  %s1459_s12 = sphi %s1492_s12, %s13_s12  }
   0x2   : > { %p137_p1 = scmp.lt.s32.totalorder %s1459_s12, 3 }
   0x4   : > { %p138_p2 = pnand %p1287_p0, %p137_p1 }
   0x5   : > { %p161_p3 = scmp.lt.s32.totalorder (!%p138_p2), %s1283_s13, 1  ;;  %s1464_s18 = smov (!%p138_p2), 127  }
   0x6   : > { %141 = sbr.rel (%p138_p2) target bundleno = 410 (0x19a), region = 32  ;;  %s1465_s19 = smov (!%p138_p2), 126  }
   0x7   : > { %s1466_s20 = smov (!%p138_p2), 110   ;;  %s1467_s21 = smov (!%p138_p2), 109  }
   0x8   : > { %s1468_s22 = smov (!%p138_p2), 108   ;;  %s1469_s23 = smov (!%p138_p2), 92  }
   0x9   : > { %s1470_s24 = smov (!%p138_p2), 91   ;;  %s1471_s25 = smov (!%p138_p2), 90  }
   0xb   : > { %v1461_v0 = vmov 0.0   ;;  %s1624_s13 = smov (!%p161_p3, %s1283_s13), 1  ;;  %vm1462_vm0 = vmmov 0   ;;  %v1463_v1 = vmov 0   ;;  %v1185_v5 = vld [vmem:[%s1621_s2] sm:$0xff]  ;;  %v1186_v6 = vld [vmem:[%s1621_s2 + $0x8] sm:$0xff] }
   0xc   : > { %1364 = vmatprep.subr.bf16.mxu1 %v1461_v0  ;;  %1366 = vmatprep.mubr.msk.bf16.mxu1 %vm1462_vm0, %v1461_v0  ;;  %s1418_s14 = smul.u32 24, %s1624_s13  ;;  %vm205_vm1 = vcmask 1039360   ;;  %v1444_v10 = vld [vmem:[%s1620_s1 + $0x8] sm:$0xff]   ;;  %vm211_vm2 = vcmask 130048   ;;  %vm408_vm3 = vcmask 1031168   ;;  %v1445_v17 = vld [vmem:[%s1620_s1] sm:$0xff]  }
   0xd   : > { %247 = vmatprep.mubr.bf16.mxu0 %v1463_v1  ;;  %1438 = vset.pattern.permute.xlu0 %v1463_v1  ;;  %vm521_vm4 = vcmask 900096   ;;  %v1446_v23 = vld [vmem:[%s1620_s1 + $0x10] sm:$0xff]   ;;  %vm634_vm5 = vcmask 891904   ;;  %v1447_v29 = vld [vmem:[%s1620_s1 + $0x18] sm:$0xff]   ;;  %vm747_vm6 = vcmask 883712   ;;  %v1448_v35 = vld [vmem:[%s1620_s1 + $0x20] sm:$0xff]  }
   0xe   : > { %1439 = vset.pattern.permute.xlu1 %v1463_v1  ;;  %s165_s17 = scalar_lea.vmem %s1619_s0, %s1418_s14  ;;  %vm860_vm7 = vcmask 752640   ;;  %v1449_v41 = vld [vmem:[%s1620_s1 + $0x28] sm:$0xff]   ;;  %vm973_vm8 = vcmask 744448   ;;  %v1450_v47 = vld [vmem:[%s1620_s1 + $0x30] sm:$0xff]   ;;  %vm1086_vm9 = vcmask 736256   ;;  %v1451_v52 = vld [vmem:[%s1620_s1 + $0x38] sm:$0xff]   ;;  %s170_s26 = scalar_lea.vmem %s1622_s3, %s1418_s14 }
   0xf   : > { %v1440_v2 = vld [vmem:[%s165_s17 + $0x4] ss:$12 sps:$4 sm:$0xff]   ;;  %v1442_v3 = vld [vmem:[%s165_s17] ss:$12 sps:$4 sm:$0xff]   ;;  %v1443_v4 = vld [vmem:[%s165_s17 + $0x8] ss:$12 sps:$4 sm:$0xff]  }
  0x10   : > { %201 = vrot.lane.b32.xlu0 %v1440_v2, %s1464_s18  ;;  %199 = vrot.lane.b32.xlu1 %v1442_v3, %s1464_s18  ;;  %v1452_v55 = vld [vmem:[%s1620_s1 + $0x40] sm:$0xff]   ;;  %vm1224_vm10 = vcmask 257024  }
  0x14   : > { %203 = vrot.lane.b32.xlu0 %v1443_v4, %s1464_s18  ;;  %404 = vrot.lane.b32.xlu1 %v1440_v2, %s1465_s19 }
  0x18   : > { %406 = vrot.lane.b32.xlu0 %v1443_v4, %s1465_s19  ;;  %402 = vrot.lane.b32.xlu1 %v1442_v3, %s1465_s19 }
  0x1c   : > { %517 = vrot.lane.b32.xlu0 %v1440_v2, %s1466_s20  ;;  %519 = vrot.lane.b32.xlu1 %v1443_v4, %s1466_s20 }
  0x20   : > { %515 = vrot.lane.b32.xlu0 %v1442_v3, %s1466_s20  ;;  %630 = vrot.lane.b32.xlu1 %v1440_v2, %s1467_s21 }
  0x24   : > { %632 = vrot.lane.b32.xlu0 %v1443_v4, %s1467_s21  ;;  %628 = vrot.lane.b32.xlu1 %v1442_v3, %s1467_s21 }
  0x28   : > { %743 = vrot.lane.b32.xlu0 %v1440_v2, %s1468_s22  ;;  %745 = vrot.lane.b32.xlu1 %v1443_v4, %s1468_s22 }
  0x2c   : > { %741 = vrot.lane.b32.xlu0 %v1442_v3, %s1468_s22  ;;  %856 = vrot.lane.b32.xlu1 %v1440_v2, %s1469_s23 }
  0x30   : > { %858 = vrot.lane.b32.xlu0 %v1443_v4, %s1469_s23  ;;  %854 = vrot.lane.b32.xlu1 %v1442_v3, %s1469_s23 }
  0x34   : > { %969 = vrot.lane.b32.xlu0 %v1440_v2, %s1470_s24  ;;  %971 = vrot.lane.b32.xlu1 %v1443_v4, %s1470_s24 }
  0x38   : > { %967 = vrot.lane.b32.xlu0 %v1442_v3, %s1470_s24  ;;  %1082 = vrot.lane.b32.xlu1 %v1440_v2, %s1471_s25 }
  0x3c   : > { %1084 = vrot.lane.b32.xlu0 %v1443_v4, %s1471_s25  ;;  %1080 = vrot.lane.b32.xlu1 %v1442_v3, %s1471_s25 }
  0x40   : > { %1189 = vperm.xlu0 %1438, %v1185_v5   ;;  %1194 = vperm.xlu1 %1439, %v1186_v6  }
  0x82   : > { %v202_v7 = vpop.permute.xlu0 %201  ;;  %v200_v8 = vpop.permute.xlu1 %199 }
  0x83   : > { %v206_v13 = vsel %vm205_vm1, %v200_v8, %v202_v7 }
  0x86   : > { %v204_v9 = vpop.permute.xlu0 %203  ;;  %v405_v12 = vpop.permute.xlu1 %404 }
  0x87   : > { %1365 = vmatpush3.bf16.msra.mxu1 %v204_v9  ;;  %v207_v11 = vsel %vm205_vm1, %v202_v7, %v204_v9 }
  0x88   : > { %229 = vmatprep.subr.bf16.mxu0 %v207_v11  ;;  %1370 = vmatprep.subr.bf16.mxu1 %v1461_v0 }
  0x89   : > { %230 = vmatpush1.bf16.msra.mxu0 %v206_v13 }
  0x8a   : > { %1367 = vmatmul.mubr.msk.bf16.vlgmr.msra.gmra.mxu1 %vm211_vm2, %v1444_v10  ;;  %324 = vmatprep.subr.bf16.mxu0 %v1440_v2  ;;  %v407_v14 = vpop.permute.xlu0 %406  ;;  %v403_v16 = vpop.permute.xlu1 %402 }
  0x8b   : > { %1371 = vmatpush3.bf16.msra.mxu1 %v1443_v4  ;;  %1372 = vmatprep.mubr.msk.bf16.mxu1 %vm1462_vm0, %v1461_v0  ;;  %v410_v15 = vsel %vm408_vm3, %v405_v12, %v407_v14  ;;  %v409_v20 = vsel %vm408_vm3, %v403_v16, %v405_v12 }
  0x8c   : > { %1296 = vmatmul.mubr.msk.bf16.vlgmr.msra.gmra.mxu0 %vm211_vm2, %v1444_v10  ;;  %1376 = vmatprep.subr.bf16.mxu1 %v1461_v0 }
  0x8d   : > { %325 = vmatpush1.bf16.msra.mxu0 %v1442_v3  ;;  %342 = vmatprep.mubr.bf16.mxu0 %v1463_v1 }
  0x8e   : > { %431 = vmatprep.subr.bf16.mxu0 %v410_v15  ;;  %v518_v18 = vpop.permute.xlu0 %517  ;;  %v520_v19 = vpop.permute.xlu1 %519 }
  0x8f   : > { %v523_v21 = vsel %vm521_vm4, %v518_v18, %v520_v19 }
  0x92   : > { %1373 = vmatmul.mubr.msk.bf16.vlgmr.msra.gmra.mxu1 %vm211_vm2, %v1445_v17  ;;  %v516_v22 = vpop.permute.xlu0 %515  ;;  %v631_v24 = vpop.permute.xlu1 %630 }
  0x93   : > { %1377 = vmatpush3.bf16.msra.mxu1 %v407_v14  ;;  %1378 = vmatprep.mubr.msk.bf16.mxu1 %vm1462_vm0, %v1461_v0  ;;  %v522_v26 = vsel %vm521_vm4, %v516_v22, %v518_v18 }
  0x94   : > { %1299 = vmatmul.mubr.msk.bf16.vlgmr.msra.gmra.mxu0 %vm211_vm2, %v1445_v17  ;;  %1382 = vmatprep.subr.bf16.mxu1 %v1461_v0 }
  0x95   : > { %432 = vmatpush1.bf16.msra.mxu0 %v409_v20  ;;  %449 = vmatprep.mubr.bf16.mxu0 %v1463_v1 }
  0x96   : > { %544 = vmatprep.subr.bf16.mxu0 %v523_v21  ;;  %v633_v25 = vpop.permute.xlu0 %632  ;;  %v629_v28 = vpop.permute.xlu1 %628 }
  0x97   : > { %v636_v27 = vsel %vm634_vm5, %v631_v24, %v633_v25  ;;  %v635_v32 = vsel %vm634_vm5, %v629_v28, %v631_v24 }
  0x9a   : > { %1379 = vmatmul.mubr.msk.bf16.vlgmr.msra.gmra.mxu1 %vm211_vm2, %v1446_v23  ;;  %v744_v30 = vpop.permute.xlu0 %743  ;;  %v746_v31 = vpop.permute.xlu1 %745 }
  0x9b   : > { %1383 = vmatpush3.bf16.msra.mxu1 %v520_v19  ;;  %1384 = vmatprep.mubr.msk.bf16.mxu1 %vm1462_vm0, %v1461_v0  ;;  %v749_v33 = vsel %vm747_vm6, %v744_v30, %v746_v31 }
  0x9c   : > { %1304 = vmatmul.mubr.msk.bf16.vlgmr.msra.gmra.mxu0 %vm211_vm2, %v1446_v23  ;;  %1388 = vmatprep.subr.bf16.mxu1 %v1461_v0 }
  0x9d   : > { %545 = vmatpush1.bf16.msra.mxu0 %v522_v26  ;;  %562 = vmatprep.mubr.bf16.mxu0 %v1463_v1 }
  0x9e   : > { %657 = vmatprep.subr.bf16.mxu0 %v636_v27  ;;  %v742_v34 = vpop.permute.xlu0 %741  ;;  %v857_v36 = vpop.permute.xlu1 %856 }
  0x9f   : > { %v748_v38 = vsel %vm747_vm6, %v742_v34, %v744_v30 }
  0xa2   : > { %1385 = vmatmul.mubr.msk.bf16.vlgmr.msra.gmra.mxu1 %vm211_vm2, %v1447_v29  ;;  %v859_v37 = vpop.permute.xlu0 %858  ;;  %v855_v40 = vpop.permute.xlu1 %854 }
  0xa3   : > { %1389 = vmatpush3.bf16.msra.mxu1 %v633_v25  ;;  %1390 = vmatprep.mubr.msk.bf16.mxu1 %vm1462_vm0, %v1461_v0  ;;  %v862_v39 = vsel %vm860_vm7, %v857_v36, %v859_v37  ;;  %v861_v44 = vsel %vm860_vm7, %v855_v40, %v857_v36 }
  0xa4   : > { %1309 = vmatmul.mubr.msk.bf16.vlgmr.msra.gmra.mxu0 %vm211_vm2, %v1447_v29  ;;  %1394 = vmatprep.subr.bf16.mxu1 %v1461_v0 }
  0xa5   : > { %658 = vmatpush1.bf16.msra.mxu0 %v635_v32  ;;  %675 = vmatprep.mubr.bf16.mxu0 %v1463_v1 }
  0xa6   : > { %770 = vmatprep.subr.bf16.mxu0 %v749_v33  ;;  %v970_v42 = vpop.permute.xlu0 %969  ;;  %v972_v43 = vpop.permute.xlu1 %971 }
  0xa7   : > { %v975_v45 = vsel %vm973_vm8, %v970_v42, %v972_v43 }
  0xaa   : > { %1391 = vmatmul.mubr.msk.bf16.vlgmr.msra.gmra.mxu1 %vm211_vm2, %v1448_v35  ;;  %v968_v46 = vpop.permute.xlu0 %967  ;;  %v1083_v49 = vpop.permute.xlu1 %1082 }
  0xab   : > { %1395 = vmatpush3.bf16.msra.mxu1 %v746_v31  ;;  %1396 = vmatprep.mubr.msk.bf16.mxu1 %vm1462_vm0, %v1461_v0  ;;  %v974_v50 = vsel %vm973_vm8, %v968_v46, %v970_v42 }
  0xac   : > { %1314 = vmatmul.mubr.msk.bf16.vlgmr.msra.gmra.mxu0 %vm211_vm2, %v1448_v35  ;;  %1400 = vmatprep.subr.bf16.mxu1 %v1461_v0 }
  0xad   : > { %771 = vmatpush1.bf16.msra.mxu0 %v748_v38  ;;  %788 = vmatprep.mubr.bf16.mxu0 %v1463_v1 }
  0xae   : > { %883 = vmatprep.subr.bf16.mxu0 %v862_v39  ;;  %v1085_v48 = vpop.permute.xlu0 %1084  ;;  %v1081_v53 = vpop.permute.xlu1 %1080 }
  0xaf   : > { %v1088_v51 = vsel %vm1086_vm9, %v1083_v49, %v1085_v48  ;;  %v1087_v54 = vsel %vm1086_vm9, %v1081_v53, %v1083_v49 }
  0xb2   : > { %1397 = vmatmul.mubr.msk.bf16.vlgmr.msra.gmra.mxu1 %vm211_vm2, %v1449_v41 }
  0xb3   : > { %1401 = vmatpush3.bf16.msra.mxu1 %v859_v37  ;;  %1402 = vmatprep.mubr.msk.bf16.mxu1 %vm1462_vm0, %v1461_v0 }
  0xb4   : > { %1319 = vmatmul.mubr.msk.bf16.vlgmr.msra.gmra.mxu0 %vm211_vm2, %v1449_v41  ;;  %1406 = vmatprep.subr.bf16.mxu1 %v1461_v0 }
  0xb5   : > { %884 = vmatpush1.bf16.msra.mxu0 %v861_v44  ;;  %901 = vmatprep.mubr.bf16.mxu0 %v1463_v1 }
  0xb6   : > { %996 = vmatprep.subr.bf16.mxu0 %v975_v45 }
  0xba   : > { %1403 = vmatmul.mubr.msk.bf16.vlgmr.msra.gmra.mxu1 %vm211_vm2, %v1450_v47 }
  0xbb   : > { %1407 = vmatpush3.bf16.msra.mxu1 %v972_v43  ;;  %1408 = vmatprep.mubr.msk.bf16.mxu1 %vm1462_vm0, %v1461_v0 }
  0xbc   : > { %1324 = vmatmul.mubr.msk.bf16.vlgmr.msra.gmra.mxu0 %vm211_vm2, %v1450_v47  ;;  %1412 = vmatprep.subr.bf16.mxu1 %v1461_v0 }
  0xbd   : > { %997 = vmatpush1.bf16.msra.mxu0 %v974_v50  ;;  %1014 = vmatprep.mubr.bf16.mxu0 %v1463_v1 }
  0xbe   : > { %1109 = vmatprep.subr.bf16.mxu0 %v1088_v51 }
  0xc2   : > { %1409 = vmatmul.mubr.msk.bf16.vlgmr.msra.gmra.mxu1 %vm211_vm2, %v1451_v52 }
  0xc3   : > { %1413 = vmatpush3.bf16.msra.mxu1 %v1085_v48  ;;  %1414 = vmatprep.mubr.msk.bf16.mxu1 %vm1462_vm0, %v1461_v0 }
  0xc4   : > { %1329 = vmatmul.mubr.msk.bf16.vlgmr.msra.gmra.mxu0 %vm211_vm2, %v1451_v52 }
  0xc5   : > { %1110 = vmatpush1.bf16.msra.mxu0 %v1087_v54  ;;  %1127 = vmatprep.mubr.bf16.mxu0 %v1463_v1 }
  0xca   : > { %1415 = vmatmul.mubr.msk.bf16.vlgmr.msra.gmra.mxu1 %vm211_vm2, %v1452_v55 }
  0xcc   : > { %1334 = vmatmul.mubr.msk.bf16.vlgmr.msra.gmra.mxu0 %vm211_vm2, %v1452_v55 }
 0x14a   : > { %v292_v56 = vpop.f32.mrf.mxu1 }
 0x14c   : > { %v249_v57 = vpop.f32.mrf.mxu0  ;;  %v1368_v58 = vpop.f32.mrf.mxu1 }
 0x14e   : > { %v251_v59 = vpop.f32.mrf.mxu0  ;;  %v295_v60 = vpop.f32.mrf.mxu1 }
 0x150   : > { %v253_v61 = vpop.f32.mrf.mxu0  ;;  %v1369_v62 = vpop.f32.mrf.mxu1 }
 0x152   : > { %v255_v63 = vpop.f32.mrf.mxu0  ;;  %v387_v0 = vpop.f32.mrf.mxu1 }
 0x153   : > { %v388_v43 = vadd.f32 %v387_v0, %v292_v56 }
 0x154   : > { %v344_v2 = vpop.f32.mrf.mxu0  ;;  %v1374_v3 = vpop.f32.mrf.mxu1 }
 0x155   : > { %v345_v46 = vadd.f32 %v344_v2, %v249_v57 }
 0x156   : > { %v346_v1 = vpop.f32.mrf.mxu0  ;;  %v390_v4 = vpop.f32.mrf.mxu1 }
 0x157   : > { %v347_v50 = vadd.f32 %v346_v1, %v251_v59  ;;  %v391_v51 = vadd.f32 %v390_v4, %v295_v60 }
 0x158   : > { %v348_v5 = vpop.f32.mrf.mxu0  ;;  %v1375_v6 = vpop.f32.mrf.mxu1 }
 0x159   : > { %v349_v54 = vadd.f32 %v348_v5, %v253_v61 }
 0x15a   : > { %v350_v7 = vpop.f32.mrf.mxu0  ;;  %v494_v8 = vpop.f32.mrf.mxu1 }
 0x15b   : > { %v503_v47 = vadd.f32 %v494_v8, %v388_v43 }
 0x15c   : > { %v451_v9 = vpop.f32.mrf.mxu0  ;;  %v1380_v10 = vpop.f32.mrf.mxu1 }
 0x15d   : > { %v501_v52 = vadd.f32 %v451_v9, %v345_v46 }
 0x15e   : > { %v453_v11 = vpop.f32.mrf.mxu0  ;;  %v497_v12 = vpop.f32.mrf.mxu1 }
 0x15f   : > { %v502_v62 = vadd.f32 %v453_v11, %v347_v50  ;;  %v506_v3 = vadd.f32 %v497_v12, %v391_v51 }
 0x160   : > { %v455_v13 = vpop.f32.mrf.mxu0  ;;  %v1381_v14 = vpop.f32.mrf.mxu1 }
 0x161   : > { %v351_v14 = vadd.f32 %v350_v7, %v255_v63 }
 0x162   : > { %v457_v15 = vpop.f32.mrf.mxu0  ;;  %v607_v16 = vpop.f32.mrf.mxu1 }
 0x163   : > { %v616_v53 = vadd.f32 %v607_v16, %v503_v47 }
 0x164   : > { %v564_v17 = vpop.f32.mrf.mxu0  ;;  %v1386_v18 = vpop.f32.mrf.mxu1 }
 0x165   : > { %v614_v6 = vadd.f32 %v564_v17, %v501_v52  ;;  %v504_v18 = vadd.f32 %v455_v13, %v349_v54 }
 0x166   : > { %v566_v19 = vpop.f32.mrf.mxu0  ;;  %v610_v20 = vpop.f32.mrf.mxu1 }
 0x167   : > { %v619_v57 = vadd.f32 %v610_v20, %v506_v3 }
 0x168   : > { %v568_v21 = vpop.f32.mrf.mxu0  ;;  %v1387_v22 = vpop.f32.mrf.mxu1 }
 0x169   : > { %v615_v22 = vadd.f32 %v566_v19, %v502_v62  ;;  %v617_v59 = vadd.f32 %v568_v21, %v504_v18  ;;  %v1190_v19 = vpop.permute.xlu0 %1189 }
 0x16a   : > { %v570_v23 = vpop.f32.mrf.mxu0  ;;  %v720_v24 = vpop.f32.mrf.mxu1 }
 0x16b   : > { %v729_v10 = vadd.f32 %v720_v24, %v616_v53 }
 0x16c   : > { %v677_v25 = vpop.f32.mrf.mxu0  ;;  %v1392_v26 = vpop.f32.mrf.mxu1 }
 0x16d   : > { %v727_v2 = vadd.f32 %v677_v25, %v614_v6  ;;  %v505_v26 = vadd.f32 %v457_v15, %v351_v14 }
 0x16e   : > { %v679_v27 = vpop.f32.mrf.mxu0  ;;  %v723_v28 = vpop.f32.mrf.mxu1 }
 0x16f   : > { %v728_v4 = vadd.f32 %v679_v27, %v615_v22  ;;  %v732_v61 = vadd.f32 %v723_v28, %v619_v57  ;;  %v618_v11 = vadd.f32 %v570_v23, %v505_v26 }
 0x170   : > { %v681_v29 = vpop.f32.mrf.mxu0  ;;  %v1393_v30 = vpop.f32.mrf.mxu1 }
 0x171   : > { %v730_v12 = vadd.f32 %v681_v29, %v617_v59 }
 0x172   : > { %v683_v31 = vpop.f32.mrf.mxu0  ;;  %v833_v32 = vpop.f32.mrf.mxu1 }
 0x173   : > { %v842_v8 = vadd.f32 %v833_v32, %v729_v10  ;;  %v731_v20 = vadd.f32 %v683_v31, %v618_v11 }
 0x174   : > { %v790_v33 = vpop.f32.mrf.mxu0  ;;  %v1398_v34 = vpop.f32.mrf.mxu1 }
 0x175   : > { %v840_v5 = vadd.f32 %v790_v33, %v727_v2 }
 0x176   : > { %v792_v35 = vpop.f32.mrf.mxu0  ;;  %v836_v36 = vpop.f32.mrf.mxu1 }
 0x177   : > { %v841_v63 = vadd.f32 %v792_v35, %v728_v4  ;;  %v845_v7 = vadd.f32 %v836_v36, %v732_v61 }
 0x178   : > { %v794_v37 = vpop.f32.mrf.mxu0  ;;  %v1399_v38 = vpop.f32.mrf.mxu1 }
 0x179   : > { %v843_v25 = vadd.f32 %v794_v37, %v730_v12 }
 0x17a   : > { %v796_v39 = vpop.f32.mrf.mxu0  ;;  %v946_v40 = vpop.f32.mrf.mxu1 }
 0x17b   : > { %v955_v9 = vadd.f32 %v946_v40, %v842_v8  ;;  %v844_v33 = vadd.f32 %v796_v39, %v731_v20 }
 0x17c   : > { %v903_v41 = vpop.f32.mrf.mxu0  ;;  %v1404_v42 = vpop.f32.mrf.mxu1 }
 0x17d   : > { %v953_v13 = vadd.f32 %v903_v41, %v840_v5  ;;  %v1195_v41 = vpop.permute.xlu1 %1194 }
 0x17e   : > { %v905_v44 = vpop.f32.mrf.mxu0  ;;  %v949_v45 = vpop.f32.mrf.mxu1 }
 0x17f   : > { %v954_v21 = vadd.f32 %v905_v44, %v841_v63  ;;  %v958_v32 = vadd.f32 %v949_v45, %v845_v7 }
 0x180   : > { %v907_v48 = vpop.f32.mrf.mxu0  ;;  %v1405_v49 = vpop.f32.mrf.mxu1 }
 0x181   : > { %v956_v34 = vadd.f32 %v907_v48, %v843_v25 }
 0x182   : > { %v909_v55 = vpop.f32.mrf.mxu0  ;;  %v1059_v58 = vpop.f32.mrf.mxu1 }
 0x183   : > { %v1068_v24 = vadd.f32 %v1059_v58, %v955_v9  ;;  %v957_v42 = vadd.f32 %v909_v55, %v844_v33 }
 0x184   : > { %v1016_v56 = vpop.f32.mrf.mxu0  ;;  %v1410_v0 = vpop.f32.mrf.mxu1 }
 0x185   : > { %v1066_v27 = vadd.f32 %v1016_v56, %v953_v13 }
 0x186   : > { %v1018_v60 = vpop.f32.mrf.mxu0  ;;  %v1062_v1 = vpop.f32.mrf.mxu1 }
 0x187   : > { %v1067_v38 = vadd.f32 %v1018_v60, %v954_v21  ;;  %v1071_v40 = vadd.f32 %v1062_v1, %v958_v32 }
 0x188   : > { %v1020_v16 = vpop.f32.mrf.mxu0  ;;  %v1411_v17 = vpop.f32.mrf.mxu1 }
 0x189   : > { %v1069_v43 = vadd.f32 %v1020_v16, %v956_v34 }
 0x18a   : > { %v1022_v30 = vpop.f32.mrf.mxu0  ;;  %v1172_v15 = vpop.f32.mrf.mxu1 }
 0x18b   : > { %v1181_v28 = vadd.f32 %v1172_v15, %v1068_v24  ;;  %v1070_v46 = vadd.f32 %v1022_v30, %v957_v42 }
 0x18c   : > { %v1129_v23 = vpop.f32.mrf.mxu0  ;;  %v1416_v29 = vpop.f32.mrf.mxu1 }
 0x18d   : > { %v1199_v35 = vadd.f32 %v1190_v19, %v1181_v28  ;;  %v1179_v36 = vadd.f32 %v1129_v23, %v1066_v27 }
 0x18e   : > { %v1131_v31 = vpop.f32.mrf.mxu0  ;;  %v1175_v37 = vpop.f32.mrf.mxu1 }
 0x18f   : > { %v1343_v44 = vpack.c.bf16 %v1199_v35, %v1199_v35  ;;  %v1180_v39 = vadd.f32 %v1131_v31, %v1067_v38  ;;  %v1184_v45 = vadd.f32 %v1175_v37, %v1071_v40  ;;  %v1197_v49 = vadd.f32 %v1190_v19, %v1179_v36 }
 0x190   : > { %v1133_v47 = vpop.f32.mrf.mxu0  ;;  %v1417_v48 = vpop.f32.mrf.mxu1 }
 0x191   : > { %1225 = vst.msk [vmem:[%s170_s26 + $0x8] sm:$0xf] %vm1224_vm10, %v1343_v44  ;;  %v1198_v50 = vadd.f32 %v1190_v19, %v1180_v39  ;;  %v1182_v51 = vadd.f32 %v1133_v47, %v1069_v43  ;;  %v1202_v52 = vadd.f32 %v1195_v41, %v1184_v45 }
 0x192   : > { %v1135_v53 = vpop.f32.mrf.mxu0 }
 0x193   : > { %v1342_v54 = vpack.c.bf16 %v1198_v50, %v1197_v49  ;;  %v1345_v55 = vpack.c.bf16 %v1202_v52, %v1202_v52  ;;  %v1183_v58 = vadd.f32 %v1135_v53, %v1070_v46  ;;  %v1200_v62 = vadd.f32 %v1195_v41, %v1182_v51 }
 0x195   : > { %1223 = vst [vmem:[%s170_s26] sm:$0xff] %v1342_v54  ;;  %1227 = vst.msk [vmem:[%s170_s26 + $0x14] sm:$0xf] %vm1224_vm10, %v1345_v55  ;;  %v1201_v3 = vadd.f32 %v1195_v41, %v1183_v58 }
 0x197   : > { %v1344_v6 = vpack.c.bf16 %v1201_v3, %v1200_v62 }
 0x199   : > { %1226 = vst [vmem:[%s170_s26 + $0xc] sm:$0xff] %v1344_v6 }
 0x19a PF: > { %s13_s12 = sadd.s32 1, %s1459_s12  }
 0x19b   : > { %p10_p4 = scmp.ge.s32.totalorder %s13_s12, 4  }
 0x19d   :  { %12 = sbr.rel (!%p10_p4) target bundleno = 1 (0x1), region = 70 }

// kernel: swift_forward.12
= control target key start
LH: loop header
LB: loop body
LE: loop exit
PB: predicated region body
PF: predicated region fallthrough
CT: control target
= control target key end

     0   :  { %s1635_s15 = smov 0   ;;  %s1797_s0 = inlined_call_operand.vmem [shape: bf16[2,4,342], index: 0, kind: input, shape index: {}]   ;;  %s1798_s1 = inlined_call_operand.vmem [shape: bf16[9,16,4], index: 1, kind: input, shape index: {}]   ;;  %s1799_s2 = inlined_call_operand.vmem [shape: f32[16,1], index: 2, kind: input, shape index: {}]   ;;  %s1800_s3 = inlined_call_operand.vmem [shape: bf16[2,16,288], index: 3, kind: input, shape index: {}]   ;;  %s1801_s4 = inlined_call_operand.vmem [shape: bf16[2,16,288], index: 4, kind: output, shape index: {}]  }
   0x1 LB: > { %s1414_s16 = sadd.s32 4294967295, %s1596_s15   ;;  %p1418_p0 = scmp.ge.s32.totalorder %s1596_s15, 1  ;;  %s1596_s15 = sphi %s1635_s15, %s14_s15  }
   0x2   : > { %p172_p1 = scmp.lt.s32.totalorder %s1596_s15, 3 }
   0x4   : > { %p173_p2 = pnand %p1418_p0, %p172_p1 }
   0x5   : > { %p203_p3 = scmp.lt.s32.totalorder (!%p173_p2), %s1414_s16, 1  ;;  %s1602_s21 = smov (!%p173_p2), 127  }
   0x6   : > { %176 = sbr.rel (%p173_p2) target bundleno = 416 (0x1a0), region = 36  ;;  %s1603_s22 = smov (!%p173_p2), 126  }
   0x7   : > { %s1604_s23 = smov (!%p173_p2), 110   ;;  %s1605_s24 = smov (!%p173_p2), 109  }
   0x8   : > { %s1606_s25 = smov (!%p173_p2), 108   ;;  %s1607_s26 = smov (!%p173_p2), 92  }
   0x9   : > { %s1608_s27 = smov (!%p173_p2), 91   ;;  %s1609_s28 = smov (!%p173_p2), 90  }
   0xb   : > { %v235_v0 = vlaneseq  ;;  %v1598_v1 = vmov 1983009808   ;;  %v1599_v3 = vmov 0.0   ;;  %s1803_s16 = smov (!%p203_p3, %s1414_s16), 1  ;;  %vm1600_vm0 = vmmov 0   ;;  %v1288_v13 = vld [vmem:[%s1799_s2] sm:$0xff] }
   0xc   : > { %v233_v2 = vunpack.c.l.s4 %v1598_v1  ;;  %1502 = vmatprep.subr.bf16.mxu1 %v1599_v3  ;;  %1504 = vmatprep.mubr.msk.bf16.mxu1 %vm1600_vm0, %v1599_v3  ;;  %s1556_s17 = smul.u32 6, %s1803_s16  ;;  %v1601_v6 = vmov 0   ;;  %v1289_v14 = vld [vmem:[%s1799_s2 + $0x8] sm:$0xff]  ;;  %vm260_vm1 = vcmask 1041408   ;;  %vm253_vm2 = vcmask 1039360   ;;  %v1582_v29 = vld [vmem:[%s1798_s1] sm:$0xff]  }
   0xd   : > { %v236_v4 = vshrl.u32 %v235_v0, 7  ;;  %302 = vmatprep.mubr.bf16.mxu0 %v1601_v6  ;;  %1578 = vset.pattern.permute.xlu0 %v1601_v6  ;;  %v1581_v18 = vld [vmem:[%s1798_s1 + $0x8] sm:$0xff]   ;;  %vm256_vm3 = vcmask 31744   ;;  %vm469_vm4 = vcmask 1031168   ;;  %vm588_vm5 = vcmask 900096   ;;  %v1583_v38 = vld [vmem:[%s1798_s1 + $0x10] sm:$0xff]  }
   0xe   : > { %v234_v5 = vunpack.c.0.s8 %v233_v2  ;;  %1579 = vset.pattern.permute.xlu1 %v1601_v6  ;;  %s207_s20 = scalar_lea.vmem %s1797_s0, %s1556_s17  ;;  %vm707_vm6 = vcmask 891904   ;;  %v1584_v47 = vld [vmem:[%s1798_s1 + $0x18] sm:$0xff]   ;;  %vm826_vm7 = vcmask 883712   ;;  %v1585_v55 = vld [vmem:[%s1798_s1 + $0x20] sm:$0xff]   ;;  %vm945_vm8 = vcmask 752640   ;;  %v1586_v63 = vld [vmem:[%s1798_s1 + $0x28] sm:$0xff]  }
   0xf   : > { %v219_v8 = vld [vmem:[%s207_s20] sm:$0x3f]  ;;  %vm1064_vm9 = vcmask 744448   ;;  %vm1183_vm10 = vcmask 736256   ;;  %vm1343_vm11 = vcmask 257024  }
  0x10   : > { %v237_v7 = vsub.s32 %v234_v5, %v236_v4  ;;  %v231_v10 = vcombine.high %v219_v8, %v219_v8 }
  0x12   : > { %v238_v9 = vrot.slane %v219_v8, %v237_v7  ;;  %v245_v11 = vrot.slane %v231_v10, %v237_v7  ;;  %v1587_v8 = vld [vmem:[%s1798_s1 + $0x30] sm:$0xff]  }
  0x14   : > { %247 = vrot.lane.b32.xlu0 %v238_v9, %s1602_s21  ;;  %v246_v12 = vcombine.high %v238_v9, %v238_v9  ;;  %251 = vrot.lane.b32.xlu1 %v245_v11, %s1602_s21  ;;  %v369_v22 = vsel %vm260_vm1, %v245_v11, 0  ;;  %v363_v25 = vsel %vm260_vm1, %v238_v9, 0 }
  0x18   : > { %249 = vrot.lane.b32.xlu0 %v246_v12, %s1602_s21  ;;  %463 = vrot.lane.b32.xlu1 %v238_v9, %s1603_s22 }
  0x1c   : > { %465 = vrot.lane.b32.xlu0 %v246_v12, %s1603_s22  ;;  %467 = vrot.lane.b32.xlu1 %v245_v11, %s1603_s22 }
  0x20   : > { %582 = vrot.lane.b32.xlu0 %v238_v9, %s1604_s23  ;;  %584 = vrot.lane.b32.xlu1 %v246_v12, %s1604_s23 }
  0x24   : > { %586 = vrot.lane.b32.xlu0 %v245_v11, %s1604_s23  ;;  %701 = vrot.lane.b32.xlu1 %v238_v9, %s1605_s24 }
  0x28   : > { %703 = vrot.lane.b32.xlu0 %v246_v12, %s1605_s24  ;;  %705 = vrot.lane.b32.xlu1 %v245_v11, %s1605_s24 }
  0x2c   : > { %820 = vrot.lane.b32.xlu0 %v238_v9, %s1606_s25  ;;  %822 = vrot.lane.b32.xlu1 %v246_v12, %s1606_s25 }
  0x30   : > { %824 = vrot.lane.b32.xlu0 %v245_v11, %s1606_s25  ;;  %939 = vrot.lane.b32.xlu1 %v238_v9, %s1607_s26 }
  0x34   : > { %941 = vrot.lane.b32.xlu0 %v246_v12, %s1607_s26  ;;  %943 = vrot.lane.b32.xlu1 %v245_v11, %s1607_s26 }
  0x38   : > { %1058 = vrot.lane.b32.xlu0 %v238_v9, %s1608_s27  ;;  %1060 = vrot.lane.b32.xlu1 %v246_v12, %s1608_s27 }
  0x3c   : > { %1062 = vrot.lane.b32.xlu0 %v245_v11, %s1608_s27  ;;  %1177 = vrot.lane.b32.xlu1 %v238_v9, %s1609_s28  ;;  %s1557_s27 = smul.u32 24, %s1803_s16 }
  0x3e   : > { %s1779_s30 = scalar_lea.vmem %s1800_s3, %s1557_s27  ;;  %s217_s7 = scalar_lea.vmem %s1801_s4, %s1557_s27 }
  0x40   : > { %1179 = vrot.lane.b32.xlu0 %v246_v12, %s1609_s28  ;;  %1181 = vrot.lane.b32.xlu1 %v245_v11, %s1609_s28 }
  0x44   : > { %1292 = vperm.xlu0 %1578, %v1288_v13   ;;  %1297 = vperm.xlu1 %1579, %v1289_v14  }
  0x86   : > { %v248_v15 = vpop.permute.xlu0 %247  ;;  %v252_v16 = vpop.permute.xlu1 %251 }
  0x87   : > { %v268_v17 = vsel %vm260_vm1, %v252_v16, 0 }
  0x88   : > { %1503 = vmatpush3.bf16.msra.mxu1 %v268_v17 }
  0x89   : > { %1508 = vmatprep.subr.bf16.mxu1 %v1599_v3 }
  0x8a   : > { %v250_v19 = vpop.permute.xlu0 %249  ;;  %v464_v24 = vpop.permute.xlu1 %463 }
  0x8b   : > { %v255_v20 = vsel %vm253_vm2, %v250_v19, %v252_v16  ;;  %v254_v21 = vsel %vm253_vm2, %v248_v15, %v250_v19  ;;  %1505 = vmatmul.mubr.msk.bf16.vlgmr.msra.gmra.mxu1 %vm256_vm3, %v1581_v18  ;;  %v1588_v15 = vld [vmem:[%s1798_s1 + $0x38] sm:$0xff]   ;;  %v1589_v19 = vld [vmem:[%s1798_s1 + $0x40] sm:$0xff]  }
  0x8c   : > { %1425 = vmatprep.subr.msk.bf16.mxu0 %vm260_vm1, %v255_v20  ;;  %v262_v23 = vsel %vm260_vm1, %v254_v21, 0  ;;  %1509 = vmatpush3.bf16.msra.mxu1 %v369_v22 }
  0x8d   : > { %285 = vmatpush1.bf16.msra.mxu0 %v262_v23  ;;  %1510 = vmatprep.mubr.msk.bf16.mxu1 %vm1600_vm0, %v1599_v3 }
  0x8e   : > { %1429 = vmatprep.subr.msk.bf16.mxu0 %vm260_vm1, %v246_v12  ;;  %v466_v26 = vpop.permute.xlu0 %465  ;;  %1514 = vmatprep.subr.bf16.mxu1 %v1599_v3  ;;  %v468_v27 = vpop.permute.xlu1 %467 }
  0x8f   : > { %v471_v28 = vsel %vm469_vm4, %v466_v26, %v468_v27  ;;  %v470_v31 = vsel %vm469_vm4, %v464_v24, %v466_v26  ;;  %v482_v32 = vsel %vm260_vm1, %v468_v27, 0 }
  0x90   : > { %1426 = vmatmul.mubr.msk.bf16.vlgmr.msra.gmra.mxu0 %vm256_vm3, %v1581_v18  ;;  %v476_v34 = vsel %vm260_vm1, %v470_v31, 0 }
  0x91   : > { %386 = vmatpush1.bf16.msra.mxu0 %v363_v25  ;;  %403 = vmatprep.mubr.bf16.mxu0 %v1601_v6 }
  0x92   : > { %1435 = vmatprep.subr.msk.bf16.mxu0 %vm260_vm1, %v471_v28  ;;  %v583_v30 = vpop.permute.xlu0 %582  ;;  %v585_v33 = vpop.permute.xlu1 %584 }
  0x93   : > { %1511 = vmatmul.mubr.msk.bf16.vlgmr.msra.gmra.mxu1 %vm256_vm3, %v1582_v29  ;;  %v589_v40 = vsel %vm588_vm5, %v583_v30, %v585_v33 }
  0x94   : > { %1515 = vmatpush3.bf16.msra.mxu1 %v482_v32  ;;  %1516 = vmatprep.mubr.msk.bf16.mxu1 %vm1600_vm0, %v1599_v3  ;;  %v595_v43 = vsel %vm260_vm1, %v589_v40, 0 }
  0x95   : > { %1520 = vmatprep.subr.bf16.mxu1 %v1599_v3 }
  0x96   : > { %v587_v35 = vpop.permute.xlu0 %586  ;;  %v702_v37 = vpop.permute.xlu1 %701 }
  0x97   : > { %v590_v36 = vsel %vm588_vm5, %v585_v33, %v587_v35  ;;  %v601_v41 = vsel %vm260_vm1, %v587_v35, 0 }
  0x98   : > { %1430 = vmatmul.mubr.msk.bf16.vlgmr.msra.gmra.mxu0 %vm256_vm3, %v1582_v29 }
  0x99   : > { %499 = vmatpush1.bf16.msra.mxu0 %v476_v34  ;;  %516 = vmatprep.mubr.bf16.mxu0 %v1601_v6 }
  0x9a   : > { %1441 = vmatprep.subr.msk.bf16.mxu0 %vm260_vm1, %v590_v36  ;;  %v704_v39 = vpop.permute.xlu0 %703  ;;  %v706_v42 = vpop.permute.xlu1 %705 }
  0x9b   : > { %1517 = vmatmul.mubr.msk.bf16.vlgmr.msra.gmra.mxu1 %vm256_vm3, %v1583_v38  ;;  %v709_v45 = vsel %vm707_vm6, %v704_v39, %v706_v42  ;;  %v708_v48 = vsel %vm707_vm6, %v702_v37, %v704_v39  ;;  %v720_v49 = vsel %vm260_vm1, %v706_v42, 0 }
  0x9c   : > { %1521 = vmatpush3.bf16.msra.mxu1 %v601_v41  ;;  %1522 = vmatprep.mubr.msk.bf16.mxu1 %vm1600_vm0, %v1599_v3  ;;  %v714_v51 = vsel %vm260_vm1, %v708_v48, 0 }
  0x9d   : > { %1526 = vmatprep.subr.bf16.mxu1 %v1599_v3 }
  0x9e   : > { %v821_v44 = vpop.permute.xlu0 %820  ;;  %v823_v46 = vpop.permute.xlu1 %822 }
  0x9f   : > { %v827_v56 = vsel %vm826_vm7, %v821_v44, %v823_v46 }
  0xa0   : > { %1436 = vmatmul.mubr.msk.bf16.vlgmr.msra.gmra.mxu0 %vm256_vm3, %v1583_v38  ;;  %v833_v59 = vsel %vm260_vm1, %v827_v56, 0 }
  0xa1   : > { %618 = vmatpush1.bf16.msra.mxu0 %v595_v43  ;;  %635 = vmatprep.mubr.bf16.mxu0 %v1601_v6 }
  0xa2   : > { %1447 = vmatprep.subr.msk.bf16.mxu0 %vm260_vm1, %v709_v45  ;;  %v825_v50 = vpop.permute.xlu0 %824  ;;  %v940_v52 = vpop.permute.xlu1 %939 }
  0xa3   : > { %1523 = vmatmul.mubr.msk.bf16.vlgmr.msra.gmra.mxu1 %vm256_vm3, %v1584_v47  ;;  %v828_v53 = vsel %vm826_vm7, %v823_v46, %v825_v50  ;;  %v839_v57 = vsel %vm260_vm1, %v825_v50, 0 }
  0xa4   : > { %1527 = vmatpush3.bf16.msra.mxu1 %v720_v49  ;;  %1528 = vmatprep.mubr.msk.bf16.mxu1 %vm1600_vm0, %v1599_v3 }
  0xa5   : > { %1532 = vmatprep.subr.bf16.mxu1 %v1599_v3 }
  0xa6   : > { %v942_v54 = vpop.permute.xlu0 %941  ;;  %v944_v58 = vpop.permute.xlu1 %943 }
  0xa7   : > { %v947_v61 = vsel %vm945_vm8, %v942_v54, %v944_v58  ;;  %v946_v0 = vsel %vm945_vm8, %v940_v52, %v942_v54  ;;  %v958_v1 = vsel %vm260_vm1, %v944_v58, 0 }
  0xa8   : > { %1442 = vmatmul.mubr.msk.bf16.vlgmr.msra.gmra.mxu0 %vm256_vm3, %v1584_v47  ;;  %v952_v4 = vsel %vm260_vm1, %v946_v0, 0 }
  0xa9   : > { %737 = vmatpush1.bf16.msra.mxu0 %v714_v51  ;;  %754 = vmatprep.mubr.bf16.mxu0 %v1601_v6 }
  0xaa   : > { %1453 = vmatprep.subr.msk.bf16.mxu0 %vm260_vm1, %v828_v53  ;;  %v1059_v60 = vpop.permute.xlu0 %1058  ;;  %v1061_v62 = vpop.permute.xlu1 %1060 }
  0xab   : > { %1529 = vmatmul.mubr.msk.bf16.vlgmr.msra.gmra.mxu1 %vm256_vm3, %v1585_v55  ;;  %v1065_v9 = vsel %vm1064_vm9, %v1059_v60, %v1061_v62 }
  0xac   : > { %1533 = vmatpush3.bf16.msra.mxu1 %v839_v57  ;;  %1534 = vmatprep.mubr.msk.bf16.mxu1 %vm1600_vm0, %v1599_v3  ;;  %v1071_v13 = vsel %vm260_vm1, %v1065_v9, 0 }
  0xad   : > { %1538 = vmatprep.subr.bf16.mxu1 %v1599_v3 }
  0xae   : > { %v1063_v2 = vpop.permute.xlu0 %1062  ;;  %v1178_v5 = vpop.permute.xlu1 %1177 }
  0xaf   : > { %v1066_v7 = vsel %vm1064_vm9, %v1061_v62, %v1063_v2  ;;  %v1077_v10 = vsel %vm260_vm1, %v1063_v2, 0 }
  0xb0   : > { %1448 = vmatmul.mubr.msk.bf16.vlgmr.msra.gmra.mxu0 %vm256_vm3, %v1585_v55 }
  0xb1   : > { %856 = vmatpush1.bf16.msra.mxu0 %v833_v59  ;;  %873 = vmatprep.mubr.bf16.mxu0 %v1601_v6 }
  0xb2   : > { %1459 = vmatprep.subr.msk.bf16.mxu0 %vm260_vm1, %v947_v61  ;;  %v1180_v11 = vpop.permute.xlu0 %1179  ;;  %v1182_v12 = vpop.permute.xlu1 %1181 }
  0xb3   : > { %1535 = vmatmul.mubr.msk.bf16.vlgmr.msra.gmra.mxu1 %vm256_vm3, %v1586_v63  ;;  %v1185_v14 = vsel %vm1183_vm10, %v1180_v11, %v1182_v12  ;;  %v1184_v16 = vsel %vm1183_vm10, %v1178_v5, %v1180_v11  ;;  %v1196_v17 = vsel %vm260_vm1, %v1182_v12, 0 }
  0xb4   : > { %1539 = vmatpush3.bf16.msra.mxu1 %v958_v1  ;;  %1540 = vmatprep.mubr.msk.bf16.mxu1 %vm1600_vm0, %v1599_v3  ;;  %v1190_v18 = vsel %vm260_vm1, %v1184_v16, 0 }
  0xb5   : > { %1544 = vmatprep.subr.bf16.mxu1 %v1599_v3 }
  0xb8   : > { %1454 = vmatmul.mubr.msk.bf16.vlgmr.msra.gmra.mxu0 %vm256_vm3, %v1586_v63 }
  0xb9   : > { %975 = vmatpush1.bf16.msra.mxu0 %v952_v4  ;;  %992 = vmatprep.mubr.bf16.mxu0 %v1601_v6 }
  0xba   : > { %1465 = vmatprep.subr.msk.bf16.mxu0 %vm260_vm1, %v1066_v7 }
  0xbb   : > { %1541 = vmatmul.mubr.msk.bf16.vlgmr.msra.gmra.mxu1 %vm256_vm3, %v1587_v8 }
  0xbc   : > { %1545 = vmatpush3.bf16.msra.mxu1 %v1077_v10  ;;  %1546 = vmatprep.mubr.msk.bf16.mxu1 %vm1600_vm0, %v1599_v3 }
  0xbd   : > { %1550 = vmatprep.subr.bf16.mxu1 %v1599_v3 }
  0xc0   : > { %1460 = vmatmul.mubr.msk.bf16.vlgmr.msra.gmra.mxu0 %vm256_vm3, %v1587_v8 }
  0xc1   : > { %1094 = vmatpush1.bf16.msra.mxu0 %v1071_v13  ;;  %1111 = vmatprep.mubr.bf16.mxu0 %v1601_v6 }
  0xc2   : > { %1471 = vmatprep.subr.msk.bf16.mxu0 %vm260_vm1, %v1185_v14 }
  0xc3   : > { %1547 = vmatmul.mubr.msk.bf16.vlgmr.msra.gmra.mxu1 %vm256_vm3, %v1588_v15 }
  0xc4   : > { %1551 = vmatpush3.bf16.msra.mxu1 %v1196_v17  ;;  %1552 = vmatprep.mubr.msk.bf16.mxu1 %vm1600_vm0, %v1599_v3 }
  0xc8   : > { %1466 = vmatmul.mubr.msk.bf16.vlgmr.msra.gmra.mxu0 %vm256_vm3, %v1588_v15 }
  0xc9   : > { %1213 = vmatpush1.bf16.msra.mxu0 %v1190_v18  ;;  %1230 = vmatprep.mubr.bf16.mxu0 %v1601_v6 }
  0xcb   : > { %1553 = vmatmul.mubr.msk.bf16.vlgmr.msra.gmra.mxu1 %vm256_vm3, %v1589_v19 }
  0xd0   : > { %1472 = vmatmul.mubr.msk.bf16.vlgmr.msra.gmra.mxu0 %vm256_vm3, %v1589_v19 }
 0x14b   : > { %v347_v20 = vpop.f32.mrf.mxu1 }
 0x14d   : > { %v1506_v21 = vpop.f32.mrf.mxu1 }
 0x14f   : > { %v350_v23 = vpop.f32.mrf.mxu1 }
 0x150   : > { %v304_v22 = vpop.f32.mrf.mxu0 }
 0x151   : > { %v1507_v25 = vpop.f32.mrf.mxu1 }
 0x152   : > { %v306_v24 = vpop.f32.mrf.mxu0 }
 0x153   : > { %v448_v26 = vpop.f32.mrf.mxu1 }
 0x154   : > { %v308_v3 = vpop.f32.mrf.mxu0  ;;  %v449_v5 = vadd.f32 %v448_v26, %v347_v20 }
 0x155   : > { %v1512_v28 = vpop.f32.mrf.mxu1 }
 0x156   : > { %v1767_v27 = vpop.f32.mrf.mxu0 }
 0x157   : > { %v451_v30 = vpop.f32.mrf.mxu1 }
 0x158   : > { %v405_v29 = vpop.f32.mrf.mxu0  ;;  %v452_v13 = vadd.f32 %v451_v30, %v350_v23 }
 0x159   : > { %v1513_v32 = vpop.f32.mrf.mxu1  ;;  %v406_v11 = vadd.f32 %v405_v29, %v304_v22 }
 0x15a   : > { %v407_v31 = vpop.f32.mrf.mxu0 }
 0x15b   : > { %v561_v33 = vpop.f32.mrf.mxu1  ;;  %v408_v16 = vadd.f32 %v407_v31, %v306_v24 }
 0x15c   : > { %v409_v6 = vpop.f32.mrf.mxu0  ;;  %v570_v9 = vadd.f32 %v561_v33, %v449_v5 }
 0x15d   : > { %v1518_v35 = vpop.f32.mrf.mxu1  ;;  %v410_v28 = vadd.f32 %v409_v6, %v308_v3 }
 0x15e   : > { %v411_v34 = vpop.f32.mrf.mxu0 }
 0x15f   : > { %v564_v37 = vpop.f32.mrf.mxu1  ;;  %v412_v22 = vadd.f32 %v411_v34, %v1767_v27 }
 0x160   : > { %v518_v36 = vpop.f32.mrf.mxu0  ;;  %v573_v19 = vadd.f32 %v564_v37, %v452_v13 }
 0x161   : > { %v1519_v39 = vpop.f32.mrf.mxu1  ;;  %v568_v17 = vadd.f32 %v518_v36, %v406_v11  ;;  %v1298_v11 = vpop.permute.xlu1 %1297 }
 0x162   : > { %v520_v38 = vpop.f32.mrf.mxu0 }
 0x163   : > { %v680_v41 = vpop.f32.mrf.mxu1  ;;  %v569_v32 = vadd.f32 %v520_v38, %v408_v16 }
 0x164   : > { %v522_v40 = vpop.f32.mrf.mxu0  ;;  %v689_v14 = vadd.f32 %v680_v41, %v570_v9 }
 0x165   : > { %v1524_v43 = vpop.f32.mrf.mxu1  ;;  %v571_v23 = vadd.f32 %v522_v40, %v410_v28 }
 0x166   : > { %v524_v42 = vpop.f32.mrf.mxu0 }
 0x167   : > { %v683_v45 = vpop.f32.mrf.mxu1  ;;  %v572_v36 = vadd.f32 %v524_v42, %v412_v22 }
 0x168   : > { %v637_v44 = vpop.f32.mrf.mxu0  ;;  %v692_v35 = vadd.f32 %v683_v45, %v573_v19 }
 0x169   : > { %v1525_v47 = vpop.f32.mrf.mxu1  ;;  %v687_v20 = vadd.f32 %v637_v44, %v568_v17  ;;  %v1307_v44 = vld [vmem:[%s1779_s30 + $0x8] ss:$12 sps:$4 sm:$0xff]  }
 0x16a   : > { %v639_v46 = vpop.f32.mrf.mxu0  ;;  %v1315_v13 = vunpack.c.h.bf16 %v1307_v44 }
 0x16b   : > { %v799_v49 = vpop.f32.mrf.mxu1  ;;  %v688_v24 = vadd.f32 %v639_v46, %v569_v32  ;;  %v1293_v46 = vpop.permute.xlu0 %1292 }
 0x16c   : > { %v641_v48 = vpop.f32.mrf.mxu0  ;;  %v808_v21 = vadd.f32 %v799_v49, %v689_v14 }
 0x16d   : > { %v1530_v51 = vpop.f32.mrf.mxu1  ;;  %v690_v37 = vadd.f32 %v641_v48, %v571_v23 }
 0x16e   : > { %v643_v50 = vpop.f32.mrf.mxu0 }
 0x16f   : > { %v802_v53 = vpop.f32.mrf.mxu1  ;;  %v691_v51 = vadd.f32 %v643_v50, %v572_v36 }
 0x170   : > { %v756_v52 = vpop.f32.mrf.mxu0  ;;  %v811_v3 = vadd.f32 %v802_v53, %v692_v35 }
 0x171   : > { %v1531_v55 = vpop.f32.mrf.mxu1  ;;  %v806_v29 = vadd.f32 %v756_v52, %v687_v20  ;;  %v1306_v52 = vld [vmem:[%s1779_s30] sm:$0xff] }
 0x172   : > { %v758_v54 = vpop.f32.mrf.mxu0 }
 0x173   : > { %v918_v57 = vpop.f32.mrf.mxu1  ;;  %v807_v38 = vadd.f32 %v758_v54, %v688_v24 }
 0x174   : > { %v760_v56 = vpop.f32.mrf.mxu0  ;;  %v927_v33 = vadd.f32 %v918_v57, %v808_v21 }
 0x175   : > { %v1536_v59 = vpop.f32.mrf.mxu1  ;;  %v809_v55 = vadd.f32 %v760_v56, %v690_v37  ;;  %v1310_v56 = vunpack.c.l.bf16 %v1306_v52 }
 0x176   : > { %v1769_v58 = vpop.f32.mrf.mxu0 }
 0x177   : > { %v921_v61 = vpop.f32.mrf.mxu1  ;;  %v810_v42 = vadd.f32 %v1769_v58, %v691_v51 }
 0x178   : > { %v875_v60 = vpop.f32.mrf.mxu0  ;;  %v930_v45 = vadd.f32 %v921_v61, %v811_v3 }
 0x179   : > { %v1537_v63 = vpop.f32.mrf.mxu1  ;;  %v925_v41 = vadd.f32 %v875_v60, %v806_v29 }
 0x17a   : > { %v877_v62 = vpop.f32.mrf.mxu0  ;;  %v1312_v63 = vunpack.c.l.bf16 %v1307_v44 }
 0x17b   : > { %v1037_v1 = vpop.f32.mrf.mxu1  ;;  %v926_v27 = vadd.f32 %v877_v62, %v807_v38 }
 0x17c   : > { %v879_v0 = vpop.f32.mrf.mxu0  ;;  %v1046_v31 = vadd.f32 %v1037_v1, %v927_v33 }
 0x17d   : > { %v1542_v4 = vpop.f32.mrf.mxu1  ;;  %v928_v48 = vadd.f32 %v879_v0, %v809_v55 }
 0x17e   : > { %v1771_v2 = vpop.f32.mrf.mxu0 }
 0x17f   : > { %v1040_v8 = vpop.f32.mrf.mxu1  ;;  %v929_v62 = vadd.f32 %v1771_v2, %v810_v42 }
 0x180   : > { %v994_v7 = vpop.f32.mrf.mxu0  ;;  %v1049_v53 = vadd.f32 %v1040_v8, %v930_v45 }
 0x181   : > { %v1543_v12 = vpop.f32.mrf.mxu1  ;;  %v1044_v34 = vadd.f32 %v994_v7, %v925_v41 }
 0x182   : > { %v996_v10 = vpop.f32.mrf.mxu0 }
 0x183   : > { %v1156_v18 = vpop.f32.mrf.mxu1  ;;  %v1045_v54 = vadd.f32 %v996_v10, %v926_v27  ;;  %v1311_v10 = vunpack.c.h.bf16 %v1306_v52 }
 0x184   : > { %v998_v15 = vpop.f32.mrf.mxu0  ;;  %v1165_v47 = vadd.f32 %v1156_v18, %v1046_v31  ;;  %v1308_v18 = vld [vmem:[%s1779_s30 + $0xc] sm:$0xff] }
 0x185   : > { %v1548_v26 = vpop.f32.mrf.mxu1  ;;  %v1047_v5 = vadd.f32 %v998_v15, %v928_v48 }
 0x186   : > { %v1000_v25 = vpop.f32.mrf.mxu0 }
 0x187   : > { %v1159_v30 = vpop.f32.mrf.mxu1  ;;  %v1048_v14 = vadd.f32 %v1000_v25, %v929_v62  ;;  %v1313_v25 = vunpack.c.l.bf16 %v1308_v18 }
 0x188   : > { %v1113_v39 = vpop.f32.mrf.mxu0  ;;  %v1168_v61 = vadd.f32 %v1159_v30, %v1049_v53 }
 0x189   : > { %v1549_v43 = vpop.f32.mrf.mxu1  ;;  %v1163_v60 = vadd.f32 %v1113_v39, %v1044_v34  ;;  %v1314_v39 = vunpack.c.h.bf16 %v1308_v18 }
 0x18a   : > { %v1115_v6 = vpop.f32.mrf.mxu0 }
 0x18b   : > { %v1275_v40 = vpop.f32.mrf.mxu1  ;;  %v1164_v7 = vadd.f32 %v1115_v6, %v1045_v54 }
 0x18c   : > { %v1117_v49 = vpop.f32.mrf.mxu0  ;;  %v1284_v57 = vadd.f32 %v1275_v40, %v1165_v47 }
 0x18d   : > { %v1554_v1 = vpop.f32.mrf.mxu1  ;;  %v1166_v16 = vadd.f32 %v1117_v49, %v1047_v5 }
 0x18e   : > { %v1119_v59 = vpop.f32.mrf.mxu0  ;;  %v1302_v4 = vadd.f32 %v1293_v46, %v1284_v57 }
 0x18f   : > { %v1278_v9 = vpop.f32.mrf.mxu1  ;;  %v1167_v32 = vadd.f32 %v1119_v59, %v1048_v14 }
 0x190   : > { %v1232_v50 = vpop.f32.mrf.mxu0  ;;  %v1318_v12 = vadd.f32 %v1312_v63, %v1302_v4  ;;  %v1287_v58 = vadd.f32 %v1278_v9, %v1168_v61 }
 0x191   : > { %v1282_v8 = vadd.f32 %v1232_v50, %v1163_v60  ;;  %v1555_v15 = vpop.f32.mrf.mxu1 }
 0x192   : > { %v1234_v0 = vpop.f32.mrf.mxu0  ;;  %v1481_v19 = vpack.c.bf16 %v1318_v12, %v1318_v12  ;;  %v1305_v21 = vadd.f32 %v1298_v11, %v1287_v58 }
 0x193   : > { %v1300_v17 = vadd.f32 %v1293_v46, %v1282_v8  ;;  %v1283_v2 = vadd.f32 %v1234_v0, %v1164_v7 }
 0x194   : > { %v1236_v28 = vpop.f32.mrf.mxu0  ;;  %1344 = vst.msk [vmem:[%s217_s7 + $0x8] sm:$0xf] %vm1343_vm11, %v1481_v19  ;;  %v1321_v35 = vadd.f32 %v1315_v13, %v1305_v21 }
 0x195   : > { %v1301_v20 = vadd.f32 %v1293_v46, %v1283_v2  ;;  %v1285_v26 = vadd.f32 %v1236_v28, %v1166_v16  ;;  %v1316_v22 = vadd.f32 %v1310_v56, %v1300_v17 }
 0x196   : > { %v1238_v33 = vpop.f32.mrf.mxu0  ;;  %v1483_v30 = vpack.c.bf16 %v1321_v35, %v1321_v35 }
 0x197   : > { %v1317_v23 = vadd.f32 %v1311_v10, %v1301_v20  ;;  %v1303_v24 = vadd.f32 %v1298_v11, %v1285_v26  ;;  %v1286_v29 = vadd.f32 %v1238_v33, %v1167_v32 }
 0x198   : > { %1346 = vst.msk [vmem:[%s217_s7 + $0x14] sm:$0xf] %vm1343_vm11, %v1483_v30 }
 0x199   : > { %v1480_v3 = vpack.c.bf16 %v1317_v23, %v1316_v22  ;;  %v1304_v31 = vadd.f32 %v1298_v11, %v1286_v29  ;;  %v1319_v6 = vadd.f32 %v1313_v25, %v1303_v24 }
 0x19b   : > { %1342 = vst [vmem:[%s217_s7] sm:$0xff] %v1480_v3  ;;  %v1320_v36 = vadd.f32 %v1314_v39, %v1304_v31 }
 0x19d   : > { %v1482_v37 = vpack.c.bf16 %v1320_v36, %v1319_v6 }
 0x19f   : > { %1345 = vst [vmem:[%s217_s7 + $0xc] sm:$0xff] %v1482_v37 }
 0x1a0 PF: > { %s14_s15 = sadd.s32 1, %s1596_s15  }
 0x1a1   : > { %p11_p4 = scmp.ge.s32.totalorder %s14_s15, 4  }
 0x1a3   :  { %13 = sbr.rel (!%p11_p4) target bundleno = 1 (0x1), region = 77 }

// kernel: swift_forward.18
= control target key start
LH: loop header
LB: loop body
LE: loop exit
PB: predicated region body
PF: predicated region fallthrough
CT: control target
= control target key end

     0   :  { %s2742_s12 = smov 0   ;;  %s3410_s0 = inlined_call_operand.vmem [shape: bf16[2,16,342], index: 0, kind: input, shape index: {}]   ;;  %s3411_s1 = inlined_call_operand.vmem [shape: bf16[9,64,16], index: 1, kind: input, shape index: {}]   ;;  %s3412_s2 = inlined_call_operand.vmem [shape: f32[64,1], index: 2, kind: input, shape index: {}]   ;;  %s3413_s3 = inlined_call_operand.vmem [shape: bf16[2,64,288], index: 3, kind: output, shape index: {}]  }
   0x1 LB: > { %s2291_s13 = sadd.s32 4294967295, %s2711_s12   ;;  %p2295_p0 = scmp.ge.s32.totalorder %s2711_s12, 1  ;;  %s2711_s12 = sphi %s2742_s12, %s13_s12  }
   0x2   : > { %p137_p1 = scmp.lt.s32.totalorder %s2711_s12, 3 }
   0x4   : > { %p138_p2 = pnand %p2295_p0, %p137_p1 }
   0x6   : > { %141 = sbr.rel (%p138_p2) target bundleno = 556 (0x22c), region = 32 }
   0xb   : > { %p161_p3 = scmp.lt.s32.totalorder %s2291_s13, 1  ;;  %v2713_v0 = vmov 0   ;;  %s2714_s18 = smov 127   ;;  %vm232_vm0 = vcmask 1039360   ;;  %v2669_v9 = vld [vmem:[%s3411_s1 + $0x20] sm:$0xff]   ;;  %v2670_v10 = vld [vmem:[%s3411_s1 + $0x38] sm:$0xff]  }
   0xc   : > { %283 = vmatprep.mubr.bf16.mxu0 %v2713_v0  ;;  %313 = vmatprep.mubr.bf16.mxu1 %v2713_v0  ;;  %s2715_s19 = smov 126   ;;  %s2716_s20 = smov 110   ;;  %vm238_vm1 = vcmask 130048   ;;  %vm597_vm2 = vcmask 1031168   ;;  %v2671_v14 = vld [vmem:[%s3411_s1 + $0x28] sm:$0xff]   ;;  %v2672_v15 = vld [vmem:[%s3411_s1 + $0x30] sm:$0xff]  }
   0xd   : > { %s3467_s13 = smov (!%p161_p3, %s2291_s13), 1  ;;  %2663 = vset.pattern.permute.xlu0 %v2713_v0  ;;  %2664 = vset.pattern.permute.xlu1 %v2713_v0  ;;  %s2717_s21 = smov 109   ;;  %v2673_v16 = vld [vmem:[%s3411_s1] sm:$0xff]   ;;  %v2674_v18 = vld [vmem:[%s3411_s1 + $0x8] sm:$0xff]   ;;  %vm812_vm3 = vcmask 900096   ;;  %v2675_v21 = vld [vmem:[%s3411_s1 + $0x10] sm:$0xff]  }
   0xe   : > { %s2644_s14 = smul.u32 24, %s3467_s13  ;;  %s2718_s22 = smov 108   ;;  %v2676_v24 = vld [vmem:[%s3411_s1 + $0x18] sm:$0xff]   ;;  %v2677_v26 = vld [vmem:[%s3411_s1 + $0x40] sm:$0xff]   ;;  %vm1027_vm4 = vcmask 891904   ;;  %v2678_v30 = vld [vmem:[%s3411_s1 + $0x48] sm:$0xff]  }
   0xf   : > { %s2719_s23 = smov 92   ;;  %s2720_s24 = smov 91   ;;  %v2679_v31 = vld [vmem:[%s3411_s1 + $0x50] sm:$0xff]   ;;  %v2680_v33 = vld [vmem:[%s3411_s1 + $0x58] sm:$0xff]   ;;  %v2681_v34 = vld [vmem:[%s3411_s1 + $0x60] sm:$0xff]   ;;  %vm1242_vm5 = vcmask 883712  }
  0x10   : > { %s165_s17 = scalar_lea.vmem %s3410_s0, %s2644_s14  ;;  %s2721_s25 = smov 90   ;;  %v2682_v36 = vld [vmem:[%s3411_s1 + $0x68] sm:$0xff]   ;;  %v2683_v39 = vld [vmem:[%s3411_s1 + $0x70] sm:$0xff]   ;;  %v2684_v42 = vld [vmem:[%s3411_s1 + $0x78] sm:$0xff]   ;;  %vm1457_vm6 = vcmask 752640   ;;  %vm1672_vm7 = vcmask 744448  }
  0x11   : > { %v2665_v1 = vld [vmem:[%s165_s17 + $0x4] ss:$12 sps:$4 sm:$0xff]   ;;  %v2760_v2 = vld [vmem:[%s165_s17] ss:$12 sps:$4 sm:$0xff]   ;;  %v2668_v3 = vld [vmem:[%s165_s17 + $0x8] ss:$12 sps:$4 sm:$0xff]  }
  0x12   : > { %228 = vrot.lane.b32.xlu0 %v2665_v1, %s2714_s18  ;;  %226 = vrot.lane.b32.xlu1 %v2760_v2, %s2714_s18  ;;  %v2685_v44 = vld [vmem:[%s3411_s1 + $0x80] sm:$0xff]   ;;  %v2686_v48 = vld [vmem:[%s3411_s1 + $0x88] sm:$0xff]   ;;  %vm1887_vm8 = vcmask 736256   ;;  %s2645_s14 = smul.u32 96, %s3467_s13  ;;  %vm2220_vm9 = vcmask 257024  }
  0x13   : > { %v2687_v49 = vld [vmem:[%s3411_s1 + $0x90] sm:$0xff]   ;;  %v2688_v51 = vld [vmem:[%s3411_s1 + $0x98] sm:$0xff]   ;;  %v2689_v52 = vld [vmem:[%s3411_s1 + $0xa0] sm:$0xff]  }
  0x14   : > { %v2690_v54 = vld [vmem:[%s3411_s1 + $0xa8] sm:$0xff]   ;;  %v2691_v57 = vld [vmem:[%s3411_s1 + $0xb0] sm:$0xff]   ;;  %v2692_v60 = vld [vmem:[%s3411_s1 + $0xb8] sm:$0xff]   ;;  %s3295_s16 = scalar_lea.vmem %s3413_s3, %s2645_s14 }
  0x15   : > { %v2067_v61 = vld [vmem:[%s3412_s2] sm:$0xff]  ;;  %v2068_v63 = vld [vmem:[%s3412_s2 + $0x8] sm:$0xff] }
  0x16   : > { %230 = vrot.lane.b32.xlu0 %v2668_v3, %s2714_s18  ;;  %593 = vrot.lane.b32.xlu1 %v2665_v1, %s2715_s19 }
  0x1a   : > { %595 = vrot.lane.b32.xlu0 %v2668_v3, %s2715_s19  ;;  %591 = vrot.lane.b32.xlu1 %v2760_v2, %s2715_s19 }
  0x1e   : > { %810 = vrot.lane.b32.xlu1 %v2668_v3, %s2716_s20  ;;  %808 = vrot.lane.b32.xlu0 %v2665_v1, %s2716_s20 }
  0x22   : > { %806 = vrot.lane.b32.xlu0 %v2760_v2, %s2716_s20  ;;  %1023 = vrot.lane.b32.xlu1 %v2665_v1, %s2717_s21 }
  0x26   : > { %1025 = vrot.lane.b32.xlu0 %v2668_v3, %s2717_s21  ;;  %1021 = vrot.lane.b32.xlu1 %v2760_v2, %s2717_s21 }
  0x2a   : > { %1240 = vrot.lane.b32.xlu1 %v2668_v3, %s2718_s22  ;;  %1238 = vrot.lane.b32.xlu0 %v2665_v1, %s2718_s22 }
  0x2e   : > { %1236 = vrot.lane.b32.xlu0 %v2760_v2, %s2718_s22  ;;  %1453 = vrot.lane.b32.xlu1 %v2665_v1, %s2719_s23 }
  0x32   : > { %1455 = vrot.lane.b32.xlu0 %v2668_v3, %s2719_s23  ;;  %1451 = vrot.lane.b32.xlu1 %v2760_v2, %s2719_s23 }
  0x36   : > { %1670 = vrot.lane.b32.xlu1 %v2668_v3, %s2720_s24  ;;  %1668 = vrot.lane.b32.xlu0 %v2665_v1, %s2720_s24 }
  0x3a   : > { %1666 = vrot.lane.b32.xlu0 %v2760_v2, %s2720_s24  ;;  %1883 = vrot.lane.b32.xlu1 %v2665_v1, %s2721_s25 }
  0x3e   : > { %1885 = vrot.lane.b32.xlu0 %v2668_v3, %s2721_s25  ;;  %1881 = vrot.lane.b32.xlu1 %v2760_v2, %s2721_s25 }
  0x42   : > { %2077 = vperm.xlu0 %2663, %v2067_v61   ;;  %2082 = vperm.xlu1 %2664, %v2068_v63  }
  0x84   : > { %v229_v4 = vpop.permute.xlu0 %228  ;;  %v227_v5 = vpop.permute.xlu1 %226 }
  0x85   : > { %v233_v8 = vsel %vm232_vm0, %v227_v5, %v229_v4 }
  0x88   : > { %v231_v6 = vpop.permute.xlu0 %230  ;;  %v594_v12 = vpop.permute.xlu1 %593 }
  0x89   : > { %v234_v7 = vsel %vm232_vm0, %v229_v4, %v231_v6  ;;  %v2069_v4 = vld [vmem:[%s3412_s2 + $0x10] sm:$0xff] }
  0x8a   : > { %265 = vmatprep.subr.bf16.mxu0 %v234_v7  ;;  %2642 = vmatprep.subr.bf16.mxu1 %v234_v7  ;;  %v2694_v7 = vld [vmem:[%s3411_s1 + $0xc8] sm:$0xff]  }
  0x8b   : > { %266 = vmatpush1.bf16.msra.mxu0 %v233_v8  ;;  %2643 = vmatpush1.bf16.msra.mxu1 %v233_v8  ;;  %v2072_v8 = vld [vmem:[%s3412_s2 + $0x28] sm:$0xff] }
  0x8c   : > { %2552 = vmatprep.subr.bf16.mxu1 %v231_v6  ;;  %2562 = vmatprep.subr.bf16.mxu0 %v2668_v3  ;;  %v596_v11 = vpop.permute.xlu0 %595  ;;  %v592_v17 = vpop.permute.xlu1 %591 }
  0x8d   : > { %v599_v13 = vsel %vm597_vm2, %v594_v12, %v596_v11  ;;  %v598_v20 = vsel %vm597_vm2, %v592_v17, %v594_v12  ;;  %2087 = vperm.xlu1 %2664, %v2069_v4   ;;  %v2695_v12 = vld [vmem:[%s3411_s1 + $0xd0] sm:$0xff]   ;;  %v2698_v17 = vld [vmem:[%s3411_s1 + $0xe8] sm:$0xff]  }
  0x8e   : > { %2313 = vmatmul.mubr.msk.bf16.vlgmr.msra.gmra.mxu0 %vm238_vm1, %v2669_v9  ;;  %2316 = vmatmul.mubr.msk.bf16.vlgmr.msra.gmra.mxu1 %vm238_vm1, %v2670_v10 }
  0x8f   : > { %2553 = vmatpush3.bf16.msra.mxu1 %v231_v6  ;;  %2563 = vmatpush3.bf16.msra.mxu0 %v2668_v3  ;;  %v2070_v6 = vld [vmem:[%s3412_s2 + $0x18] sm:$0xff] }
  0x90   : > { %293 = vmatprep.mubr.bf16.mxu0 %v2713_v0  ;;  %2554 = vmatprep.mubr.msk.bf16.mxu1 %vm238_vm1, %v2669_v9  ;;  %v811_v19 = vpop.permute.xlu1 %810  ;;  %v809_v22 = vpop.permute.xlu0 %808  ;;  %v2071_v9 = vld [vmem:[%s3412_s2 + $0x20] sm:$0xff] }
  0x91   : > { %438 = vmatprep.subr.bf16.mxu1 %v2665_v1  ;;  %629 = vmatprep.subr.bf16.mxu0 %v599_v13  ;;  %v814_v23 = vsel %vm812_vm3, %v809_v22, %v811_v19  ;;  %v2693_v1 = vld [vmem:[%s3411_s1 + $0xc0] sm:$0xff]  }
  0x92   : > { %2092 = vperm.xlu0 %2663, %v2070_v6   ;;  %2097 = vperm.xlu1 %2664, %v2071_v9  }
  0x94   : > { %v807_v25 = vpop.permute.xlu0 %806  ;;  %v1024_v28 = vpop.permute.xlu1 %1023 }
  0x95   : > { %v813_v32 = vsel %vm812_vm3, %v807_v25, %v809_v22  ;;  %v2702_v22 = vld [vmem:[%s3411_s1 + $0x108] sm:$0xff]  }
  0x96   : > { %2314 = vmatmul.mubr.msk.bf16.gmra.mxu0 %vm238_vm1, %v2671_v14  ;;  %2555 = vmatmul.mubr.msk.bf16.vlgmr.msra.gmra.mxu1 %vm238_vm1, %v2671_v14  ;;  %v2696_v14 = vld [vmem:[%s3411_s1 + $0xd8] sm:$0xff]  }
  0x97   : > { %439 = vmatpush1.bf16.msra.mxu1 %v2760_v2  ;;  %303 = vmatprep.mubr.bf16.mxu0 %v2713_v0 }
  0x98   : > { %2558 = vmatprep.mubr.msk.bf16.mxu1 %vm238_vm1, %v2672_v15  ;;  %2572 = vmatprep.subr.bf16.mxu1 %v596_v11  ;;  %v1026_v27 = vpop.permute.xlu0 %1025  ;;  %v1022_v35 = vpop.permute.xlu1 %1021 }
  0x99   : > { %v1029_v29 = vsel %vm1027_vm4, %v1024_v28, %v1026_v27  ;;  %v1028_v38 = vsel %vm1027_vm4, %v1022_v35, %v1024_v28  ;;  %2102 = vperm.xlu0 %2663, %v2072_v8  }
  0x9c   : > { %v1241_v37 = vpop.permute.xlu1 %1240  ;;  %v1239_v40 = vpop.permute.xlu0 %1238 }
  0x9d   : > { %v1244_v41 = vsel %vm1242_vm5, %v1239_v40, %v1241_v37 }
  0x9e   : > { %2315 = vmatmul.mubr.msk.bf16.gmra.mxu0 %vm238_vm1, %v2672_v15  ;;  %2559 = vmatmul.mubr.msk.bf16.gmra.mxu1 %vm238_vm1, %v2670_v10  ;;  %v2074_v10 = vld [vmem:[%s3412_s2 + $0x38] sm:$0xff]  ;;  %v2697_v15 = vld [vmem:[%s3411_s1 + $0xe0] sm:$0xff]  }
  0x9f   : > { %456 = vmatprep.mubr.bf16.mxu1 %v2713_v0  ;;  %2564 = vmatprep.mubr.msk.bf16.mxu0 %vm238_vm1, %v2673_v16 }
  0xa0   : > { %v1237_v43 = vpop.permute.xlu0 %1236  ;;  %v1454_v46 = vpop.permute.xlu1 %1453  ;;  %2112 = vperm.xlu0 %2663, %v2074_v10  }
  0xa1   : > { %v1243_v50 = vsel %vm1242_vm5, %v1237_v43, %v1239_v40 }
  0xa4   : > { %v1456_v45 = vpop.permute.xlu0 %1455  ;;  %v1452_v53 = vpop.permute.xlu1 %1451 }
  0xa5   : > { %v1459_v47 = vsel %vm1457_vm6, %v1454_v46, %v1456_v45  ;;  %v1458_v56 = vsel %vm1457_vm6, %v1452_v53, %v1454_v46 }
  0xa6   : > { %2325 = vmatmul.mubr.msk.bf16.vlgmr.msra.gmra.mxu1 %vm238_vm1, %v2673_v16  ;;  %2565 = vmatmul.mubr.msk.bf16.vlgmr.msra.gmra.mxu0 %vm238_vm1, %v2674_v18 }
  0xa7   : > { %630 = vmatpush1.bf16.msra.mxu0 %v598_v20  ;;  %2573 = vmatpush3.bf16.msra.mxu1 %v596_v11  ;;  %v2073_v11 = vld [vmem:[%s3412_s2 + $0x30] sm:$0xff]  ;;  %v2700_v20 = vld [vmem:[%s3411_s1 + $0xf8] sm:$0xff]  }
  0xa8   : > { %466 = vmatprep.mubr.bf16.mxu1 %v2713_v0  ;;  %2568 = vmatprep.mubr.msk.bf16.mxu0 %vm238_vm1, %v2675_v21  ;;  %v1671_v55 = vpop.permute.xlu1 %1670  ;;  %v1669_v58 = vpop.permute.xlu0 %1668 }
  0xa9   : > { %2582 = vmatprep.subr.bf16.mxu0 %v811_v19  ;;  %844 = vmatprep.subr.bf16.mxu1 %v814_v23  ;;  %v1674_v59 = vsel %vm1672_vm7, %v1669_v58, %v1671_v55 }
  0xaa   : > { %2107 = vperm.xlu1 %2664, %v2073_v11  }
  0xac   : > { %v1667_v62 = vpop.permute.xlu0 %1666  ;;  %v1884_v3 = vpop.permute.xlu1 %1883 }
  0xad   : > { %v1673_v13 = vsel %vm1672_vm7, %v1667_v62, %v1669_v58 }
  0xae   : > { %2326 = vmatmul.mubr.msk.bf16.gmra.mxu1 %vm238_vm1, %v2674_v18  ;;  %2569 = vmatmul.mubr.msk.bf16.gmra.mxu0 %vm238_vm1, %v2676_v24 }
  0xaf   : > { %476 = vmatprep.mubr.bf16.mxu1 %v2713_v0  ;;  %647 = vmatprep.mubr.bf16.mxu0 %v2713_v0 }
  0xb0   : > { %v1886_v2 = vpop.permute.xlu0 %1885  ;;  %v1882_v16 = vpop.permute.xlu1 %1881 }
  0xb1   : > { %v1889_v5 = vsel %vm1887_vm8, %v1884_v3, %v1886_v2  ;;  %v1888_v18 = vsel %vm1887_vm8, %v1882_v16, %v1884_v3 }
  0xb6   : > { %2327 = vmatmul.mubr.msk.bf16.gmra.mxu1 %vm238_vm1, %v2675_v21  ;;  %2345 = vmatmul.mubr.msk.bf16.vlgmr.msra.gmra.mxu0 %vm238_vm1, %v2677_v26  ;;  %v2701_v21 = vld [vmem:[%s3411_s1 + $0x100] sm:$0xff]  }
  0xb7   : > { %2583 = vmatpush3.bf16.msra.mxu0 %v811_v19  ;;  %486 = vmatprep.mubr.bf16.mxu1 %v2713_v0  ;;  %v2699_v19 = vld [vmem:[%s3411_s1 + $0xf0] sm:$0xff]  }
  0xb8   : > { %657 = vmatprep.mubr.bf16.mxu0 %v2713_v0  ;;  %1059 = vmatprep.subr.bf16.mxu0 %v1029_v29  ;;  %v2703_v29 = vld [vmem:[%s3411_s1 + $0x110] sm:$0xff]  }
  0xbe   : > { %2328 = vmatmul.mubr.msk.bf16.gmra.mxu1 %vm238_vm1, %v2676_v24  ;;  %2346 = vmatmul.mubr.msk.bf16.gmra.mxu0 %vm238_vm1, %v2678_v30 }
  0xbf   : > { %667 = vmatprep.mubr.bf16.mxu0 %v2713_v0  ;;  %2574 = vmatprep.mubr.msk.bf16.mxu1 %vm238_vm1, %v2677_v26 }
  0xc6   : > { %2347 = vmatmul.mubr.msk.bf16.gmra.mxu0 %vm238_vm1, %v2679_v31  ;;  %2575 = vmatmul.mubr.msk.bf16.vlgmr.msra.gmra.mxu1 %vm238_vm1, %v2678_v30 }
  0xc7   : > { %845 = vmatpush1.bf16.msra.mxu1 %v813_v32  ;;  %677 = vmatprep.mubr.bf16.mxu0 %v2713_v0 }
  0xc8   : > { %2578 = vmatprep.mubr.msk.bf16.mxu1 %vm238_vm1, %v2679_v31  ;;  %2592 = vmatprep.subr.bf16.mxu1 %v1026_v27 }
  0xce   : > { %2348 = vmatmul.mubr.msk.bf16.gmra.mxu0 %vm238_vm1, %v2680_v33  ;;  %2579 = vmatmul.mubr.msk.bf16.gmra.mxu1 %vm238_vm1, %v2680_v33 }
  0xcf   : > { %862 = vmatprep.mubr.bf16.mxu1 %v2713_v0  ;;  %2584 = vmatprep.mubr.msk.bf16.mxu0 %vm238_vm1, %v2681_v34 }
  0xd6   : > { %2365 = vmatmul.mubr.msk.bf16.vlgmr.msra.gmra.mxu1 %vm238_vm1, %v2681_v34  ;;  %2585 = vmatmul.mubr.msk.bf16.vlgmr.msra.gmra.mxu0 %vm238_vm1, %v2682_v36 }
  0xd7   : > { %1060 = vmatpush1.bf16.msra.mxu0 %v1028_v38  ;;  %2593 = vmatpush3.bf16.msra.mxu1 %v1026_v27  ;;  %v2704_v38 = vld [vmem:[%s3411_s1 + $0x118] sm:$0xff]  }
  0xd8   : > { %872 = vmatprep.mubr.bf16.mxu1 %v2713_v0  ;;  %2588 = vmatprep.mubr.msk.bf16.mxu0 %vm238_vm1, %v2683_v39 }
  0xd9   : > { %2602 = vmatprep.subr.bf16.mxu0 %v1241_v37  ;;  %1274 = vmatprep.subr.bf16.mxu1 %v1244_v41 }
  0xde   : > { %2366 = vmatmul.mubr.msk.bf16.gmra.mxu1 %vm238_vm1, %v2682_v36  ;;  %2589 = vmatmul.mubr.msk.bf16.gmra.mxu0 %vm238_vm1, %v2684_v42 }
  0xdf   : > { %882 = vmatprep.mubr.bf16.mxu1 %v2713_v0  ;;  %1077 = vmatprep.mubr.bf16.mxu0 %v2713_v0 }
  0xe6   : > { %2367 = vmatmul.mubr.msk.bf16.gmra.mxu1 %vm238_vm1, %v2683_v39  ;;  %2385 = vmatmul.mubr.msk.bf16.vlgmr.msra.gmra.mxu0 %vm238_vm1, %v2685_v44 }
  0xe7   : > { %2603 = vmatpush3.bf16.msra.mxu0 %v1241_v37  ;;  %892 = vmatprep.mubr.bf16.mxu1 %v2713_v0 }
  0xe8   : > { %1087 = vmatprep.mubr.bf16.mxu0 %v2713_v0  ;;  %1489 = vmatprep.subr.bf16.mxu0 %v1459_v47 }
  0xee   : > { %2368 = vmatmul.mubr.msk.bf16.gmra.mxu1 %vm238_vm1, %v2684_v42  ;;  %2386 = vmatmul.mubr.msk.bf16.gmra.mxu0 %vm238_vm1, %v2686_v48 }
  0xef   : > { %1097 = vmatprep.mubr.bf16.mxu0 %v2713_v0  ;;  %2594 = vmatprep.mubr.msk.bf16.mxu1 %vm238_vm1, %v2685_v44 }
  0xf6   : > { %2387 = vmatmul.mubr.msk.bf16.gmra.mxu0 %vm238_vm1, %v2687_v49  ;;  %2595 = vmatmul.mubr.msk.bf16.vlgmr.msra.gmra.mxu1 %vm238_vm1, %v2686_v48 }
  0xf7   : > { %1275 = vmatpush1.bf16.msra.mxu1 %v1243_v50  ;;  %1107 = vmatprep.mubr.bf16.mxu0 %v2713_v0 }
  0xf8   : > { %2598 = vmatprep.mubr.msk.bf16.mxu1 %vm238_vm1, %v2687_v49  ;;  %2612 = vmatprep.subr.bf16.mxu1 %v1456_v45 }
  0xfe   : > { %2388 = vmatmul.mubr.msk.bf16.gmra.mxu0 %vm238_vm1, %v2688_v51  ;;  %2599 = vmatmul.mubr.msk.bf16.gmra.mxu1 %vm238_vm1, %v2688_v51 }
  0xff   : > { %1292 = vmatprep.mubr.bf16.mxu1 %v2713_v0  ;;  %2604 = vmatprep.mubr.msk.bf16.mxu0 %vm238_vm1, %v2689_v52 }
 0x106   : > { %2405 = vmatmul.mubr.msk.bf16.vlgmr.msra.gmra.mxu1 %vm238_vm1, %v2689_v52  ;;  %2605 = vmatmul.mubr.msk.bf16.vlgmr.msra.gmra.mxu0 %vm238_vm1, %v2690_v54 }
 0x107   : > { %1490 = vmatpush1.bf16.msra.mxu0 %v1458_v56  ;;  %2613 = vmatpush3.bf16.msra.mxu1 %v1456_v45 }
 0x108   : > { %1302 = vmatprep.mubr.bf16.mxu1 %v2713_v0  ;;  %2608 = vmatprep.mubr.msk.bf16.mxu0 %vm238_vm1, %v2691_v57 }
 0x109   : > { %2622 = vmatprep.subr.bf16.mxu0 %v1671_v55  ;;  %1704 = vmatprep.subr.bf16.mxu1 %v1674_v59 }
 0x10e   : > { %2406 = vmatmul.mubr.msk.bf16.gmra.mxu1 %vm238_vm1, %v2690_v54  ;;  %2609 = vmatmul.mubr.msk.bf16.gmra.mxu0 %vm238_vm1, %v2692_v60 }
 0x10f   : > { %1312 = vmatprep.mubr.bf16.mxu1 %v2713_v0  ;;  %1507 = vmatprep.mubr.bf16.mxu0 %v2713_v0 }
 0x116   : > { %2407 = vmatmul.mubr.msk.bf16.gmra.mxu1 %vm238_vm1, %v2691_v57  ;;  %2425 = vmatmul.mubr.msk.bf16.vlgmr.msra.gmra.mxu0 %vm238_vm1, %v2693_v1 }
 0x117   : > { %2623 = vmatpush3.bf16.msra.mxu0 %v1671_v55  ;;  %1322 = vmatprep.mubr.bf16.mxu1 %v2713_v0 }
 0x118   : > { %1517 = vmatprep.mubr.bf16.mxu0 %v2713_v0  ;;  %1919 = vmatprep.subr.bf16.mxu0 %v1889_v5 }
 0x11e   : > { %2408 = vmatmul.mubr.msk.bf16.gmra.mxu1 %vm238_vm1, %v2692_v60  ;;  %2426 = vmatmul.mubr.msk.bf16.gmra.mxu0 %vm238_vm1, %v2694_v7 }
 0x11f   : > { %1527 = vmatprep.mubr.bf16.mxu0 %v2713_v0  ;;  %2614 = vmatprep.mubr.msk.bf16.mxu1 %vm238_vm1, %v2693_v1 }
 0x126   : > { %2427 = vmatmul.mubr.msk.bf16.gmra.mxu0 %vm238_vm1, %v2695_v12  ;;  %2615 = vmatmul.mubr.msk.bf16.vlgmr.msra.gmra.mxu1 %vm238_vm1, %v2694_v7 }
 0x127   : > { %1705 = vmatpush1.bf16.msra.mxu1 %v1673_v13  ;;  %1537 = vmatprep.mubr.bf16.mxu0 %v2713_v0 }
 0x128   : > { %2618 = vmatprep.mubr.msk.bf16.mxu1 %vm238_vm1, %v2695_v12  ;;  %2632 = vmatprep.subr.bf16.mxu1 %v1886_v2 }
 0x12e   : > { %2428 = vmatmul.mubr.msk.bf16.gmra.mxu0 %vm238_vm1, %v2696_v14  ;;  %2619 = vmatmul.mubr.msk.bf16.gmra.mxu1 %vm238_vm1, %v2696_v14 }
 0x12f   : > { %1722 = vmatprep.mubr.bf16.mxu1 %v2713_v0  ;;  %2624 = vmatprep.mubr.msk.bf16.mxu0 %vm238_vm1, %v2697_v15 }
 0x136   : > { %2445 = vmatmul.mubr.msk.bf16.vlgmr.msra.gmra.mxu1 %vm238_vm1, %v2697_v15  ;;  %2625 = vmatmul.mubr.msk.bf16.vlgmr.msra.gmra.mxu0 %vm238_vm1, %v2698_v17 }
 0x137   : > { %1920 = vmatpush1.bf16.msra.mxu0 %v1888_v18  ;;  %2633 = vmatpush3.bf16.msra.mxu1 %v1886_v2 }
 0x138   : > { %1732 = vmatprep.mubr.bf16.mxu1 %v2713_v0  ;;  %2628 = vmatprep.mubr.msk.bf16.mxu0 %vm238_vm1, %v2699_v19 }
 0x13e   : > { %2446 = vmatmul.mubr.msk.bf16.gmra.mxu1 %vm238_vm1, %v2698_v17  ;;  %2629 = vmatmul.mubr.msk.bf16.gmra.mxu0 %vm238_vm1, %v2700_v20 }
 0x13f   : > { %1742 = vmatprep.mubr.bf16.mxu1 %v2713_v0  ;;  %1937 = vmatprep.mubr.bf16.mxu0 %v2713_v0 }
 0x146   : > { %2447 = vmatmul.mubr.msk.bf16.gmra.mxu1 %vm238_vm1, %v2699_v19  ;;  %2465 = vmatmul.mubr.msk.bf16.vlgmr.msra.gmra.mxu0 %vm238_vm1, %v2701_v21 }
 0x147   : > { %1752 = vmatprep.mubr.bf16.mxu1 %v2713_v0  ;;  %1947 = vmatprep.mubr.bf16.mxu0 %v2713_v0 }
 0x14e   : > { %v285_v23 = vpop.f32.mrf.mxu0  ;;  %v3007_v24 = vpop.f32.mrf.mxu1  ;;  %2448 = vmatmul.mubr.msk.bf16.gmra.mxu1 %vm238_vm1, %v2700_v20  ;;  %2466 = vmatmul.mubr.msk.bf16.gmra.mxu0 %vm238_vm1, %v2702_v22 }
 0x14f   : > { %1957 = vmatprep.mubr.bf16.mxu0 %v2713_v0  ;;  %2634 = vmatprep.mubr.msk.bf16.mxu1 %vm238_vm1, %v2701_v21 }
 0x150   : > { %v287_v25 = vpop.f32.mrf.mxu0  ;;  %v3013_v26 = vpop.f32.mrf.mxu1 }
 0x152   : > { %v289_v27 = vpop.f32.mrf.mxu0  ;;  %v3015_v28 = vpop.f32.mrf.mxu1 }
 0x154   : > { %v291_v30 = vpop.f32.mrf.mxu0  ;;  %v3020_v31 = vpop.f32.mrf.mxu1 }
 0x156   : > { %v295_v32 = vpop.f32.mrf.mxu0  ;;  %v2556_v33 = vpop.f32.mrf.mxu1  ;;  %2467 = vmatmul.mubr.msk.bf16.gmra.mxu0 %vm238_vm1, %v2703_v29  ;;  %2635 = vmatmul.mubr.msk.bf16.vlgmr.msra.gmra.mxu1 %vm238_vm1, %v2702_v22 }
 0x157   : > { %1967 = vmatprep.mubr.bf16.mxu0 %v2713_v0  ;;  %2638 = vmatprep.mubr.msk.bf16.mxu1 %vm238_vm1, %v2703_v29 }
 0x158   : > { %v297_v34 = vpop.f32.mrf.mxu0  ;;  %v358_v35 = vpop.f32.mrf.mxu1 }
 0x15a   : > { %v299_v36 = vpop.f32.mrf.mxu0  ;;  %v2557_v37 = vpop.f32.mrf.mxu1 }
 0x15c   : > { %v301_v39 = vpop.f32.mrf.mxu0  ;;  %v361_v40 = vpop.f32.mrf.mxu1 }
 0x15e   : > { %v305_v41 = vpop.f32.mrf.mxu0  ;;  %v2560_v42 = vpop.f32.mrf.mxu1  ;;  %2468 = vmatmul.mubr.msk.bf16.gmra.mxu0 %vm238_vm1, %v2704_v38  ;;  %2639 = vmatmul.mubr.msk.bf16.gmra.mxu1 %vm238_vm1, %v2704_v38 }
 0x160   : > { %v307_v43 = vpop.f32.mrf.mxu0  ;;  %v374_v0 = vpop.f32.mrf.mxu1 }
 0x162   : > { %v309_v44 = vpop.f32.mrf.mxu0  ;;  %v2561_v45 = vpop.f32.mrf.mxu1 }
 0x164   : > { %v311_v46 = vpop.f32.mrf.mxu0  ;;  %v377_v47 = vpop.f32.mrf.mxu1 }
 0x166   : > { %v458_v48 = vpop.f32.mrf.mxu1  ;;  %v2566_v49 = vpop.f32.mrf.mxu0 }
 0x167   : > { %v459_v50 = vadd.f32 %v458_v48, %v285_v23  ;;  %v3031_v51 = vadd.f32 %v2566_v49, %v2556_v33 }
 0x168   : > { %v460_v52 = vpop.f32.mrf.mxu1  ;;  %v531_v53 = vpop.f32.mrf.mxu0 }
 0x169   : > { %v461_v54 = vadd.f32 %v460_v52, %v287_v25  ;;  %v3033_v55 = vadd.f32 %v531_v53, %v358_v35 }
 0x16a   : > { %v462_v56 = vpop.f32.mrf.mxu1  ;;  %v2567_v57 = vpop.f32.mrf.mxu0 }
 0x16b   : > { %v463_v58 = vadd.f32 %v462_v56, %v289_v27  ;;  %v3035_v59 = vadd.f32 %v2567_v57, %v2557_v37 }
 0x16c   : > { %v464_v60 = vpop.f32.mrf.mxu1  ;;  %v534_v61 = vpop.f32.mrf.mxu0 }
 0x16d   : > { %v465_v62 = vadd.f32 %v464_v60, %v291_v30  ;;  %v3037_v63 = vadd.f32 %v534_v61, %v361_v40 }
 0x16e   : > { %v468_v1 = vpop.f32.mrf.mxu1  ;;  %v2570_v2 = vpop.f32.mrf.mxu0 }
 0x16f   : > { %v469_v3 = vadd.f32 %v468_v1, %v295_v32  ;;  %v3039_v4 = vadd.f32 %v2570_v2, %v2560_v42 }
 0x170   : > { %v470_v5 = vpop.f32.mrf.mxu1  ;;  %v547_v6 = vpop.f32.mrf.mxu0 }
 0x171   : > { %v471_v7 = vadd.f32 %v470_v5, %v297_v34  ;;  %v3041_v8 = vadd.f32 %v547_v6, %v374_v0 }
 0x172   : > { %v472_v9 = vpop.f32.mrf.mxu1  ;;  %v2571_v10 = vpop.f32.mrf.mxu0 }
 0x173   : > { %v473_v11 = vadd.f32 %v472_v9, %v299_v36  ;;  %v3043_v12 = vadd.f32 %v2571_v10, %v2561_v45 }
 0x174   : > { %v474_v13 = vpop.f32.mrf.mxu1  ;;  %v550_v14 = vpop.f32.mrf.mxu0 }
 0x175   : > { %v475_v15 = vadd.f32 %v474_v13, %v301_v39  ;;  %v3045_v16 = vadd.f32 %v550_v14, %v377_v47 }
 0x176   : > { %v478_v17 = vpop.f32.mrf.mxu1  ;;  %v649_v18 = vpop.f32.mrf.mxu0 }
 0x177   : > { %v479_v19 = vadd.f32 %v478_v17, %v305_v41  ;;  %v3047_v20 = vadd.f32 %v649_v18, %v459_v50 }
 0x178   : > { %v480_v21 = vpop.f32.mrf.mxu1  ;;  %v651_v22 = vpop.f32.mrf.mxu0 }
 0x179   : > { %v481_v23 = vadd.f32 %v480_v21, %v307_v43  ;;  %v3049_v25 = vadd.f32 %v651_v22, %v461_v54 }
 0x17a   : > { %v482_v27 = vpop.f32.mrf.mxu1  ;;  %v653_v29 = vpop.f32.mrf.mxu0 }
 0x17b   : > { %v483_v30 = vadd.f32 %v482_v27, %v309_v44  ;;  %v3051_v32 = vadd.f32 %v653_v29, %v463_v58 }
 0x17c   : > { %v484_v33 = vpop.f32.mrf.mxu1  ;;  %v655_v34 = vpop.f32.mrf.mxu0 }
 0x17d   : > { %v485_v35 = vadd.f32 %v484_v33, %v311_v46  ;;  %v3053_v36 = vadd.f32 %v655_v34, %v465_v62 }
 0x17e   : > { %v488_v37 = vpop.f32.mrf.mxu1  ;;  %v659_v38 = vpop.f32.mrf.mxu0 }
 0x17f   : > { %v489_v39 = vadd.f32 %v488_v37, %v3007_v24  ;;  %v3056_v40 = vadd.f32 %v659_v38, %v469_v3 }
 0x180   : > { %v490_v41 = vpop.f32.mrf.mxu1  ;;  %v661_v42 = vpop.f32.mrf.mxu0 }
 0x181   : > { %v491_v43 = vadd.f32 %v490_v41, %v3013_v26  ;;  %v3059_v0 = vadd.f32 %v661_v42, %v471_v7 }
 0x182   : > { %v492_v44 = vpop.f32.mrf.mxu1  ;;  %v663_v45 = vpop.f32.mrf.mxu0 }
 0x183   : > { %v493_v47 = vadd.f32 %v492_v44, %v3015_v28  ;;  %v3062_v48 = vadd.f32 %v663_v45, %v473_v11 }
 0x184   : > { %v494_v46 = vpop.f32.mrf.mxu1  ;;  %v665_v49 = vpop.f32.mrf.mxu0 }
 0x185   : > { %v495_v50 = vadd.f32 %v494_v46, %v3020_v31  ;;  %v3065_v52 = vadd.f32 %v665_v49, %v475_v15 }
 0x186   : > { %v669_v24 = vpop.f32.mrf.mxu0  ;;  %v2576_v53 = vpop.f32.mrf.mxu1 }
 0x187   : > { %v3067_v54 = vadd.f32 %v669_v24, %v479_v19  ;;  %v761_v26 = vadd.f32 %v2576_v53, %v3031_v51 }
 0x188   : > { %v671_v56 = vpop.f32.mrf.mxu0  ;;  %v722_v57 = vpop.f32.mrf.mxu1 }
 0x189   : > { %v3070_v58 = vadd.f32 %v671_v56, %v481_v23  ;;  %v755_v28 = vadd.f32 %v722_v57, %v3033_v55 }
 0x18a   : > { %v673_v60 = vpop.f32.mrf.mxu0  ;;  %v2577_v61 = vpop.f32.mrf.mxu1 }
 0x18b   : > { %v3073_v62 = vadd.f32 %v673_v60, %v483_v30  ;;  %v764_v31 = vadd.f32 %v2577_v61, %v3035_v59 }
 0x18c   : > { %v675_v1 = vpop.f32.mrf.mxu0  ;;  %v725_v2 = vpop.f32.mrf.mxu1 }
 0x18d   : > { %v3076_v3 = vadd.f32 %v675_v1, %v485_v35  ;;  %v758_v5 = vadd.f32 %v725_v2, %v3037_v63 }
 0x18e   : > { %v679_v6 = vpop.f32.mrf.mxu0  ;;  %v2580_v51 = vpop.f32.mrf.mxu1 }
 0x18f   : > { %v3079_v7 = vadd.f32 %v679_v6, %v489_v39  ;;  %v773_v9 = vadd.f32 %v2580_v51, %v3039_v4 }
 0x190   : > { %v681_v10 = vpop.f32.mrf.mxu0  ;;  %v738_v55 = vpop.f32.mrf.mxu1 }
 0x191   : > { %v3082_v11 = vadd.f32 %v681_v10, %v491_v43  ;;  %v767_v13 = vadd.f32 %v738_v55, %v3041_v8 }
 0x192   : > { %v683_v14 = vpop.f32.mrf.mxu0  ;;  %v2581_v59 = vpop.f32.mrf.mxu1 }
 0x193   : > { %v3085_v15 = vadd.f32 %v683_v14, %v493_v47  ;;  %v776_v17 = vadd.f32 %v2581_v59, %v3043_v12 }
 0x194   : > { %v685_v18 = vpop.f32.mrf.mxu0  ;;  %v741_v63 = vpop.f32.mrf.mxu1 }
 0x195   : > { %v3088_v19 = vadd.f32 %v685_v18, %v495_v50  ;;  %v770_v21 = vadd.f32 %v741_v63, %v3045_v16 }
 0x196   : > { %v864_v22 = vpop.f32.mrf.mxu1  ;;  %v2586_v4 = vpop.f32.mrf.mxu0 }
 0x197   : > { %v968_v23 = vadd.f32 %v864_v22, %v3047_v20  ;;  %v3092_v27 = vadd.f32 %v2586_v4, %v761_v26 }
 0x198   : > { %v866_v29 = vpop.f32.mrf.mxu1  ;;  %v937_v8 = vpop.f32.mrf.mxu0 }
 0x199   : > { %v969_v30 = vadd.f32 %v866_v29, %v3049_v25  ;;  %v3095_v33 = vadd.f32 %v937_v8, %v755_v28 }
 0x19a   : > { %v868_v34 = vpop.f32.mrf.mxu1  ;;  %v2587_v12 = vpop.f32.mrf.mxu0 }
 0x19b   : > { %v971_v35 = vadd.f32 %v868_v34, %v3051_v32  ;;  %v3098_v37 = vadd.f32 %v2587_v12, %v764_v31 }
 0x19c   : > { %v870_v38 = vpop.f32.mrf.mxu1  ;;  %v940_v16 = vpop.f32.mrf.mxu0 }
 0x19d   : > { %v972_v39 = vadd.f32 %v870_v38, %v3053_v36  ;;  %v3101_v41 = vadd.f32 %v940_v16, %v758_v5 }
 0x19e   : > { %v874_v20 = vpop.f32.mrf.mxu1  ;;  %v2590_v42 = vpop.f32.mrf.mxu0 }
 0x19f   : > { %v974_v43 = vadd.f32 %v874_v20, %v3056_v40  ;;  %v3104_v44 = vadd.f32 %v2590_v42, %v773_v9 }
 0x1a0   : > { %v876_v25 = vpop.f32.mrf.mxu1  ;;  %v953_v45 = vpop.f32.mrf.mxu0 }
 0x1a1   : > { %v975_v47 = vadd.f32 %v876_v25, %v3059_v0  ;;  %v3107_v46 = vadd.f32 %v953_v45, %v767_v13 }
 0x1a2   : > { %v878_v32 = vpop.f32.mrf.mxu1  ;;  %v2591_v49 = vpop.f32.mrf.mxu0 }
 0x1a3   : > { %v977_v50 = vadd.f32 %v878_v32, %v3062_v48  ;;  %v3110_v24 = vadd.f32 %v2591_v49, %v776_v17 }
 0x1a4   : > { %v880_v36 = vpop.f32.mrf.mxu1  ;;  %v956_v53 = vpop.f32.mrf.mxu0 }
 0x1a5   : > { %v978_v26 = vadd.f32 %v880_v36, %v3065_v52  ;;  %v3113_v56 = vadd.f32 %v956_v53, %v770_v21 }
 0x1a6   : > { %v884_v40 = vpop.f32.mrf.mxu1  ;;  %v1079_v57 = vpop.f32.mrf.mxu0 }
 0x1a7   : > { %v980_v28 = vadd.f32 %v884_v40, %v3067_v54  ;;  %v3116_v60 = vadd.f32 %v1079_v57, %v968_v23 }
 0x1a8   : > { %v886_v0 = vpop.f32.mrf.mxu1  ;;  %v1081_v61 = vpop.f32.mrf.mxu0 }
 0x1a9   : > { %v981_v31 = vadd.f32 %v886_v0, %v3070_v58  ;;  %v3119_v1 = vadd.f32 %v1081_v61, %v969_v30 }
 0x1aa   : > { %v888_v48 = vpop.f32.mrf.mxu1  ;;  %v1083_v2 = vpop.f32.mrf.mxu0 }
 0x1ab   : > { %v983_v5 = vadd.f32 %v888_v48, %v3073_v62  ;;  %v3122_v6 = vadd.f32 %v1083_v2, %v971_v35 }
 0x1ac   : > { %v890_v52 = vpop.f32.mrf.mxu1  ;;  %v1085_v51 = vpop.f32.mrf.mxu0 }
 0x1ad   : > { %v984_v9 = vadd.f32 %v890_v52, %v3076_v3  ;;  %v3125_v10 = vadd.f32 %v1085_v51, %v972_v39 }
 0x1ae   : > { %v894_v54 = vpop.f32.mrf.mxu1  ;;  %v1089_v55 = vpop.f32.mrf.mxu0 }
 0x1af   : > { %v986_v13 = vadd.f32 %v894_v54, %v3079_v7  ;;  %v3128_v14 = vadd.f32 %v1089_v55, %v974_v43 }
 0x1b0   : > { %v896_v58 = vpop.f32.mrf.mxu1  ;;  %v1091_v59 = vpop.f32.mrf.mxu0 }
 0x1b1   : > { %v987_v17 = vadd.f32 %v896_v58, %v3082_v11  ;;  %v3131_v18 = vadd.f32 %v1091_v59, %v975_v47 }
 0x1b2   : > { %v898_v62 = vpop.f32.mrf.mxu1  ;;  %v1093_v63 = vpop.f32.mrf.mxu0 }
 0x1b3   : > { %v989_v21 = vadd.f32 %v898_v62, %v3085_v15  ;;  %v3134_v22 = vadd.f32 %v1093_v63, %v977_v50 }
 0x1b4   : > { %v900_v3 = vpop.f32.mrf.mxu1  ;;  %v1095_v4 = vpop.f32.mrf.mxu0 }
 0x1b5   : > { %v990_v23 = vadd.f32 %v900_v3, %v3088_v19  ;;  %v3137_v29 = vadd.f32 %v1095_v4, %v978_v26 }
 0x1b6   : > { %v1099_v7 = vpop.f32.mrf.mxu0  ;;  %v2596_v8 = vpop.f32.mrf.mxu1 }
 0x1b7   : > { %v3139_v30 = vadd.f32 %v1099_v7, %v980_v28  ;;  %v1191_v11 = vadd.f32 %v2596_v8, %v3092_v27 }
 0x1b8   : > { %v1101_v34 = vpop.f32.mrf.mxu0  ;;  %v1152_v12 = vpop.f32.mrf.mxu1 }
 0x1b9   : > { %v3142_v35 = vadd.f32 %v1101_v34, %v981_v31  ;;  %v1185_v15 = vadd.f32 %v1152_v12, %v3095_v33 }
 0x1ba   : > { %v1103_v38 = vpop.f32.mrf.mxu0  ;;  %v2597_v16 = vpop.f32.mrf.mxu1 }
 0x1bb   : > { %v3145_v39 = vadd.f32 %v1103_v38, %v983_v5  ;;  %v1194_v19 = vadd.f32 %v2597_v16, %v3098_v37 }
 0x1bc   : > { %v1105_v20 = vpop.f32.mrf.mxu0  ;;  %v1155_v42 = vpop.f32.mrf.mxu1 }
 0x1bd   : > { %v3148_v43 = vadd.f32 %v1105_v20, %v984_v9  ;;  %v1188_v25 = vadd.f32 %v1155_v42, %v3101_v41 }
 0x1be   : > { %v1109_v45 = vpop.f32.mrf.mxu0  ;;  %v2600_v27 = vpop.f32.mrf.mxu1 }
 0x1bf   : > { %v3151_v47 = vadd.f32 %v1109_v45, %v986_v13  ;;  %v1203_v32 = vadd.f32 %v2600_v27, %v3104_v44 }
 0x1c0   : > { %v1111_v49 = vpop.f32.mrf.mxu0  ;;  %v1168_v33 = vpop.f32.mrf.mxu1 }
 0x1c1   : > { %v3154_v50 = vadd.f32 %v1111_v49, %v987_v17  ;;  %v1197_v36 = vadd.f32 %v1168_v33, %v3107_v46 }
 0x1c2   : > { %v1113_v53 = vpop.f32.mrf.mxu0  ;;  %v2601_v37 = vpop.f32.mrf.mxu1 }
 0x1c3   : > { %v3157_v26 = vadd.f32 %v1113_v53, %v989_v21  ;;  %v1206_v40 = vadd.f32 %v2601_v37, %v3110_v24 }
 0x1c4   : > { %v1115_v57 = vpop.f32.mrf.mxu0  ;;  %v1171_v41 = vpop.f32.mrf.mxu1 }
 0x1c5   : > { %v3160_v28 = vadd.f32 %v1115_v57, %v990_v23  ;;  %v1200_v0 = vadd.f32 %v1171_v41, %v3113_v56 }
 0x1c6   : > { %v3163_v61 = vpop.f32.mrf.mxu1  ;;  %v2606_v44 = vpop.f32.mrf.mxu0 }
 0x1c7   : > { %v3165_v31 = vadd.f32 %v2606_v44, %v1191_v11 }
 0x1c8   : > { %v3167_v48 = vpop.f32.mrf.mxu1  ;;  %v1367_v46 = vpop.f32.mrf.mxu0 }
 0x1c9   : > { %v3169_v2 = vadd.f32 %v1367_v46, %v1185_v15 }
 0x1ca   : > { %v3171_v5 = vpop.f32.mrf.mxu1  ;;  %v2607_v52 = vpop.f32.mrf.mxu0 }
 0x1cb   : > { %v3173_v24 = vadd.f32 %v2607_v52, %v1194_v19 }
 0x1cc   : > { %v3175_v51 = vpop.f32.mrf.mxu1  ;;  %v1370_v9 = vpop.f32.mrf.mxu0 }
 0x1cd   : > { %3414 = vst [vmem:[#allocation2_spill] sm:$0xff] %v3173_v24  ;;  %v3177_v54 = vadd.f32 %v1370_v9, %v1188_v25 }
 0x1ce   : > { %v3179_v56 = vpop.f32.mrf.mxu1  ;;  %v2610_v55 = vpop.f32.mrf.mxu0 }
 0x1cf   : > { %3415 = vst [vmem:[#allocation3_spill] sm:$0xff] %v3177_v54  ;;  %v3181_v13 = vadd.f32 %v2610_v55, %v1203_v32 }
 0x1d0   : > { %v3183_v58 = vpop.f32.mrf.mxu1  ;;  %v1383_v59 = vpop.f32.mrf.mxu0 }
 0x1d1   : > { %3416 = vst [vmem:[#allocation4_spill] sm:$0xff] %v3181_v13  ;;  %v3185_v17 = vadd.f32 %v1383_v59, %v1197_v36 }
 0x1d2   : > { %v3187_v62 = vpop.f32.mrf.mxu1  ;;  %v2611_v63 = vpop.f32.mrf.mxu0 }
 0x1d3   : > { %3417 = vst [vmem:[#allocation5_spill] sm:$0xff] %v3185_v17  ;;  %v3189_v21 = vadd.f32 %v2611_v63, %v1206_v40 }
 0x1d4   : > { %v3191_v3 = vpop.f32.mrf.mxu1  ;;  %v1386_v4 = vpop.f32.mrf.mxu0 }
 0x1d5   : > { %3418 = vst [vmem:[#allocation6_spill] sm:$0xff] %v3189_v21  ;;  %v3193_v23 = vadd.f32 %v1386_v4, %v1200_v0 }
 0x1d6   : > { %v3195_v7 = vpop.f32.mrf.mxu1  ;;  %v1509_v8 = vpop.f32.mrf.mxu0 }
 0x1d7   : > { %3419 = vst [vmem:[#allocation7_spill] sm:$0xff] %v3193_v23 }
 0x1d8   : > { %v3197_v11 = vpop.f32.mrf.mxu1  ;;  %v1511_v34 = vpop.f32.mrf.mxu0 }
 0x1da   : > { %v3199_v12 = vpop.f32.mrf.mxu1  ;;  %v1513_v15 = vpop.f32.mrf.mxu0 }
 0x1dc   : > { %v3201_v38 = vpop.f32.mrf.mxu1  ;;  %v1515_v16 = vpop.f32.mrf.mxu0 }
 0x1de   : > { %v3203_v19 = vpop.f32.mrf.mxu1  ;;  %v1519_v20 = vpop.f32.mrf.mxu0 }
 0x1e0   : > { %v3205_v42 = vpop.f32.mrf.mxu1  ;;  %v3207_v25 = vpop.f32.mrf.mxu0 }
 0x1e2   : > { %v3209_v45 = vpop.f32.mrf.mxu1  ;;  %v3211_v27 = vpop.f32.mrf.mxu0 }
 0x1e4   : > { %v3213_v32 = vpop.f32.mrf.mxu1  ;;  %v3215_v49 = vpop.f32.mrf.mxu0 }
 0x1e6   : > { %v3217_v33 = vpop.f32.mrf.mxu0  ;;  %v3219_v36 = vpop.f32.mrf.mxu1 }
 0x1e8   : > { %v3221_v53 = vpop.f32.mrf.mxu0  ;;  %v3223_v37 = vpop.f32.mrf.mxu1 }
 0x1e9   : > { %3420 = vst [vmem:[#allocation8_spill] sm:$0xff] %v3223_v37 }
 0x1ea   : > { %v3225_v40 = vpop.f32.mrf.mxu0  ;;  %v3227_v57 = vpop.f32.mrf.mxu1 }
 0x1eb   : > { %3421 = vst [vmem:[#allocation9_spill] sm:$0xff] %v3225_v40  ;;  %3422 = vst [vmem:[#allocation10_spill] sm:$0xff] %v3227_v57 }
 0x1ec   : > { %v3229_v41 = vpop.f32.mrf.mxu0  ;;  %v3231_v0 = vpop.f32.mrf.mxu1 }
 0x1ed   : > { %3423 = vst [vmem:[#allocation11_spill] sm:$0xff] %v3229_v41  ;;  %3424 = vst [vmem:[#allocation12_spill] sm:$0xff] %v3231_v0 }
 0x1ee   : > { %v3233_v44 = vpop.f32.mrf.mxu0  ;;  %v3235_v46 = vpop.f32.mrf.mxu1 }
 0x1ef   : > { %3425 = vst [vmem:[#allocation13_spill] sm:$0xff] %v3233_v44  ;;  %3426 = vst [vmem:[#allocation14_spill] sm:$0xff] %v3235_v46 }
 0x1f0   : > { %v3237_v52 = vpop.f32.mrf.mxu0  ;;  %v3239_v9 = vpop.f32.mrf.mxu1 }
 0x1f1   : > { %3427 = vst [vmem:[#allocation15_spill] sm:$0xff] %v3237_v52  ;;  %3428 = vst [vmem:[#allocation16_spill] sm:$0xff] %v3239_v9 }
 0x1f2   : > { %v3241_v55 = vpop.f32.mrf.mxu0  ;;  %v3243_v59 = vpop.f32.mrf.mxu1 }
 0x1f3   : > { %3429 = vst [vmem:[#allocation17_spill] sm:$0xff] %v3241_v55  ;;  %3430 = vst [vmem:[#allocation18_spill] sm:$0xff] %v3243_v59 }
 0x1f4   : > { %v3245_v63 = vpop.f32.mrf.mxu0  ;;  %v3247_v4 = vpop.f32.mrf.mxu1 }
 0x1f5   : > { %3431 = vst [vmem:[#allocation19_spill] sm:$0xff] %v3245_v63  ;;  %3432 = vst [vmem:[#allocation20_spill] sm:$0xff] %v3247_v4  ;;  %v1398_v4 = vadd.f32 %v3163_v61, %v3116_v60  ;;  %v1402_v61 = vadd.f32 %v3175_v51, %v3125_v10  ;;  %v1405_v10 = vadd.f32 %v3183_v58, %v3131_v18 }
 0x1f6   : > { %v1724_v23 = vpop.f32.mrf.mxu1  ;;  %v3249_v21 = vpop.f32.mrf.mxu0  ;;  %v1408_v18 = vadd.f32 %v3191_v3, %v3137_v29  ;;  %v1410_v58 = vadd.f32 %v3195_v7, %v3139_v30  ;;  %v1414_v29 = vadd.f32 %v3201_v38, %v3148_v43  ;;  %v1419_v43 = vadd.f32 %v3209_v45, %v3157_v26 }
 0x1f7   : > { %3433 = vst [vmem:[#allocation21_spill] sm:$0xff] %v3249_v21 }
 0x1f8   : > { %v1726_v17 = vpop.f32.mrf.mxu1  ;;  %v3251_v13 = vpop.f32.mrf.mxu0 }
 0x1f9   : > { %3434 = vst [vmem:[#allocation22_spill] sm:$0xff] %v3251_v13  ;;  %v1399_v13 = vadd.f32 %v3167_v48, %v3119_v1  ;;  %v3277_v1 = vpop.permute.xlu0 %2077  ;;  %v1404_v48 = vadd.f32 %v3179_v56, %v3128_v14 }
 0x1fa   : > { %v1728_v44 = vpop.f32.mrf.mxu1  ;;  %v3253_v46 = vpop.f32.mrf.mxu0 }
 0x1fb   : > { %3435 = vst [vmem:[#allocation23_spill] sm:$0xff] %v3253_v46  ;;  %v1613_v46 = vadd.f32 %v1509_v8, %v1398_v4  ;;  %v1614_v57 = vadd.f32 %v1511_v34, %v1399_v13  ;;  %v3284_v34 = vpop.permute.xlu1 %2082  ;;  %v1619_v51 = vadd.f32 %v1519_v20, %v1404_v48 }
 0x1fc   : > { %v1730_v52 = vpop.f32.mrf.mxu1  ;;  %v3255_v0 = vpop.f32.mrf.mxu0 }
 0x1fd   : > { %3436 = vst [vmem:[#allocation24_spill] sm:$0xff] %v3255_v0  ;;  %v1829_v40 = vadd.f32 %v1726_v17, %v1614_v57 }
 0x1fe   : > { %v1734_v9 = vpop.f32.mrf.mxu1  ;;  %v3257_v55 = vpop.f32.mrf.mxu0 }
 0x1ff   : > { %3437 = vst [vmem:[#allocation25_spill] sm:$0xff] %v3257_v55  ;;  %v1401_v55 = vadd.f32 %v3171_v5, %v3122_v6  ;;  %v1617_v5 = vadd.f32 %v1515_v16, %v1402_v61  ;;  %v2088_v4 = vpop.permute.xlu1 %2087 }
 0x200   : > { %v1736_v59 = vpop.f32.mrf.mxu1  ;;  %v3259_v54 = vpop.f32.mrf.mxu0 }
 0x201   : > { %3438 = vst [vmem:[#allocation26_spill] sm:$0xff] %v3259_v54  ;;  %v1828_v54 = vadd.f32 %v1724_v23, %v1613_v46 }
 0x202   : > { %v1738_v63 = vpop.f32.mrf.mxu1  ;;  %v3263_v21 = vpop.f32.mrf.mxu0 }
 0x203   : > { %3439 = vst [vmem:[#allocation27_spill] sm:$0xff] %v3263_v21  ;;  %v1616_v21 = vadd.f32 %v1513_v15, %v1401_v55  ;;  %v1832_v15 = vadd.f32 %v1730_v52, %v1617_v5  ;;  %v1411_v52 = vadd.f32 %v3197_v11, %v3142_v35  ;;  %v1416_v35 = vadd.f32 %v3203_v19, %v3151_v47  ;;  %v3440_v19 = vld [vmem:[#allocation8_spill] sm:$0xff]  ;;  %v3442_v5 = vld [vmem:[#allocation2_spill] sm:$0xff] }
 0x204   : > { %v3267_v41 = vpop.f32.mrf.mxu1  ;;  %v3269_v0 = vpop.f32.mrf.mxu0  ;;  %v3326_v11 = vadd.f32 %v3213_v32, %v3160_v28  ;;  %v1625_v47 = vadd.f32 %v3217_v33, %v1410_v58 }
 0x205   : > { %v1831_v13 = vadd.f32 %v1728_v44, %v1616_v21  ;;  %v1407_v21 = vadd.f32 %v3187_v62, %v3134_v22  ;;  %v1413_v22 = vadd.f32 %v3199_v12, %v3145_v39  ;;  %v1417_v39 = vadd.f32 %v3205_v42, %v3154_v50 }
 0x206   : > { %v3273_v24 = vpop.f32.mrf.mxu1  ;;  %v1939_v60 = vpop.f32.mrf.mxu0  ;;  %v1621_v50 = vadd.f32 %v3219_v36, %v3165_v31  ;;  %v1626_v26 = vadd.f32 %v3221_v53, %v1411_v52  ;;  %v1615_v42 = vadd.f32 %v3440_v19, %v3169_v2  ;;  %v3444_v36 = vld [vmem:[#allocation11_spill] sm:$0xff]  ;;  %v3446_v2 = vld [vmem:[#allocation12_spill] sm:$0xff] }
 0x207   : > { %v2043_v37 = vadd.f32 %v1939_v60, %v1828_v54  ;;  %v1622_v62 = vadd.f32 %v3211_v27, %v1407_v21  ;;  %v1623_v27 = vadd.f32 %v3215_v49, %v1408_v18  ;;  %v1629_v53 = vadd.f32 %v3444_v36, %v1414_v29  ;;  %v3448_v18 = vld [vmem:[#allocation13_spill] sm:$0xff]  ;;  %v3363_v19 = vpop.permute.xlu1 %2097 }
 0x208   : > { %v3282_v8 = vpop.f32.mrf.mxu1  ;;  %v1941_v6 = vpop.f32.mrf.mxu0  ;;  %v1631_v58 = vadd.f32 %v3448_v18, %v1416_v35  ;;  %v3455_v35 = vld [vmem:[#allocation22_spill] sm:$0xff] }
 0x209   : > { %v2044_v23 = vadd.f32 %v1941_v6, %v1829_v40  ;;  %v2115_v57 = vadd.f32 %v3277_v1, %v2043_v37  ;;  %v1620_v37 = vadd.f32 %v3207_v25, %v1405_v10  ;;  %v1834_v40 = vadd.f32 %v1734_v9, %v1619_v51  ;;  %v3441_v6 = vld [vmem:[#allocation9_spill] sm:$0xff] }
 0x20a   : > { %v3288_v17 = vpop.f32.mrf.mxu1  ;;  %v1943_v54 = vpop.f32.mrf.mxu0  ;;  %v1838_v32 = vadd.f32 %v3267_v41, %v1623_v27  ;;  %v1628_v33 = vadd.f32 %v3441_v6, %v1413_v22  ;;  %v1841_v52 = vadd.f32 %v3282_v8, %v1626_v26 }
 0x20b   : > { %v2116_v14 = vadd.f32 %v3277_v1, %v2044_v23  ;;  %v2046_v56 = vadd.f32 %v1943_v54, %v1831_v13  ;;  %v1835_v7 = vadd.f32 %v1736_v59, %v1620_v37  ;;  %v1837_v59 = vadd.f32 %v1738_v63, %v1622_v62  ;;  %v3443_v13 = vld [vmem:[#allocation10_spill] sm:$0xff]  ;;  %v3445_v23 = vld [vmem:[#allocation3_spill] sm:$0xff] }
 0x20c   : > { %v3303_v16 = vpop.f32.mrf.mxu1  ;;  %v1945_v20 = vpop.f32.mrf.mxu0  ;;  %v1624_v31 = vadd.f32 %v3443_v13, %v3442_v5  ;;  %v1618_v10 = vadd.f32 %v3446_v2, %v3445_v23  ;;  %v3450_v37 = vld [vmem:[#allocation14_spill] sm:$0xff]  ;;  %v1843_v8 = vadd.f32 %v3288_v17, %v1628_v33  ;;  %v3460_v23 = vld [vmem:[#allocation24_spill] sm:$0xff] }
 0x20d   : > { %v2491_v44 = vpack.c.bf16 %v2116_v14, %v2115_v57  ;;  %v2047_v46 = vadd.f32 %v1945_v20, %v1832_v15  ;;  %v2118_v25 = vadd.f32 %v3284_v34, %v2046_v56  ;;  %v3447_v15 = vld [vmem:[#allocation21_spill] sm:$0xff]  ;;  %v1840_v57 = vadd.f32 %v3273_v24, %v1625_v47  ;;  %v2093_v56 = vpop.permute.xlu0 %2092  ;;  %v3449_v20 = vld [vmem:[#allocation4_spill] sm:$0xff] }
 0x20e   : > { %v3313_v30 = vpop.f32.mrf.mxu1  ;;  %v1949_v3 = vpop.f32.mrf.mxu0  ;;  %v1836_v41 = vadd.f32 %v3447_v15, %v1621_v50  ;;  %v3452_v24 = vld [vmem:[#allocation5_spill] sm:$0xff]  ;;  %v1833_v2 = vadd.f32 %v3460_v23, %v1618_v10 }
 0x20f   : > { %2219 = vst [vmem:[%s3295_s16] sm:$0xff] %v2491_v44  ;;  %v2119_v9 = vadd.f32 %v3284_v34, %v2047_v46  ;;  %v2049_v55 = vadd.f32 %v1949_v3, %v1834_v40  ;;  %v1633_v40 = vadd.f32 %v3450_v37, %v3449_v20  ;;  %v3451_v44 = vld [vmem:[#allocation15_spill] sm:$0xff] }
 0x210   : > { %v3328_v12 = vpop.f32.mrf.mxu1  ;;  %v1951_v38 = vpop.f32.mrf.mxu0  ;;  %v1632_v46 = vadd.f32 %v3451_v44, %v1417_v39 }
 0x211   : > { %v2493_v60 = vpack.c.bf16 %v2119_v9, %v2118_v25  ;;  %v2050_v61 = vadd.f32 %v1951_v38, %v1835_v7  ;;  %v2121_v49 = vadd.f32 %v2088_v4, %v2049_v55  ;;  %v3453_v9 = vld [vmem:[#allocation16_spill] sm:$0xff]  ;;  %v3454_v38 = vld [vmem:[#allocation17_spill] sm:$0xff] }
 0x212   : > { %v3337_v28 = vpop.f32.mrf.mxu1  ;;  %v1953_v45 = vpop.f32.mrf.mxu0  ;;  %v1627_v55 = vadd.f32 %v3453_v9, %v3452_v24  ;;  %v1634_v27 = vadd.f32 %v3454_v38, %v1419_v43  ;;  %v3465_v24 = vld [vmem:[#allocation27_spill] sm:$0xff] }
 0x213   : > { %2222 = vst [vmem:[%s3295_s16 + $0xc] sm:$0xff] %v2493_v60  ;;  %v2122_v63 = vadd.f32 %v2088_v4, %v2050_v61  ;;  %v2052_v48 = vadd.f32 %v1953_v45, %v1837_v59  ;;  %v1830_v59 = vadd.f32 %v3455_v35, %v1615_v42  ;;  %v3456_v60 = vld [vmem:[#allocation23_spill] sm:$0xff] }
 0x214   : > { %v3347_v51 = vpop.f32.mrf.mxu1  ;;  %v1955_v54 = vpop.f32.mrf.mxu0  ;;  %v1839_v61 = vadd.f32 %v3456_v60, %v1624_v31  ;;  %v3459_v31 = vld [vmem:[#allocation19_spill] sm:$0xff]  ;;  %v1849_v35 = vadd.f32 %v3337_v28, %v1634_v27 }
 0x215   : > { %v2495_v14 = vpack.c.bf16 %v2122_v63, %v2121_v49  ;;  %v2053_v21 = vadd.f32 %v1955_v54, %v1838_v32  ;;  %v2124_v62 = vadd.f32 %v2093_v56, %v2052_v48  ;;  %v3457_v32 = vld [vmem:[#allocation6_spill] sm:$0xff]  ;;  %v1844_v48 = vadd.f32 %v3303_v16, %v1629_v53  ;;  %v3461_v54 = vld [vmem:[#allocation25_spill] sm:$0xff] }
 0x216   : > { %v1959_v22 = vpop.f32.mrf.mxu0  ;;  %v2636_v29 = vpop.f32.mrf.mxu1  ;;  %v3458_v49 = vld [vmem:[#allocation18_spill] sm:$0xff]  ;;  %v1635_v36 = vadd.f32 %v3459_v31, %v3326_v11  ;;  %v1848_v15 = vadd.f32 %v3461_v54, %v1633_v40  ;;  %v1847_v11 = vadd.f32 %v3328_v12, %v1632_v46 }
 0x217   : > { %2224 = vst [vmem:[%s3295_s16 + $0x18] sm:$0xff] %v2495_v14  ;;  %v2125_v3 = vadd.f32 %v2093_v56, %v2053_v21  ;;  %v2055_v7 = vadd.f32 %v1959_v22, %v1840_v57  ;;  %v2051_v25 = vadd.f32 %v2636_v29, %v1836_v41  ;;  %v1636_v63 = vadd.f32 %v3458_v49, %v3457_v32  ;;  %v2103_v14 = vpop.permute.xlu0 %2102  ;;  %v2108_v22 = vpop.permute.xlu1 %2107 }
 0x218   : > { %v1961_v39 = vpop.f32.mrf.mxu0  ;;  %v2012_v47 = vpop.f32.mrf.mxu1  ;;  %v1846_v57 = vadd.f32 %v3313_v30, %v1631_v58 }
 0x219   : > { %v2497_v50 = vpack.c.bf16 %v2125_v3, %v2124_v62  ;;  %v2123_v26 = vadd.f32 %v2088_v4, %v2051_v25  ;;  %v2056_v45 = vadd.f32 %v1961_v39, %v1841_v52  ;;  %v2127_v43 = vadd.f32 %v3363_v19, %v2055_v7  ;;  %v3462_v62 = vld [vmem:[#allocation7_spill] sm:$0xff]  ;;  %v3463_v3 = vld [vmem:[#allocation20_spill] sm:$0xff] }
 0x21a   : > { %v2045_v42 = vadd.f32 %v2012_v47, %v1830_v59  ;;  %v1963_v6 = vpop.f32.mrf.mxu0  ;;  %v2637_v5 = vpop.f32.mrf.mxu1  ;;  %v1630_v7 = vadd.f32 %v3463_v3, %v3462_v62  ;;  %v1851_v9 = vadd.f32 %v3465_v24, %v1636_v63  ;;  %v1850_v39 = vadd.f32 %v3347_v51, %v1635_v36 }
 0x21b   : > { %2226 = vst [vmem:[%s3295_s16 + $0x24] sm:$0xff] %v2497_v50  ;;  %v2496_v13 = vpack.c.bf16 %v2123_v26, %v2123_v26  ;;  %v2128_v17 = vadd.f32 %v3363_v19, %v2056_v45  ;;  %v2058_v33 = vadd.f32 %v1963_v6, %v1843_v8  ;;  %v2054_v4 = vadd.f32 %v2637_v5, %v1839_v61  ;;  %v2113_v45 = vpop.permute.xlu0 %2112 }
 0x21c   : > { %v2117_v16 = vadd.f32 %v3277_v1, %v2045_v42  ;;  %v1965_v53 = vpop.f32.mrf.mxu0  ;;  %v2015_v41 = vpop.f32.mrf.mxu1  ;;  %v1845_v49 = vadd.f32 %v3269_v0, %v1630_v7 }
 0x21d   : > { %2225 = vst.msk [vmem:[%s3295_s16 + $0x20] sm:$0xf] %vm2220_vm9, %v2496_v13  ;;  %v2499_v21 = vpack.c.bf16 %v2128_v17, %v2127_v43  ;;  %v2126_v18 = vadd.f32 %v2093_v56, %v2054_v4  ;;  %v2059_v20 = vadd.f32 %v1965_v53, %v1844_v48  ;;  %v2130_v10 = vadd.f32 %v2103_v14, %v2058_v33  ;;  %v3464_v56 = vld [vmem:[#allocation26_spill] sm:$0xff] }
 0x21e   : > { %v2492_v37 = vpack.c.bf16 %v2117_v16, %v2117_v16  ;;  %v2048_v44 = vadd.f32 %v2015_v41, %v1833_v2  ;;  %v1969_v40 = vpop.f32.mrf.mxu0  ;;  %v2640_v52 = vpop.f32.mrf.mxu1  ;;  %v1842_v25 = vadd.f32 %v3464_v56, %v1627_v55 }
 0x21f   : > { %2228 = vst [vmem:[%s3295_s16 + $0x30] sm:$0xff] %v2499_v21  ;;  %v2498_v1 = vpack.c.bf16 %v2126_v18, %v2126_v18  ;;  %v2131_v29 = vadd.f32 %v2103_v14, %v2059_v20  ;;  %v2061_v30 = vadd.f32 %v1969_v40, %v1846_v57  ;;  %v2063_v58 = vadd.f32 %v2640_v52, %v1848_v15 }
 0x220   : > { %2221 = vst.msk [vmem:[%s3295_s16 + $0x8] sm:$0xf] %vm2220_vm9, %v2492_v37  ;;  %v2120_v12 = vadd.f32 %v3284_v34, %v2048_v44  ;;  %v1971_v46 = vpop.f32.mrf.mxu0  ;;  %v2028_v38 = vpop.f32.mrf.mxu1 }
 0x221   : > { %2227 = vst.msk [vmem:[%s3295_s16 + $0x2c] sm:$0xf] %vm2220_vm9, %v2498_v1  ;;  %v2501_v59 = vpack.c.bf16 %v2131_v29, %v2130_v10  ;;  %v2135_v60 = vadd.f32 %v2108_v22, %v2063_v58  ;;  %v2062_v61 = vadd.f32 %v1971_v46, %v1847_v11  ;;  %v2133_v47 = vadd.f32 %v2108_v22, %v2061_v30 }
 0x222   : > { %v2494_v55 = vpack.c.bf16 %v2120_v12, %v2120_v12  ;;  %v2057_v8 = vadd.f32 %v2028_v38, %v1842_v25  ;;  %v1973_v50 = vpop.f32.mrf.mxu0  ;;  %v2641_v26 = vpop.f32.mrf.mxu1 }
 0x223   : > { %2230 = vst [vmem:[%s3295_s16 + $0x3c] sm:$0xff] %v2501_v59  ;;  %v2504_v34 = vpack.c.bf16 %v2135_v60, %v2135_v60  ;;  %v2134_v32 = vadd.f32 %v2108_v22, %v2062_v61  ;;  %v2064_v28 = vadd.f32 %v1973_v50, %v1849_v35  ;;  %v2066_v27 = vadd.f32 %v2641_v26, %v1851_v9 }
 0x224   : > { %2223 = vst.msk [vmem:[%s3295_s16 + $0x14] sm:$0xf] %vm2220_vm9, %v2494_v55  ;;  %v2129_v51 = vadd.f32 %v3363_v19, %v2057_v8  ;;  %v1975_v63 = vpop.f32.mrf.mxu0  ;;  %v2031_v48 = vpop.f32.mrf.mxu1 }
 0x225   : > { %2233 = vst.msk [vmem:[%s3295_s16 + $0x50] sm:$0xf] %vm2220_vm9, %v2504_v34  ;;  %v2503_v43 = vpack.c.bf16 %v2134_v32, %v2133_v47  ;;  %v2138_v42 = vadd.f32 %v2113_v45, %v2066_v27  ;;  %v2065_v6 = vadd.f32 %v1975_v63, %v1850_v39  ;;  %v2060_v13 = vadd.f32 %v2031_v48, %v1845_v49 }
 0x226   : > { %v2500_v5 = vpack.c.bf16 %v2129_v51, %v2129_v51  ;;  %v2136_v17 = vadd.f32 %v2113_v45, %v2064_v28 }
 0x227   : > { %2232 = vst [vmem:[%s3295_s16 + $0x48] sm:$0xff] %v2503_v43  ;;  %v2506_v33 = vpack.c.bf16 %v2138_v42, %v2138_v42  ;;  %v2137_v0 = vadd.f32 %v2113_v45, %v2065_v6  ;;  %v2132_v4 = vadd.f32 %v2103_v14, %v2060_v13 }
 0x228   : > { %2229 = vst.msk [vmem:[%s3295_s16 + $0x38] sm:$0xf] %vm2220_vm9, %v2500_v5 }
 0x229   : > { %2235 = vst.msk [vmem:[%s3295_s16 + $0x5c] sm:$0xf] %vm2220_vm9, %v2506_v33  ;;  %v2505_v19 = vpack.c.bf16 %v2137_v0, %v2136_v17  ;;  %v2502_v31 = vpack.c.bf16 %v2132_v4, %v2132_v4 }
 0x22b   : > { %2234 = vst [vmem:[%s3295_s16 + $0x54] sm:$0xff] %v2505_v19  ;;  %2231 = vst.msk [vmem:[%s3295_s16 + $0x44] sm:$0xf] %vm2220_vm9, %v2502_v31 }
 0x22c PF: > { %s13_s12 = sadd.s32 1, %s2711_s12  }
 0x22d   : > { %p10_p4 = scmp.ge.s32.totalorder %s13_s12, 4  }
 0x22f   :  { %12 = sbr.rel (!%p10_p4) target bundleno = 1 (0x1), region = 70 }

// kernel: swift_forward.19
= control target key start
LH: loop header
LB: loop body
LE: loop exit
PB: predicated region body
PF: predicated region fallthrough
CT: control target
= control target key end

     0   :  { %s2785_s12 = smov 0   ;;  %s3221_s0 = inlined_call_operand.vmem [shape: bf16[2,16,1190], index: 0, kind: input, shape index: {}]   ;;  %s3222_s1 = inlined_call_operand.vmem [shape: bf16[9,3,16], index: 1, kind: input, shape index: {}]   ;;  %s3223_s2 = inlined_call_operand.vmem [shape: f32[3,1], index: 2, kind: input, shape index: {}]   ;;  %s3224_s3 = inlined_call_operand.vmem [shape: f32[2,3,1088], index: 3, kind: output, shape index: {}]  }
   0x1 LB: > { %s2564_s13 = sadd.s32 4294967295, %s2752_s12   ;;  %p2568_p0 = scmp.ge.s32.totalorder %s2752_s12, 1  ;;  %s2752_s12 = sphi %s2785_s12, %s13_s12  }
   0x2   : > { %p137_p1 = scmp.lt.s32.totalorder %s2752_s12, 3 }
   0x4   : > { %p138_p2 = pnand %p2568_p0, %p137_p1 }
   0x5   : > { %p161_p3 = scmp.lt.s32.totalorder (!%p138_p2), %s2564_s13, 1  ;;  %s2755_s18 = smov (!%p138_p2), 127  }
   0x6   : > { %141 = sbr.rel (%p138_p2) target bundleno = 515 (0x203), region = 32  ;;  %s2756_s19 = smov (!%p138_p2), 126  }
   0x7   : > { %s2757_s20 = smov (!%p138_p2), 94   ;;  %s2758_s21 = smov (!%p138_p2), 93  }
   0x8   : > { %s2759_s22 = smov (!%p138_p2), 92   ;;  %s2760_s23 = smov (!%p138_p2), 60  }
   0x9   : > { %s2761_s24 = smov (!%p138_p2), 59   ;;  %s2763_s27 = smov (!%p138_p2), 58  }
   0xb   : > { %s3226_s13 = smov (!%p161_p3, %s2564_s13), 1  ;;  %v2754_v0 = vmov 0   ;;  %vm240_vm0 = vcmask 1039360   ;;  %v2571_v17 = vld [vmem:[%s3222_s1 + $0x2] sm:$0x3]  ;;  %vm258_vm1 = vcmask 130048  }
   0xc   : > { %s2708_s14 = smul.u32 80, %s3226_s13  ;;  %294 = vmatprep.mubr.bf16.mxu0 %v2754_v0  ;;  %335 = vmatprep.mubr.bf16.mxu1 %v2754_v0  ;;  %v2762_v27 = vmov 0.0   ;;  %vm2764_vm2 = vmmov 0   ;;  %v182_v35 = vld [vmem:[%s3222_s1] sm:$0x3]  ;;  %vm702_vm3 = vcmask 1031168  }
   0xd   : > { %2729 = vset.pattern.permute.xlu1 %v2754_v0  ;;  %2730 = vset.pattern.permute.xlu0 %v2754_v0  ;;  %v2591_v52 = vld [vmem:[%s3222_s1 + $0x4] sm:$0x3]  ;;  %vm956_vm4 = vcmask 769024   ;;  %vm1210_vm5 = vcmask 760832   ;;  %vm1464_vm6 = vcmask 752640   ;;  %vm1723_vm7 = vcmask 490496  }
   0xe   : > { %s2801_s17 = scalar_lea.vmem %s3221_s0, %s2708_s14  ;;  %vm1980_vm8 = vcmask 482304   ;;  %vm2237_vm9 = vcmask 474112   ;;  %vm2507_vm10 = vcmask 518144  }
   0xf   : > { %v2806_v1 = vld [vmem:[%s2801_s17 + $0x4] ss:$40 sps:$4 sm:$0xff]   ;;  %v2809_v2 = vld [vmem:[%s2801_s17] ss:$40 sps:$4 sm:$0xff]   ;;  %v2821_v5 = vld [vmem:[%s2801_s17 + $0x10] ss:$40 sps:$4 sm:$0xff]  }
  0x10   : > { %224 = vrot.lane.b32.xlu0 %v2806_v1, %s2755_s18  ;;  %v2813_v3 = vld [vmem:[%s2801_s17 + $0x8] ss:$40 sps:$4 sm:$0xff]   ;;  %222 = vrot.lane.b32.xlu1 %v2809_v2, %s2755_s18  ;;  %v2817_v4 = vld [vmem:[%s2801_s17 + $0xc] ss:$40 sps:$4 sm:$0xff]  }
  0x11   : > { %v2825_v6 = vld [vmem:[%s2801_s17 + $0x14] ss:$40 sps:$4 sm:$0xff]   ;;  %v2829_v7 = vld [vmem:[%s2801_s17 + $0x18] ss:$40 sps:$4 sm:$0xff]   ;;  %v2886_v10 = vld [vmem:[%s2801_s17 + $0x24] ss:$40 sps:$4 sm:$0xff]  }
  0x12   : > { %v2833_v8 = vld [vmem:[%s2801_s17 + $0x1c] ss:$40 sps:$4 sm:$0xff]   ;;  %v2837_v9 = vld [vmem:[%s2801_s17 + $0x20] ss:$40 sps:$4 sm:$0xff]  }
  0x14   : > { %226 = vrot.lane.b32.xlu0 %v2813_v3, %s2755_s18  ;;  %228 = vrot.lane.b32.xlu1 %v2817_v4, %s2755_s18 }
  0x18   : > { %230 = vrot.lane.b32.xlu0 %v2821_v5, %s2755_s18  ;;  %232 = vrot.lane.b32.xlu1 %v2825_v6, %s2755_s18 }
  0x1c   : > { %234 = vrot.lane.b32.xlu0 %v2829_v7, %s2755_s18  ;;  %236 = vrot.lane.b32.xlu1 %v2833_v8, %s2755_s18 }
  0x20   : > { %238 = vrot.lane.b32.xlu0 %v2837_v9, %s2755_s18  ;;  %686 = vrot.lane.b32.xlu1 %v2806_v1, %s2756_s19 }
  0x24   : > { %688 = vrot.lane.b32.xlu0 %v2813_v3, %s2756_s19  ;;  %684 = vrot.lane.b32.xlu1 %v2809_v2, %s2756_s19 }
  0x28   : > { %690 = vrot.lane.b32.xlu0 %v2817_v4, %s2756_s19  ;;  %692 = vrot.lane.b32.xlu1 %v2821_v5, %s2756_s19 }
  0x2c   : > { %694 = vrot.lane.b32.xlu0 %v2825_v6, %s2756_s19  ;;  %696 = vrot.lane.b32.xlu1 %v2829_v7, %s2756_s19 }
  0x30   : > { %698 = vrot.lane.b32.xlu0 %v2833_v8, %s2756_s19  ;;  %700 = vrot.lane.b32.xlu1 %v2837_v9, %s2756_s19 }
  0x34   : > { %940 = vrot.lane.b32.xlu0 %v2806_v1, %s2757_s20  ;;  %942 = vrot.lane.b32.xlu1 %v2813_v3, %s2757_s20 }
  0x38   : > { %938 = vrot.lane.b32.xlu0 %v2809_v2, %s2757_s20  ;;  %944 = vrot.lane.b32.xlu1 %v2817_v4, %s2757_s20 }
  0x3c   : > { %946 = vrot.lane.b32.xlu0 %v2821_v5, %s2757_s20  ;;  %948 = vrot.lane.b32.xlu1 %v2825_v6, %s2757_s20 }
  0x40   : > { %950 = vrot.lane.b32.xlu0 %v2829_v7, %s2757_s20  ;;  %952 = vrot.lane.b32.xlu1 %v2833_v8, %s2757_s20 }
  0x44   : > { %954 = vrot.lane.b32.xlu0 %v2837_v9, %s2757_s20  ;;  %1194 = vrot.lane.b32.xlu1 %v2806_v1, %s2758_s21 }
  0x48   : > { %1196 = vrot.lane.b32.xlu0 %v2813_v3, %s2758_s21  ;;  %1192 = vrot.lane.b32.xlu1 %v2809_v2, %s2758_s21 }
  0x4c   : > { %1198 = vrot.lane.b32.xlu0 %v2817_v4, %s2758_s21  ;;  %1200 = vrot.lane.b32.xlu1 %v2821_v5, %s2758_s21 }
  0x50   : > { %1202 = vrot.lane.b32.xlu0 %v2825_v6, %s2758_s21  ;;  %1204 = vrot.lane.b32.xlu1 %v2829_v7, %s2758_s21 }
  0x54   : > { %1206 = vrot.lane.b32.xlu0 %v2833_v8, %s2758_s21  ;;  %1208 = vrot.lane.b32.xlu1 %v2837_v9, %s2758_s21  ;;  %s2709_s21 = smul.u32 36, %s3226_s13 }
  0x58   : > { %1448 = vrot.lane.b32.xlu0 %v2806_v1, %s2759_s22  ;;  %1450 = vrot.lane.b32.xlu1 %v2813_v3, %s2759_s22 }
  0x5c   : > { %1446 = vrot.lane.b32.xlu0 %v2809_v2, %s2759_s22  ;;  %1452 = vrot.lane.b32.xlu1 %v2817_v4, %s2759_s22 }
  0x60   : > { %1454 = vrot.lane.b32.xlu0 %v2821_v5, %s2759_s22  ;;  %1456 = vrot.lane.b32.xlu1 %v2825_v6, %s2759_s22 }
  0x64   : > { %1458 = vrot.lane.b32.xlu0 %v2829_v7, %s2759_s22  ;;  %1460 = vrot.lane.b32.xlu1 %v2833_v8, %s2759_s22 }
  0x68   : > { %1462 = vrot.lane.b32.xlu0 %v2837_v9, %s2759_s22  ;;  %1705 = vrot.lane.b32.xlu1 %v2806_v1, %s2760_s23 }
  0x6c   : > { %1707 = vrot.lane.b32.xlu0 %v2813_v3, %s2760_s23  ;;  %1703 = vrot.lane.b32.xlu1 %v2809_v2, %s2760_s23 }
  0x70   : > { %1709 = vrot.lane.b32.xlu0 %v2817_v4, %s2760_s23  ;;  %1711 = vrot.lane.b32.xlu1 %v2821_v5, %s2760_s23 }
  0x74   : > { %1713 = vrot.lane.b32.xlu0 %v2825_v6, %s2760_s23  ;;  %1715 = vrot.lane.b32.xlu1 %v2829_v7, %s2760_s23 }
  0x78   : > { %1717 = vrot.lane.b32.xlu0 %v2833_v8, %s2760_s23  ;;  %1719 = vrot.lane.b32.xlu1 %v2837_v9, %s2760_s23 }
  0x7c   : > { %1721 = vrot.lane.b32.xlu0 %v2886_v10, %s2760_s23  ;;  %1962 = vrot.lane.b32.xlu1 %v2806_v1, %s2761_s24  ;;  %s3196_s23 = scalar_lea.vmem %s3224_s3, %s2709_s21 }
  0x80   : > { %1964 = vrot.lane.b32.xlu0 %v2813_v3, %s2761_s24  ;;  %1960 = vrot.lane.b32.xlu1 %v2809_v2, %s2761_s24 }
  0x82   : > { %v225_v11 = vpop.permute.xlu0 %224  ;;  %v223_v12 = vpop.permute.xlu1 %222 }
  0x83   : > { %v241_v16 = vsel %vm240_vm0, %v223_v12, %v225_v11 }
  0x84   : > { %1966 = vrot.lane.b32.xlu0 %v2817_v4, %s2761_s24  ;;  %1968 = vrot.lane.b32.xlu1 %v2821_v5, %s2761_s24 }
  0x86   : > { %v227_v13 = vpop.permute.xlu0 %226  ;;  %v229_v14 = vpop.permute.xlu1 %228 }
  0x87   : > { %v242_v15 = vsel %vm240_vm0, %v225_v11, %v227_v13  ;;  %v243_v21 = vsel %vm240_vm0, %v227_v13, %v229_v14 }
  0x88   : > { %276 = vmatprep.subr.bf16.mxu0 %v242_v15  ;;  %1970 = vrot.lane.b32.xlu0 %v2825_v6, %s2761_s24 }
  0x89   : > { %277 = vmatpush1.bf16.msra.mxu0 %v241_v16  ;;  %1972 = vrot.lane.b32.xlu1 %v2829_v7, %s2761_s24 }
  0x8a   : > { %v231_v18 = vpop.permute.xlu0 %230  ;;  %v233_v19 = vpop.permute.xlu1 %232 }
  0x8b   : > { %v244_v20 = vsel %vm240_vm0, %v229_v14, %v231_v18  ;;  %v245_v25 = vsel %vm240_vm0, %v231_v18, %v233_v19 }
  0x8c   : > { %2581 = vmatmul.mubr.msk.bf16.vlgmr.msra.gmra.mxu0 %vm258_vm1, %v2571_v17  ;;  %317 = vmatprep.subr.bf16.mxu1 %v244_v20 }
  0x8d   : > { %318 = vmatpush1.bf16.msra.mxu1 %v243_v21  ;;  %376 = vmatprep.mubr.bf16.mxu0 %v2754_v0 }
  0x8e   : > { %v235_v22 = vpop.permute.xlu0 %234  ;;  %1974 = vrot.lane.b32.xlu0 %v2833_v8, %s2761_s24  ;;  %1976 = vrot.lane.b32.xlu1 %v2837_v9, %s2761_s24  ;;  %v237_v23 = vpop.permute.xlu1 %236 }
  0x8f   : > { %v246_v24 = vsel %vm240_vm0, %v233_v19, %v235_v22  ;;  %v247_v30 = vsel %vm240_vm0, %v235_v22, %v237_v23 }
  0x90   : > { %2582 = vmatmul.mubr.msk.bf16.vlgmr.msra.gmra.mxu1 %vm258_vm1, %v2571_v17  ;;  %358 = vmatprep.subr.bf16.mxu0 %v246_v24 }
  0x91   : > { %359 = vmatpush1.bf16.msra.mxu0 %v245_v25  ;;  %417 = vmatprep.mubr.bf16.mxu1 %v2754_v0 }
  0x92   : > { %v239_v26 = vpop.permute.xlu0 %238  ;;  %2654 = vmatprep.subr.bf16.mxu0 %v2762_v27  ;;  %1978 = vrot.lane.b32.xlu0 %v2886_v10, %s2761_s24  ;;  %v687_v29 = vpop.permute.xlu1 %686 }
  0x93   : > { %v248_v28 = vsel %vm240_vm0, %v237_v23, %v239_v26  ;;  %2219 = vrot.lane.b32.xlu1 %v2806_v1, %s2763_s27 }
  0x94   : > { %2583 = vmatmul.mubr.msk.bf16.vlgmr.msra.gmra.mxu0 %vm258_vm1, %v2571_v17  ;;  %399 = vmatprep.subr.bf16.mxu1 %v248_v28  ;;  %v2603_v28 = vld [vmem:[%s3222_s1 + $0x8] sm:$0x3] }
  0x95   : > { %400 = vmatpush1.bf16.msra.mxu1 %v247_v30  ;;  %2655 = vmatpush3.bf16.msra.mxu0 %v239_v26 }
  0x96   : > { %2656 = vmatprep.mubr.msk.bf16.mxu0 %vm2764_vm2, %v2762_v27  ;;  %492 = vmatprep.subr.bf16.mxu1 %v2806_v1  ;;  %v689_v31 = vpop.permute.xlu0 %688  ;;  %v685_v32 = vpop.permute.xlu1 %684 }
  0x97   : > { %533 = vmatprep.subr.bf16.mxu0 %v2817_v4  ;;  %2221 = vrot.lane.b32.xlu0 %v2813_v3, %s2763_s27  ;;  %v704_v39 = vsel %vm702_vm3, %v687_v29, %v689_v31  ;;  %v703_v44 = vsel %vm702_vm3, %v685_v32, %v687_v29 }
  0x98   : > { %2584 = vmatmul.mubr.msk.bf16.vlgmr.msra.gmra.mxu1 %vm258_vm1, %v2571_v17  ;;  %2217 = vrot.lane.b32.xlu1 %v2809_v2, %s2763_s27 }
  0x99   : > { %493 = vmatpush1.bf16.msra.mxu1 %v2809_v2  ;;  %510 = vmatprep.mubr.bf16.mxu1 %v2754_v0 }
  0x9a   : > { %574 = vmatprep.subr.bf16.mxu1 %v2825_v6  ;;  %v691_v33 = vpop.permute.xlu0 %690  ;;  %v693_v34 = vpop.permute.xlu1 %692 }
  0x9b   : > { %2223 = vrot.lane.b32.xlu0 %v2817_v4, %s2763_s27  ;;  %v706_v42 = vsel %vm702_vm3, %v691_v33, %v693_v34  ;;  %v705_v48 = vsel %vm702_vm3, %v689_v31, %v691_v33 }
  0x9c   : > { %2657 = vmatmul.mubr.msk.bf16.vlgmr.msra.gmra.mxu0 %vm258_vm1, %v2571_v17  ;;  %2225 = vrot.lane.b32.xlu1 %v2821_v5, %s2763_s27 }
  0x9d   : > { %534 = vmatpush1.bf16.msra.mxu0 %v2813_v3  ;;  %551 = vmatprep.mubr.bf16.mxu0 %v2754_v0 }
  0x9e   : > { %615 = vmatprep.subr.bf16.mxu0 %v2833_v8  ;;  %v695_v36 = vpop.permute.xlu0 %694  ;;  %v697_v37 = vpop.permute.xlu1 %696 }
  0x9f   : > { %2227 = vrot.lane.b32.xlu0 %v2825_v6, %s2763_s27  ;;  %v708_v46 = vsel %vm702_vm3, %v695_v36, %v697_v37  ;;  %v707_v53 = vsel %vm702_vm3, %v693_v34, %v695_v36 }
  0xa0   : > { %2586 = vmatmul.mubr.msk.bf16.vlgmr.msra.gmra.mxu1 %vm258_vm1, %v182_v35  ;;  %2229 = vrot.lane.b32.xlu1 %v2829_v7, %s2763_s27 }
  0xa1   : > { %575 = vmatpush1.bf16.msra.mxu1 %v2821_v5  ;;  %592 = vmatprep.mubr.bf16.mxu1 %v2754_v0 }
  0xa2   : > { %2660 = vmatprep.subr.bf16.mxu1 %v2762_v27  ;;  %v699_v38 = vpop.permute.xlu0 %698  ;;  %v701_v40 = vpop.permute.xlu1 %700 }
  0xa3   : > { %2231 = vrot.lane.b32.xlu0 %v2833_v8, %s2763_s27  ;;  %v710_v50 = vsel %vm702_vm3, %v699_v38, %v701_v40  ;;  %v709_v56 = vsel %vm702_vm3, %v697_v37, %v699_v38  ;;  %v2597_v8 = vld [vmem:[%s3222_s1 + $0x6] sm:$0x3] }
  0xa4   : > { %2587 = vmatmul.mubr.msk.bf16.vlgmr.msra.gmra.mxu0 %vm258_vm1, %v182_v35  ;;  %2233 = vrot.lane.b32.xlu1 %v2837_v9, %s2763_s27 }
  0xa5   : > { %616 = vmatpush1.bf16.msra.mxu0 %v2829_v7  ;;  %633 = vmatprep.mubr.bf16.mxu0 %v2754_v0 }
  0xa6   : > { %737 = vmatprep.subr.bf16.mxu0 %v704_v39  ;;  %v941_v41 = vpop.permute.xlu0 %940  ;;  %v943_v43 = vpop.permute.xlu1 %942 }
  0xa7   : > { %2235 = vrot.lane.b32.xlu0 %v2886_v10, %s2763_s27  ;;  %v958_v58 = vsel %vm956_vm4, %v941_v41, %v943_v43 }
  0xa8   : > { %2588 = vmatmul.mubr.msk.bf16.vlgmr.msra.gmra.mxu1 %vm258_vm1, %v182_v35 }
  0xa9   : > { %2661 = vmatpush3.bf16.msra.mxu1 %v2837_v9  ;;  %2662 = vmatprep.mubr.msk.bf16.mxu1 %vm2764_vm2, %v2762_v27 }
  0xaa   : > { %778 = vmatprep.subr.bf16.mxu1 %v706_v42  ;;  %v939_v45 = vpop.permute.xlu0 %938  ;;  %v945_v47 = vpop.permute.xlu1 %944 }
  0xab   : > { %v957_v63 = vsel %vm956_vm4, %v939_v45, %v941_v41  ;;  %v959_v4 = vsel %vm956_vm4, %v943_v43, %v945_v47 }
  0xac   : > { %2589 = vmatmul.mubr.msk.bf16.vlgmr.msra.gmra.mxu0 %vm258_vm1, %v182_v35 }
  0xad   : > { %738 = vmatpush1.bf16.msra.mxu0 %v703_v44  ;;  %755 = vmatprep.mubr.bf16.mxu0 %v2754_v0 }
  0xae   : > { %819 = vmatprep.subr.bf16.mxu0 %v708_v46  ;;  %v947_v49 = vpop.permute.xlu0 %946  ;;  %v949_v51 = vpop.permute.xlu1 %948 }
  0xaf   : > { %v960_v61 = vsel %vm956_vm4, %v945_v47, %v947_v49  ;;  %v961_v9 = vsel %vm956_vm4, %v947_v49, %v949_v51  ;;  %v2609_v47 = vld [vmem:[%s3222_s1 + $0xa] sm:$0x3] }
  0xb0   : > { %2663 = vmatmul.mubr.msk.bf16.vlgmr.msra.gmra.mxu1 %vm258_vm1, %v182_v35 }
  0xb1   : > { %779 = vmatpush1.bf16.msra.mxu1 %v705_v48  ;;  %796 = vmatprep.mubr.bf16.mxu1 %v2754_v0 }
  0xb2   : > { %860 = vmatprep.subr.bf16.mxu1 %v710_v50  ;;  %v951_v54 = vpop.permute.xlu0 %950  ;;  %v953_v55 = vpop.permute.xlu1 %952 }
  0xb3   : > { %v962_v2 = vsel %vm956_vm4, %v949_v51, %v951_v54  ;;  %v963_v12 = vsel %vm956_vm4, %v951_v54, %v953_v55 }
  0xb4   : > { %2592 = vmatmul.mubr.msk.bf16.vlgmr.msra.gmra.mxu0 %vm258_vm1, %v2591_v52 }
  0xb5   : > { %820 = vmatpush1.bf16.msra.mxu0 %v707_v53  ;;  %837 = vmatprep.mubr.bf16.mxu0 %v2754_v0 }
  0xb6   : > { %2666 = vmatprep.subr.bf16.mxu0 %v2762_v27  ;;  %v955_v57 = vpop.permute.xlu0 %954  ;;  %v1195_v59 = vpop.permute.xlu1 %1194 }
  0xb7   : > { %v964_v6 = vsel %vm956_vm4, %v953_v55, %v955_v57 }
  0xb8   : > { %2593 = vmatmul.mubr.msk.bf16.vlgmr.msra.gmra.mxu1 %vm258_vm1, %v2591_v52 }
  0xb9   : > { %861 = vmatpush1.bf16.msra.mxu1 %v709_v56  ;;  %878 = vmatprep.mubr.bf16.mxu1 %v2754_v0 }
  0xba   : > { %991 = vmatprep.subr.bf16.mxu1 %v958_v58  ;;  %v1197_v60 = vpop.permute.xlu0 %1196  ;;  %v1193_v62 = vpop.permute.xlu1 %1192 }
  0xbb   : > { %v1212_v14 = vsel %vm1210_vm5, %v1195_v59, %v1197_v60  ;;  %v1211_v19 = vsel %vm1210_vm5, %v1193_v62, %v1195_v59 }
  0xbc   : > { %2594 = vmatmul.mubr.msk.bf16.vlgmr.msra.gmra.mxu0 %vm258_vm1, %v2591_v52 }
  0xbd   : > { %2667 = vmatpush3.bf16.msra.mxu0 %v701_v40  ;;  %2668 = vmatprep.mubr.msk.bf16.mxu0 %vm2764_vm2, %v2762_v27 }
  0xbe   : > { %1032 = vmatprep.subr.bf16.mxu0 %v960_v61  ;;  %v1199_v1 = vpop.permute.xlu0 %1198  ;;  %v1201_v3 = vpop.permute.xlu1 %1200 }
  0xbf   : > { %v1214_v17 = vsel %vm1210_vm5, %v1199_v1, %v1201_v3  ;;  %v1213_v23 = vsel %vm1210_vm5, %v1197_v60, %v1199_v1 }
  0xc0   : > { %2595 = vmatmul.mubr.msk.bf16.vlgmr.msra.gmra.mxu1 %vm258_vm1, %v2591_v52 }
  0xc1   : > { %992 = vmatpush1.bf16.msra.mxu1 %v957_v63  ;;  %1009 = vmatprep.mubr.bf16.mxu1 %v2754_v0 }
  0xc2   : > { %1073 = vmatprep.subr.bf16.mxu1 %v962_v2  ;;  %v1203_v5 = vpop.permute.xlu0 %1202  ;;  %v1205_v7 = vpop.permute.xlu1 %1204  ;;  %v2615_v2 = vld [vmem:[%s3222_s1 + $0xc] sm:$0x3] }
  0xc3   : > { %v1216_v21 = vsel %vm1210_vm5, %v1203_v5, %v1205_v7  ;;  %v1215_v29 = vsel %vm1210_vm5, %v1201_v3, %v1203_v5 }
  0xc4   : > { %2669 = vmatmul.mubr.msk.bf16.vlgmr.msra.gmra.mxu0 %vm258_vm1, %v2591_v52  ;;  %v2472_v52 = vld [vmem:[%s3223_s2] sm:$0x7] }
  0xc5   : > { %1033 = vmatpush1.bf16.msra.mxu0 %v959_v4  ;;  %1050 = vmatprep.mubr.bf16.mxu0 %v2754_v0 }
  0xc6   : > { %1114 = vmatprep.subr.bf16.mxu0 %v964_v6  ;;  %v1207_v10 = vpop.permute.xlu0 %1206  ;;  %v1209_v11 = vpop.permute.xlu1 %1208  ;;  %2475 = vperm.xlu1 %2729, %v2472_v52  }
  0xc7   : > { %v1218_v25 = vsel %vm1210_vm5, %v1207_v10, %v1209_v11  ;;  %v1217_v32 = vsel %vm1210_vm5, %v1205_v7, %v1207_v10 }
  0xc8   : > { %2598 = vmatmul.mubr.msk.bf16.vlgmr.msra.gmra.mxu1 %vm258_vm1, %v2597_v8 }
  0xc9   : > { %1074 = vmatpush1.bf16.msra.mxu1 %v961_v9  ;;  %1091 = vmatprep.mubr.bf16.mxu1 %v2754_v0 }
  0xca   : > { %2672 = vmatprep.subr.bf16.mxu1 %v2762_v27  ;;  %v1449_v13 = vpop.permute.xlu0 %1448  ;;  %v1451_v15 = vpop.permute.xlu1 %1450 }
  0xcb   : > { %v1466_v34 = vsel %vm1464_vm6, %v1449_v13, %v1451_v15 }
  0xcc   : > { %2599 = vmatmul.mubr.msk.bf16.vlgmr.msra.gmra.mxu0 %vm258_vm1, %v2597_v8 }
  0xcd   : > { %1115 = vmatpush1.bf16.msra.mxu0 %v963_v12  ;;  %1132 = vmatprep.mubr.bf16.mxu0 %v2754_v0 }
  0xce   : > { %1245 = vmatprep.subr.bf16.mxu0 %v1212_v14  ;;  %v1447_v16 = vpop.permute.xlu0 %1446  ;;  %v1453_v18 = vpop.permute.xlu1 %1452 }
  0xcf   : > { %v1465_v39 = vsel %vm1464_vm6, %v1447_v16, %v1449_v13  ;;  %v1467_v43 = vsel %vm1464_vm6, %v1451_v15, %v1453_v18 }
  0xd0   : > { %2600 = vmatmul.mubr.msk.bf16.vlgmr.msra.gmra.mxu1 %vm258_vm1, %v2597_v8 }
  0xd1   : > { %2673 = vmatpush3.bf16.msra.mxu1 %v955_v57  ;;  %2674 = vmatprep.mubr.msk.bf16.mxu1 %vm2764_vm2, %v2762_v27 }
  0xd2   : > { %1286 = vmatprep.subr.bf16.mxu1 %v1214_v17  ;;  %v1455_v20 = vpop.permute.xlu0 %1454  ;;  %v1457_v22 = vpop.permute.xlu1 %1456 }
  0xd3   : > { %v1468_v37 = vsel %vm1464_vm6, %v1453_v18, %v1455_v20  ;;  %v1469_v48 = vsel %vm1464_vm6, %v1455_v20, %v1457_v22  ;;  %v2622_v18 = vld [vmem:[%s3222_s1 + $0xe] sm:$0x3] }
  0xd4   : > { %2601 = vmatmul.mubr.msk.bf16.vlgmr.msra.gmra.mxu0 %vm258_vm1, %v2597_v8 }
  0xd5   : > { %1246 = vmatpush1.bf16.msra.mxu0 %v1211_v19  ;;  %1263 = vmatprep.mubr.bf16.mxu0 %v2754_v0 }
  0xd6   : > { %1327 = vmatprep.subr.bf16.mxu0 %v1216_v21  ;;  %v1459_v24 = vpop.permute.xlu0 %1458  ;;  %v1461_v26 = vpop.permute.xlu1 %1460 }
  0xd7   : > { %v1470_v41 = vsel %vm1464_vm6, %v1457_v22, %v1459_v24  ;;  %v1471_v51 = vsel %vm1464_vm6, %v1459_v24, %v1461_v26 }
  0xd8   : > { %2675 = vmatmul.mubr.msk.bf16.vlgmr.msra.gmra.mxu1 %vm258_vm1, %v2597_v8 }
  0xd9   : > { %1287 = vmatpush1.bf16.msra.mxu1 %v1213_v23  ;;  %1304 = vmatprep.mubr.bf16.mxu1 %v2754_v0 }
  0xda   : > { %1368 = vmatprep.subr.bf16.mxu1 %v1218_v25  ;;  %v1463_v30 = vpop.permute.xlu0 %1462  ;;  %v1706_v31 = vpop.permute.xlu1 %1705 }
  0xdb   : > { %v1472_v45 = vsel %vm1464_vm6, %v1461_v26, %v1463_v30 }
  0xdc   : > { %2604 = vmatmul.mubr.msk.bf16.vlgmr.msra.gmra.mxu0 %vm258_vm1, %v2603_v28 }
  0xdd   : > { %1328 = vmatpush1.bf16.msra.mxu0 %v1215_v29  ;;  %1345 = vmatprep.mubr.bf16.mxu0 %v2754_v0 }
  0xde   : > { %2678 = vmatprep.subr.bf16.mxu0 %v2762_v27  ;;  %v1708_v33 = vpop.permute.xlu0 %1707  ;;  %v1704_v35 = vpop.permute.xlu1 %1703 }
  0xdf   : > { %v1725_v53 = vsel %vm1723_vm7, %v1706_v31, %v1708_v33  ;;  %v1724_v57 = vsel %vm1723_vm7, %v1704_v35, %v1706_v31  ;;  %v2628_v35 = vld [vmem:[%s3222_s1 + $0x10] sm:$0x3] }
  0xe0   : > { %2605 = vmatmul.mubr.msk.bf16.vlgmr.msra.gmra.mxu1 %vm258_vm1, %v2603_v28 }
  0xe1   : > { %1369 = vmatpush1.bf16.msra.mxu1 %v1217_v32  ;;  %1386 = vmatprep.mubr.bf16.mxu1 %v2754_v0 }
  0xe2   : > { %1499 = vmatprep.subr.bf16.mxu1 %v1466_v34  ;;  %v1710_v36 = vpop.permute.xlu0 %1709  ;;  %v1712_v38 = vpop.permute.xlu1 %1711 }
  0xe3   : > { %v1727_v56 = vsel %vm1723_vm7, %v1710_v36, %v1712_v38  ;;  %v1726_v61 = vsel %vm1723_vm7, %v1708_v33, %v1710_v36 }
  0xe4   : > { %2606 = vmatmul.mubr.msk.bf16.vlgmr.msra.gmra.mxu0 %vm258_vm1, %v2603_v28 }
  0xe5   : > { %2679 = vmatpush3.bf16.msra.mxu0 %v1209_v11  ;;  %2680 = vmatprep.mubr.msk.bf16.mxu0 %vm2764_vm2, %v2762_v27 }
  0xe6   : > { %1540 = vmatprep.subr.bf16.mxu0 %v1468_v37  ;;  %v1714_v40 = vpop.permute.xlu0 %1713  ;;  %v1716_v42 = vpop.permute.xlu1 %1715 }
  0xe7   : > { %v1729_v60 = vsel %vm1723_vm7, %v1714_v40, %v1716_v42  ;;  %v1728_v3 = vsel %vm1723_vm7, %v1712_v38, %v1714_v40 }
  0xe8   : > { %2607 = vmatmul.mubr.msk.bf16.vlgmr.msra.gmra.mxu1 %vm258_vm1, %v2603_v28 }
  0xe9   : > { %1500 = vmatpush1.bf16.msra.mxu1 %v1465_v39  ;;  %1517 = vmatprep.mubr.bf16.mxu1 %v2754_v0 }
  0xea   : > { %1581 = vmatprep.subr.bf16.mxu1 %v1470_v41  ;;  %v1718_v44 = vpop.permute.xlu0 %1717  ;;  %v1720_v46 = vpop.permute.xlu1 %1719 }
  0xeb   : > { %v1731_v62 = vsel %vm1723_vm7, %v1718_v44, %v1720_v46  ;;  %v1730_v4 = vsel %vm1723_vm7, %v1716_v42, %v1718_v44 }
  0xec   : > { %2681 = vmatmul.mubr.msk.bf16.vlgmr.msra.gmra.mxu0 %vm258_vm1, %v2603_v28 }
  0xed   : > { %1541 = vmatpush1.bf16.msra.mxu0 %v1467_v43  ;;  %1558 = vmatprep.mubr.bf16.mxu0 %v2754_v0 }
  0xee   : > { %1622 = vmatprep.subr.bf16.mxu0 %v1472_v45  ;;  %v1722_v49 = vpop.permute.xlu0 %1721  ;;  %v1963_v50 = vpop.permute.xlu1 %1962 }
  0xef   : > { %v1732_v8 = vsel %vm1723_vm7, %v1720_v46, %v1722_v49 }
  0xf0   : > { %2610 = vmatmul.mubr.msk.bf16.vlgmr.msra.gmra.mxu1 %vm258_vm1, %v2609_v47 }
  0xf1   : > { %1582 = vmatpush1.bf16.msra.mxu1 %v1469_v48  ;;  %1599 = vmatprep.mubr.bf16.mxu1 %v2754_v0 }
  0xf2   : > { %2684 = vmatprep.subr.bf16.mxu1 %v2762_v27  ;;  %v1965_v54 = vpop.permute.xlu0 %1964  ;;  %v1961_v55 = vpop.permute.xlu1 %1960 }
  0xf3   : > { %v1982_v7 = vsel %vm1980_vm8, %v1963_v50, %v1965_v54  ;;  %v1981_v12 = vsel %vm1980_vm8, %v1961_v55, %v1963_v50 }
  0xf4   : > { %2611 = vmatmul.mubr.msk.bf16.vlgmr.msra.gmra.mxu0 %vm258_vm1, %v2609_v47 }
  0xf5   : > { %1623 = vmatpush1.bf16.msra.mxu0 %v1471_v51  ;;  %1640 = vmatprep.mubr.bf16.mxu0 %v2754_v0 }
  0xf6   : > { %1759 = vmatprep.subr.bf16.mxu0 %v1725_v53  ;;  %v1967_v58 = vpop.permute.xlu0 %1966  ;;  %v1969_v59 = vpop.permute.xlu1 %1968 }
  0xf7   : > { %v1984_v9 = vsel %vm1980_vm8, %v1967_v58, %v1969_v59  ;;  %v1983_v14 = vsel %vm1980_vm8, %v1965_v54, %v1967_v58 }
  0xf8   : > { %2612 = vmatmul.mubr.msk.bf16.vlgmr.msra.gmra.mxu1 %vm258_vm1, %v2609_v47 }
  0xf9   : > { %2685 = vmatpush3.bf16.msra.mxu1 %v1463_v30  ;;  %2686 = vmatprep.mubr.msk.bf16.mxu1 %vm2764_vm2, %v2762_v27 }
  0xfa   : > { %1800 = vmatprep.subr.bf16.mxu1 %v1727_v56  ;;  %v1971_v63 = vpop.permute.xlu0 %1970 }
  0xfb   : > { %v1973_v1 = vpop.permute.xlu1 %1972  ;;  %v1985_v19 = vsel %vm1980_vm8, %v1969_v59, %v1971_v63 }
  0xfc   : > { %2613 = vmatmul.mubr.msk.bf16.vlgmr.msra.gmra.mxu0 %vm258_vm1, %v2609_v47  ;;  %v1986_v13 = vsel %vm1980_vm8, %v1971_v63, %v1973_v1 }
  0xfd   : > { %1760 = vmatpush1.bf16.msra.mxu0 %v1724_v57  ;;  %1777 = vmatprep.mubr.bf16.mxu0 %v2754_v0 }
  0xfe   : > { %1841 = vmatprep.subr.bf16.mxu0 %v1729_v60 }
 0x100   : > { %2687 = vmatmul.mubr.msk.bf16.vlgmr.msra.gmra.mxu1 %vm258_vm1, %v2609_v47  ;;  %v1975_v5 = vpop.permute.xlu0 %1974  ;;  %v1977_v6 = vpop.permute.xlu1 %1976 }
 0x101   : > { %1801 = vmatpush1.bf16.msra.mxu1 %v1726_v61  ;;  %1818 = vmatprep.mubr.bf16.mxu1 %v2754_v0  ;;  %v1988_v17 = vsel %vm1980_vm8, %v1975_v5, %v1977_v6  ;;  %v1987_v22 = vsel %vm1980_vm8, %v1973_v1, %v1975_v5 }
 0x102   : > { %1882 = vmatprep.subr.bf16.mxu1 %v1731_v62 }
 0x104   : > { %2617 = vmatmul.mubr.msk.bf16.vlgmr.msra.gmra.mxu0 %vm258_vm1, %v2615_v2  ;;  %v1979_v10 = vpop.permute.xlu0 %1978 }
 0x105   : > { %1842 = vmatpush1.bf16.msra.mxu0 %v1728_v3  ;;  %1859 = vmatprep.mubr.bf16.mxu0 %v2754_v0  ;;  %v2220_v11 = vpop.permute.xlu1 %2219  ;;  %v1989_v24 = vsel %vm1980_vm8, %v1977_v6, %v1979_v10 }
 0x106   : > { %2690 = vmatprep.subr.bf16.mxu0 %v2762_v27 }
 0x108   : > { %2618 = vmatmul.mubr.msk.bf16.vlgmr.msra.gmra.mxu1 %vm258_vm1, %v2615_v2 }
 0x109   : > { %1883 = vmatpush1.bf16.msra.mxu1 %v1730_v4  ;;  %1900 = vmatprep.mubr.bf16.mxu1 %v2754_v0  ;;  %v2222_v15 = vpop.permute.xlu0 %2221 }
 0x10a   : > { %2016 = vmatprep.subr.bf16.mxu1 %v1982_v7  ;;  %v2218_v16 = vpop.permute.xlu1 %2217  ;;  %v2239_v23 = vsel %vm2237_vm9, %v2220_v11, %v2222_v15 }
 0x10b   : > { %v2238_v29 = vsel %vm2237_vm9, %v2218_v16, %v2220_v11 }
 0x10c   : > { %2619 = vmatmul.mubr.msk.bf16.vlgmr.msra.gmra.mxu0 %vm258_vm1, %v2615_v2 }
 0x10d   : > { %2691 = vmatpush3.bf16.msra.mxu0 %v1732_v8  ;;  %2692 = vmatprep.mubr.msk.bf16.mxu0 %vm2764_vm2, %v2762_v27  ;;  %v2224_v20 = vpop.permute.xlu0 %2223 }
 0x10e   : > { %2057 = vmatprep.subr.bf16.mxu0 %v1984_v9  ;;  %v2226_v21 = vpop.permute.xlu1 %2225  ;;  %v2240_v33 = vsel %vm2237_vm9, %v2222_v15, %v2224_v20 }
 0x10f   : > { %v2241_v28 = vsel %vm2237_vm9, %v2224_v20, %v2226_v21 }
 0x110   : > { %2620 = vmatmul.mubr.msk.bf16.vlgmr.msra.gmra.mxu1 %vm258_vm1, %v2615_v2 }
 0x111   : > { %2017 = vmatpush1.bf16.msra.mxu1 %v1981_v12  ;;  %2034 = vmatprep.mubr.bf16.mxu1 %v2754_v0  ;;  %v2228_v25 = vpop.permute.xlu0 %2227 }
 0x112   : > { %2098 = vmatprep.subr.bf16.mxu1 %v1986_v13  ;;  %v2230_v26 = vpop.permute.xlu1 %2229  ;;  %v2242_v36 = vsel %vm2237_vm9, %v2226_v21, %v2228_v25 }
 0x113   : > { %v2243_v30 = vsel %vm2237_vm9, %v2228_v25, %v2230_v26 }
 0x114   : > { %2693 = vmatmul.mubr.msk.bf16.vlgmr.msra.gmra.mxu0 %vm258_vm1, %v2615_v2 }
 0x115   : > { %2058 = vmatpush1.bf16.msra.mxu0 %v1983_v14  ;;  %2075 = vmatprep.mubr.bf16.mxu0 %v2754_v0  ;;  %v2232_v31 = vpop.permute.xlu0 %2231 }
 0x116   : > { %2139 = vmatprep.subr.bf16.mxu0 %v1988_v17  ;;  %v2234_v32 = vpop.permute.xlu1 %2233  ;;  %v2244_v37 = vsel %vm2237_vm9, %v2230_v26, %v2232_v31 }
 0x117   : > { %v2245_v34 = vsel %vm2237_vm9, %v2232_v31, %v2234_v32 }
 0x118   : > { %2623 = vmatmul.mubr.msk.bf16.vlgmr.msra.gmra.mxu1 %vm258_vm1, %v2622_v18 }
 0x119   : > { %2099 = vmatpush1.bf16.msra.mxu1 %v1985_v19  ;;  %2116 = vmatprep.mubr.bf16.mxu1 %v2754_v0  ;;  %v2236_v38 = vpop.permute.xlu0 %2235 }
 0x11a   : > { %2696 = vmatprep.subr.bf16.mxu1 %v2762_v27  ;;  %v2246_v39 = vsel %vm2237_vm9, %v2234_v32, %v2236_v38 }
 0x11c   : > { %2624 = vmatmul.mubr.msk.bf16.vlgmr.msra.gmra.mxu0 %vm258_vm1, %v2622_v18 }
 0x11d   : > { %2140 = vmatpush1.bf16.msra.mxu0 %v1987_v22  ;;  %2157 = vmatprep.mubr.bf16.mxu0 %v2754_v0 }
 0x11e   : > { %2273 = vmatprep.subr.bf16.mxu0 %v2239_v23 }
 0x120   : > { %2625 = vmatmul.mubr.msk.bf16.vlgmr.msra.gmra.mxu1 %vm258_vm1, %v2622_v18 }
 0x121   : > { %2697 = vmatpush3.bf16.msra.mxu1 %v1989_v24  ;;  %2698 = vmatprep.mubr.msk.bf16.mxu1 %vm2764_vm2, %v2762_v27 }
 0x122   : > { %2314 = vmatprep.subr.bf16.mxu1 %v2241_v28 }
 0x124   : > { %2626 = vmatmul.mubr.msk.bf16.vlgmr.msra.gmra.mxu0 %vm258_vm1, %v2622_v18 }
 0x125   : > { %2274 = vmatpush1.bf16.msra.mxu0 %v2238_v29  ;;  %2291 = vmatprep.mubr.bf16.mxu0 %v2754_v0 }
 0x126   : > { %2355 = vmatprep.subr.bf16.mxu0 %v2243_v30 }
 0x128   : > { %2699 = vmatmul.mubr.msk.bf16.vlgmr.msra.gmra.mxu1 %vm258_vm1, %v2622_v18 }
 0x129   : > { %2315 = vmatpush1.bf16.msra.mxu1 %v2240_v33  ;;  %2332 = vmatprep.mubr.bf16.mxu1 %v2754_v0 }
 0x12a   : > { %2396 = vmatprep.subr.bf16.mxu1 %v2245_v34 }
 0x12c   : > { %2629 = vmatmul.mubr.msk.bf16.vlgmr.msra.gmra.mxu0 %vm258_vm1, %v2628_v35 }
 0x12d   : > { %2356 = vmatpush1.bf16.msra.mxu0 %v2242_v36  ;;  %2373 = vmatprep.mubr.bf16.mxu0 %v2754_v0 }
 0x12e   : > { %2702 = vmatprep.subr.bf16.mxu0 %v2762_v27 }
 0x130   : > { %2630 = vmatmul.mubr.msk.bf16.vlgmr.msra.gmra.mxu1 %vm258_vm1, %v2628_v35 }
 0x131   : > { %2397 = vmatpush1.bf16.msra.mxu1 %v2244_v37  ;;  %2414 = vmatprep.mubr.bf16.mxu1 %v2754_v0 }
 0x134   : > { %2631 = vmatmul.mubr.msk.bf16.vlgmr.msra.gmra.mxu0 %vm258_vm1, %v2628_v35 }
 0x135   : > { %2703 = vmatpush3.bf16.msra.mxu0 %v2246_v39  ;;  %2704 = vmatprep.mubr.msk.bf16.mxu0 %vm2764_vm2, %v2762_v27 }
 0x138   : > { %2632 = vmatmul.mubr.msk.bf16.vlgmr.msra.gmra.mxu1 %vm258_vm1, %v2628_v35 }
 0x13c   : > { %2705 = vmatmul.mubr.msk.bf16.vlgmr.msra.gmra.mxu0 %vm258_vm1, %v2628_v35 }
 0x14c   : > { %v296_v40 = vpop.f32.mrf.mxu0 }
 0x14e   : > { %v298_v41 = vpop.f32.mrf.mxu0 }
 0x150   : > { %v300_v42 = vpop.f32.mrf.mxu0  ;;  %v337_v43 = vpop.f32.mrf.mxu1 }
 0x152   : > { %v301_v44 = vpop.f32.mrf.mxu0  ;;  %v339_v45 = vpop.f32.mrf.mxu1 }
 0x154   : > { %v341_v46 = vpop.f32.mrf.mxu1  ;;  %v378_v0 = vpop.f32.mrf.mxu0 }
 0x156   : > { %v342_v47 = vpop.f32.mrf.mxu1  ;;  %v380_v48 = vpop.f32.mrf.mxu0 }
 0x158   : > { %v382_v49 = vpop.f32.mrf.mxu0  ;;  %v419_v50 = vpop.f32.mrf.mxu1 }
 0x15a   : > { %v383_v51 = vpop.f32.mrf.mxu0  ;;  %v421_v52 = vpop.f32.mrf.mxu1 }
 0x15c   : > { %v423_v53 = vpop.f32.mrf.mxu1  ;;  %v460_v27 = vpop.f32.mrf.mxu0 }
 0x15e   : > { %v424_v54 = vpop.f32.mrf.mxu1  ;;  %v2658_v55 = vpop.f32.mrf.mxu0 }
 0x160   : > { %v463_v56 = vpop.f32.mrf.mxu0  ;;  %v512_v57 = vpop.f32.mrf.mxu1 }
 0x161   : > { %v513_v58 = vadd.f32 %v512_v57, %v296_v40 }
 0x162   : > { %v2659_v59 = vpop.f32.mrf.mxu0  ;;  %v514_v60 = vpop.f32.mrf.mxu1 }
 0x163   : > { %v515_v61 = vadd.f32 %v514_v60, %v298_v41 }
 0x164   : > { %v516_v62 = vpop.f32.mrf.mxu1  ;;  %v553_v63 = vpop.f32.mrf.mxu0 }
 0x165   : > { %v554_v1 = vadd.f32 %v553_v63, %v337_v43 }
 0x166   : > { %v517_v2 = vpop.f32.mrf.mxu1  ;;  %v555_v3 = vpop.f32.mrf.mxu0 }
 0x167   : > { %v556_v4 = vadd.f32 %v555_v3, %v339_v45 }
 0x168   : > { %v557_v5 = vpop.f32.mrf.mxu0  ;;  %v594_v6 = vpop.f32.mrf.mxu1 }
 0x169   : > { %v595_v7 = vadd.f32 %v594_v6, %v378_v0 }
 0x16a   : > { %v558_v8 = vpop.f32.mrf.mxu0  ;;  %v596_v9 = vpop.f32.mrf.mxu1 }
 0x16b   : > { %v597_v10 = vadd.f32 %v596_v9, %v380_v48 }
 0x16c   : > { %v598_v11 = vpop.f32.mrf.mxu1  ;;  %v635_v12 = vpop.f32.mrf.mxu0 }
 0x16d   : > { %v636_v13 = vadd.f32 %v635_v12, %v419_v50 }
 0x16e   : > { %v599_v14 = vpop.f32.mrf.mxu1  ;;  %v637_v15 = vpop.f32.mrf.mxu0 }
 0x16f   : > { %v638_v16 = vadd.f32 %v637_v15, %v421_v52 }
 0x170   : > { %v639_v17 = vpop.f32.mrf.mxu0  ;;  %v676_v18 = vpop.f32.mrf.mxu1 }
 0x171   : > { %v677_v19 = vadd.f32 %v676_v18, %v460_v27 }
 0x172   : > { %v640_v20 = vpop.f32.mrf.mxu0  ;;  %v2664_v21 = vpop.f32.mrf.mxu1 }
 0x174   : > { %v679_v22 = vpop.f32.mrf.mxu1  ;;  %v757_v23 = vpop.f32.mrf.mxu0 }
 0x175   : > { %v927_v24 = vadd.f32 %v757_v23, %v513_v58 }
 0x176   : > { %v2665_v25 = vpop.f32.mrf.mxu1  ;;  %v759_v26 = vpop.f32.mrf.mxu0 }
 0x177   : > { %v928_v28 = vadd.f32 %v759_v26, %v515_v61 }
 0x178   : > { %v761_v29 = vpop.f32.mrf.mxu0  ;;  %v798_v30 = vpop.f32.mrf.mxu1 }
 0x179   : > { %v929_v31 = vadd.f32 %v798_v30, %v554_v1 }
 0x17a   : > { %v762_v32 = vpop.f32.mrf.mxu0  ;;  %v800_v33 = vpop.f32.mrf.mxu1 }
 0x17b   : > { %v930_v34 = vadd.f32 %v800_v33, %v556_v4 }
 0x17c   : > { %v802_v35 = vpop.f32.mrf.mxu1  ;;  %v839_v36 = vpop.f32.mrf.mxu0 }
 0x17d   : > { %v931_v37 = vadd.f32 %v839_v36, %v595_v7 }
 0x17e   : > { %v803_v38 = vpop.f32.mrf.mxu1  ;;  %v841_v39 = vpop.f32.mrf.mxu0 }
 0x17f   : > { %v932_v40 = vadd.f32 %v841_v39, %v597_v10 }
 0x180   : > { %v843_v41 = vpop.f32.mrf.mxu0  ;;  %v880_v42 = vpop.f32.mrf.mxu1 }
 0x181   : > { %v933_v43 = vadd.f32 %v880_v42, %v636_v13 }
 0x182   : > { %v844_v44 = vpop.f32.mrf.mxu0  ;;  %v882_v45 = vpop.f32.mrf.mxu1 }
 0x183   : > { %v934_v46 = vadd.f32 %v882_v45, %v638_v16 }
 0x184   : > { %v884_v0 = vpop.f32.mrf.mxu1  ;;  %v921_v47 = vpop.f32.mrf.mxu0 }
 0x185   : > { %v935_v48 = vadd.f32 %v921_v47, %v677_v19 }
 0x186   : > { %v885_v49 = vpop.f32.mrf.mxu1  ;;  %v2670_v50 = vpop.f32.mrf.mxu0 }
 0x188   : > { %v924_v51 = vpop.f32.mrf.mxu0  ;;  %v1011_v52 = vpop.f32.mrf.mxu1 }
 0x189   : > { %v1181_v53 = vadd.f32 %v1011_v52, %v927_v24 }
 0x18a   : > { %v2671_v27 = vpop.f32.mrf.mxu0  ;;  %v1013_v54 = vpop.f32.mrf.mxu1 }
 0x18b   : > { %v1182_v55 = vadd.f32 %v1013_v54, %v928_v28 }
 0x18c   : > { %v1015_v56 = vpop.f32.mrf.mxu1  ;;  %v1052_v57 = vpop.f32.mrf.mxu0 }
 0x18d   : > { %v1183_v58 = vadd.f32 %v1052_v57, %v929_v31 }
 0x18e   : > { %v1016_v59 = vpop.f32.mrf.mxu1  ;;  %v1054_v60 = vpop.f32.mrf.mxu0 }
 0x18f   : > { %v1184_v61 = vadd.f32 %v1054_v60, %v930_v34 }
 0x190   : > { %v1056_v62 = vpop.f32.mrf.mxu0  ;;  %v1093_v63 = vpop.f32.mrf.mxu1 }
 0x191   : > { %v1185_v1 = vadd.f32 %v1093_v63, %v931_v37 }
 0x192   : > { %v1057_v2 = vpop.f32.mrf.mxu0  ;;  %v1095_v3 = vpop.f32.mrf.mxu1 }
 0x193   : > { %v1186_v4 = vadd.f32 %v1095_v3, %v932_v40 }
 0x194   : > { %v1097_v5 = vpop.f32.mrf.mxu1  ;;  %v1134_v6 = vpop.f32.mrf.mxu0 }
 0x195   : > { %v1187_v7 = vadd.f32 %v1134_v6, %v933_v43 }
 0x196   : > { %v1098_v8 = vpop.f32.mrf.mxu1  ;;  %v1136_v9 = vpop.f32.mrf.mxu0 }
 0x197   : > { %v1188_v10 = vadd.f32 %v1136_v9, %v934_v46 }
 0x198   : > { %v1138_v11 = vpop.f32.mrf.mxu0  ;;  %v1175_v12 = vpop.f32.mrf.mxu1 }
 0x199   : > { %v1189_v13 = vadd.f32 %v1175_v12, %v935_v48 }
 0x19a   : > { %v1139_v14 = vpop.f32.mrf.mxu0  ;;  %v2676_v15 = vpop.f32.mrf.mxu1 }
 0x19c   : > { %v1178_v16 = vpop.f32.mrf.mxu1  ;;  %v1265_v17 = vpop.f32.mrf.mxu0 }
 0x19d   : > { %v3142_v18 = vadd.f32 %v1265_v17, %v1181_v53 }
 0x19e   : > { %v2677_v19 = vpop.f32.mrf.mxu1  ;;  %v1267_v20 = vpop.f32.mrf.mxu0 }
 0x19f   : > { %v3144_v21 = vadd.f32 %v1267_v20, %v1182_v55 }
 0x1a0   : > { %v1269_v22 = vpop.f32.mrf.mxu0  ;;  %v1306_v23 = vpop.f32.mrf.mxu1 }
 0x1a1   : > { %v3146_v24 = vadd.f32 %v1306_v23, %v1183_v58 }
 0x1a2   : > { %v1270_v25 = vpop.f32.mrf.mxu0  ;;  %v1308_v26 = vpop.f32.mrf.mxu1 }
 0x1a3   : > { %v3148_v28 = vadd.f32 %v1308_v26, %v1184_v61 }
 0x1a4   : > { %v1310_v29 = vpop.f32.mrf.mxu1  ;;  %v1347_v30 = vpop.f32.mrf.mxu0 }
 0x1a5   : > { %v3150_v31 = vadd.f32 %v1347_v30, %v1185_v1 }
 0x1a6   : > { %v1311_v32 = vpop.f32.mrf.mxu1  ;;  %v1349_v33 = vpop.f32.mrf.mxu0 }
 0x1a7   : > { %v3152_v34 = vadd.f32 %v1349_v33, %v1186_v4 }
 0x1a8   : > { %v1351_v35 = vpop.f32.mrf.mxu0  ;;  %v1388_v36 = vpop.f32.mrf.mxu1 }
 0x1a9   : > { %v3154_v37 = vadd.f32 %v1388_v36, %v1187_v7 }
 0x1aa   : > { %v1352_v38 = vpop.f32.mrf.mxu0  ;;  %v1390_v39 = vpop.f32.mrf.mxu1 }
 0x1ab   : > { %v3156_v40 = vadd.f32 %v1390_v39, %v1188_v10 }
 0x1ac   : > { %v1392_v41 = vpop.f32.mrf.mxu1  ;;  %v1429_v42 = vpop.f32.mrf.mxu0 }
 0x1ad   : > { %v3158_v43 = vadd.f32 %v1429_v42, %v1189_v13 }
 0x1ae   : > { %v1393_v44 = vpop.f32.mrf.mxu1  ;;  %v2682_v45 = vpop.f32.mrf.mxu0 }
 0x1b0   : > { %v1432_v46 = vpop.f32.mrf.mxu0  ;;  %v1519_v0 = vpop.f32.mrf.mxu1 }
 0x1b2   : > { %v2683_v47 = vpop.f32.mrf.mxu0  ;;  %v1521_v48 = vpop.f32.mrf.mxu1 }
 0x1b3   : > { %v1689_v47 = vadd.f32 %v1519_v0, %v3142_v18  ;;  %v3182_v0 = vpop.permute.xlu1 %2475 }
 0x1b4   : > { %v1523_v49 = vpop.f32.mrf.mxu1  ;;  %v1560_v50 = vpop.f32.mrf.mxu0 }
 0x1b6   : > { %v1524_v51 = vpop.f32.mrf.mxu1  ;;  %v1562_v52 = vpop.f32.mrf.mxu0 }
 0x1b8   : > { %v1564_v53 = vpop.f32.mrf.mxu0  ;;  %v3160_v27 = vpop.f32.mrf.mxu1 }
 0x1b9   : > { %v1690_v53 = vadd.f32 %v1521_v48, %v3144_v21  ;;  %v1693_v21 = vadd.f32 %v3160_v27, %v3150_v31 }
 0x1ba   : > { %v1565_v54 = vpop.f32.mrf.mxu0  ;;  %v3162_v55 = vpop.f32.mrf.mxu1 }
 0x1bc   : > { %v1605_v56 = vpop.f32.mrf.mxu1  ;;  %v3164_v57 = vpop.f32.mrf.mxu0 }
 0x1bd   : > { %v1695_v31 = vadd.f32 %v3164_v57, %v3154_v37 }
 0x1be   : > { %v1606_v58 = vpop.f32.mrf.mxu1  ;;  %v3166_v59 = vpop.f32.mrf.mxu0 }
 0x1c0   : > { %v1646_v60 = vpop.f32.mrf.mxu0  ;;  %v3168_v61 = vpop.f32.mrf.mxu1 }
 0x1c1   : > { %v1691_v60 = vadd.f32 %v1560_v50, %v3146_v24  ;;  %v1694_v50 = vadd.f32 %v3162_v55, %v3152_v34 }
 0x1c2   : > { %v1647_v62 = vpop.f32.mrf.mxu0  ;;  %v2688_v63 = vpop.f32.mrf.mxu1 }
 0x1c4   : > { %v1686_v1 = vpop.f32.mrf.mxu1  ;;  %v1779_v2 = vpop.f32.mrf.mxu0 }
 0x1c5   : > { %v1949_v54 = vadd.f32 %v1779_v2, %v1689_v47 }
 0x1c6   : > { %v2689_v3 = vpop.f32.mrf.mxu1  ;;  %v1781_v4 = vpop.f32.mrf.mxu0 }
 0x1c7   : > { %v1950_v62 = vadd.f32 %v1781_v4, %v1690_v53 }
 0x1c8   : > { %v1783_v5 = vpop.f32.mrf.mxu0  ;;  %v1820_v6 = vpop.f32.mrf.mxu1 }
 0x1c9   : > { %v1692_v5 = vadd.f32 %v1562_v52, %v3148_v28 }
 0x1ca   : > { %v1784_v7 = vpop.f32.mrf.mxu0  ;;  %v1822_v8 = vpop.f32.mrf.mxu1 }
 0x1cb   : > { %v1951_v7 = vadd.f32 %v1820_v6, %v1691_v60 }
 0x1cc   : > { %v1824_v9 = vpop.f32.mrf.mxu1  ;;  %v1861_v10 = vpop.f32.mrf.mxu0 }
 0x1cd   : > { %v1953_v4 = vadd.f32 %v1861_v10, %v1693_v21 }
 0x1ce   : > { %v1825_v11 = vpop.f32.mrf.mxu1  ;;  %v1863_v12 = vpop.f32.mrf.mxu0 }
 0x1cf   : > { %v1952_v11 = vadd.f32 %v1822_v8, %v1692_v5  ;;  %v1954_v55 = vadd.f32 %v1863_v12, %v1694_v50  ;;  %v1697_v12 = vadd.f32 %v3168_v61, %v3158_v43 }
 0x1d0   : > { %v1865_v13 = vpop.f32.mrf.mxu0  ;;  %v3170_v14 = vpop.f32.mrf.mxu1 }
 0x1d2   : > { %v1866_v15 = vpop.f32.mrf.mxu0  ;;  %v3172_v16 = vpop.f32.mrf.mxu1 }
 0x1d4   : > { %v1906_v17 = vpop.f32.mrf.mxu1  ;;  %v3174_v19 = vpop.f32.mrf.mxu0 }
 0x1d6   : > { %v1907_v20 = vpop.f32.mrf.mxu1  ;;  %v2694_v22 = vpop.f32.mrf.mxu0 }
 0x1d8   : > { %v1946_v23 = vpop.f32.mrf.mxu0  ;;  %v2036_v25 = vpop.f32.mrf.mxu1 }
 0x1d9   : > { %v2206_v63 = vadd.f32 %v2036_v25, %v1949_v54  ;;  %v1696_v23 = vadd.f32 %v3166_v59, %v3156_v40  ;;  %v1955_v25 = vadd.f32 %v3170_v14, %v1695_v31 }
 0x1da   : > { %v2695_v26 = vpop.f32.mrf.mxu0  ;;  %v2038_v29 = vpop.f32.mrf.mxu1 }
 0x1db   : > { %v2207_v9 = vadd.f32 %v2038_v29, %v1950_v62 }
 0x1dc   : > { %v2040_v30 = vpop.f32.mrf.mxu1  ;;  %v2077_v32 = vpop.f32.mrf.mxu0 }
 0x1dd   : > { %v2208_v13 = vadd.f32 %v2077_v32, %v1951_v7 }
 0x1de   : > { %v2041_v33 = vpop.f32.mrf.mxu1  ;;  %v2079_v35 = vpop.f32.mrf.mxu0 }
 0x1df   : > { %v2209_v52 = vadd.f32 %v2079_v35, %v1952_v11 }
 0x1e0   : > { %v2081_v36 = vpop.f32.mrf.mxu0  ;;  %v2118_v38 = vpop.f32.mrf.mxu1 }
 0x1e1   : > { %v2210_v8 = vadd.f32 %v2118_v38, %v1953_v4  ;;  %v1956_v36 = vadd.f32 %v3172_v16, %v1696_v23  ;;  %v1957_v38 = vadd.f32 %v3174_v19, %v1697_v12 }
 0x1e2   : > { %v2082_v39 = vpop.f32.mrf.mxu0  ;;  %v2120_v41 = vpop.f32.mrf.mxu1 }
 0x1e3   : > { %v2211_v37 = vadd.f32 %v2120_v41, %v1954_v55 }
 0x1e4   : > { %v2122_v42 = vpop.f32.mrf.mxu1  ;;  %v2159_v44 = vpop.f32.mrf.mxu0 }
 0x1e5   : > { %v2212_v40 = vadd.f32 %v2159_v44, %v1955_v25 }
 0x1e6   : > { %v2123_v45 = vpop.f32.mrf.mxu1  ;;  %v2161_v46 = vpop.f32.mrf.mxu0 }
 0x1e7   : > { %v2213_v42 = vadd.f32 %v2161_v46, %v1956_v36 }
 0x1e8   : > { %v2163_v49 = vpop.f32.mrf.mxu0  ;;  %v3177_v51 = vpop.f32.mrf.mxu1 }
 0x1e9   : > { %v2214_v16 = vadd.f32 %v3177_v51, %v1957_v38 }
 0x1ea   : > { %v2164_v56 = vpop.f32.mrf.mxu0  ;;  %v2700_v58 = vpop.f32.mrf.mxu1 }
 0x1ec   : > { %v2203_v1 = vpop.f32.mrf.mxu1  ;;  %v2293_v3 = vpop.f32.mrf.mxu0 }
 0x1ed   : > { %v2463_v18 = vadd.f32 %v2293_v3, %v2206_v63 }
 0x1ee   : > { %v2701_v48 = vpop.f32.mrf.mxu1  ;;  %v2295_v2 = vpop.f32.mrf.mxu0 }
 0x1ef   : > { %v2464_v24 = vadd.f32 %v2295_v2, %v2207_v9  ;;  %v2478_v6 = vadd.f32 %v3182_v0, %v2463_v18 }
 0x1f0   : > { %v2297_v15 = vpop.f32.mrf.mxu0  ;;  %v2334_v28 = vpop.f32.mrf.mxu1 }
 0x1f1   : > { %v2479_v17 = vadd.f32 %v3182_v0, %v2464_v24  ;;  %v2465_v20 = vadd.f32 %v2334_v28, %v2208_v13 }
 0x1f2   : > { %v2298_v27 = vpop.f32.mrf.mxu0  ;;  %v2336_v34 = vpop.f32.mrf.mxu1 }
 0x1f3   : > { %v2466_v10 = vadd.f32 %v2336_v34, %v2209_v52  ;;  %v2495_v22 = vcombine.low %v2478_v6, %v2479_v17  ;;  %v2480_v57 = vadd.f32 %v3182_v0, %v2465_v20 }
 0x1f4   : > { %v2338_v26 = vpop.f32.mrf.mxu1  ;;  %v2375_v29 = vpop.f32.mrf.mxu0 }
 0x1f5   : > { %v2481_v30 = vadd.f32 %v3182_v0, %v2466_v10  ;;  %2503 = vst [vmem:[%s3196_s23] sm:$0x77] %v2495_v22  ;;  %v2467_v32 = vadd.f32 %v2375_v29, %v2210_v8 }
 0x1f6   : > { %v2339_v33 = vpop.f32.mrf.mxu1  ;;  %v2377_v35 = vpop.f32.mrf.mxu0 }
 0x1f7   : > { %v2496_v59 = vcombine.low %v2480_v57, %v2481_v30  ;;  %v2468_v14 = vadd.f32 %v2377_v35, %v2211_v37  ;;  %v2482_v45 = vadd.f32 %v3182_v0, %v2467_v32 }
 0x1f8   : > { %v2379_v39 = vpop.f32.mrf.mxu0  ;;  %v2416_v41 = vpop.f32.mrf.mxu1 }
 0x1f9   : > { %2504 = vst [vmem:[%s3196_s23 + $0x8] sm:$0x77] %v2496_v59  ;;  %v2483_v47 = vadd.f32 %v3182_v0, %v2468_v14  ;;  %v2469_v49 = vadd.f32 %v2416_v41, %v2212_v40 }
 0x1fa   : > { %v2380_v43 = vpop.f32.mrf.mxu0  ;;  %v2418_v61 = vpop.f32.mrf.mxu1 }
 0x1fb   : > { %v2497_v44 = vcombine.low %v2482_v45, %v2483_v47  ;;  %v2470_v53 = vadd.f32 %v2418_v61, %v2213_v42  ;;  %v2484_v19 = vadd.f32 %v3182_v0, %v2469_v49 }
 0x1fc   : > { %v2420_v54 = vpop.f32.mrf.mxu1  ;;  %v2457_v56 = vpop.f32.mrf.mxu0 }
 0x1fd   : > { %2505 = vst [vmem:[%s3196_s23 + $0x10] sm:$0x77] %v2497_v44  ;;  %v2485_v46 = vadd.f32 %v3182_v0, %v2470_v53  ;;  %v2471_v58 = vadd.f32 %v2457_v56, %v2214_v16 }
 0x1fe   : > { %v2421_v60 = vpop.f32.mrf.mxu1  ;;  %v2706_v62 = vpop.f32.mrf.mxu0 }
 0x1ff   : > { %v2498_v63 = vcombine.low %v2484_v19, %v2485_v46  ;;  %v2486_v1 = vadd.f32 %v3182_v0, %v2471_v58 }
 0x200   : > { %v2460_v3 = vpop.f32.mrf.mxu0 }
 0x201   : > { %2506 = vst [vmem:[%s3196_s23 + $0x18] sm:$0x77] %v2498_v63  ;;  %2508 = vst.msk [vmem:[%s3196_s23 + $0x20] sm:$0x7] %vm2507_vm10, %v2486_v1 }
 0x202   : > { %v2707_v51 = vpop.f32.mrf.mxu0 }
 0x203 PF: > { %s13_s12 = sadd.s32 1, %s2752_s12  }
 0x204   : > { %p10_p4 = scmp.ge.s32.totalorder %s13_s12, 4  }
 0x206   :  { %12 = sbr.rel (!%p10_p4) target bundleno = 1 (0x1), region = 70 }

</bundles_post_ra>
